<compile_context>
chip_gen: v6e
topology: v6e:2x2x1
jax: 0.10.0
libtpu: 0.0.40
codegen_flags: <defaults>
</compile_context>

<pallas_src>
import functools

import jax
import jax.numpy as jnp
import numpy as np
from jax import lax
from jax.experimental import pallas as pl
from jax.experimental.pallas import tpu as pltpu


def _scale_pred_kernel(x_ref, halo_ref, w1_ref, bnb_ref, w2_ref, b2_ref,
                       out_ref, xext_ref, patch_ref,
                       *, CIN, W, TH, CMID, NOUT, A):
    # x_ref:     (1, TH*W, CIN)        bf16  row-tile of the NHWC input, H*W flattened
    # halo_ref:  (1, 1, 2*W, CIN)      bf16  [row above tile | row below tile] (zeros at border)
    # w1_ref:    (9*CIN, CMID)         bf16  3x3 weights, BN scale folded, tap-major rows
    # bnb_ref:   (1, CMID)             f32   folded BN bias
    # w2_ref:    (CMID, COUT)          bf16  1x1 conv weights (transposed)
    # b2_ref:    (1, COUT)             f32   1x1 conv bias
    # out_ref:   (1, A, TH*W, NOUT)    f32   channel-last, per-anchor output
    # xext_ref:  (TH*W + 2*W + 2, CIN) bf16  scratch: [guard | top | tile | bottom | guard]
    # patch_ref: (TH*W, 9*CIN)         bf16  scratch: im2col patch (first CMID cols reused)
    THW = TH * W

    # Assemble the sublane-extended tile.  The two guard rows (0 and THW+2W+1) are left
    # UNINITIALISED on purpose: they are only read by the (0,0)/(2,2) taps at col==0 /
    # col==W-1, where the border masks below force the patch value to zero anyway, so the
    # old full zero-init store pass over xext is dropped.
    xext_ref[1:1 + W, :] = halo_ref[0, 0, 0:W, :]
    xext_ref[1 + W:1 + W + THW, :] = x_ref[0]
    xext_ref[1 + W + THW:1 + 2 * W + THW, :] = halo_ref[0, 0, W:2 * W, :]

    # Left/right image-border masks, computed once per step at (THW, 1) and broadcast
    # across the channel lanes inside the per-tap where.
    col = lax.broadcasted_iota(jnp.int32, (THW, 1), 0) % W
    not_left = col != 0
    not_right = col != (W - 1)

    # im2col: 9 sublane-shifted views of the extended tile -> (THW, 9*CIN) patch (all bf16).
    for k in range(9):
        dy, dx = divmod(k, 3)
        off = dy * W + dx
        v = xext_ref[off:off + THW, :]
        if dx == 0:
            v = jnp.where(not_left, v, jnp.zeros_like(v))
        elif dx == 2:
            v = jnp.where(not_right, v, jnp.zeros_like(v))
        patch_ref[:, k * CIN:(k + 1) * CIN] = v

    # conv3x3 (+ folded BN scale) as one MXU matmul, then BN bias + LeakyReLU(0.1) in f32.
    mid = jnp.dot(patch_ref[...], w1_ref[...], preferred_element_type=jnp.float32)
    mid = mid + bnb_ref[...]
    mid = jnp.where(mid > 0, mid, 0.1 * mid)

    # Park the activated mid as bf16 in the (already consumed) first CMID patch columns so
    # the big f32 intermediate is not spilled twice, then the 1x1 conv as a second matmul.
    patch_ref[:, 0:CMID] = mid.astype(patch_ref.dtype)
    out = jnp.dot(patch_ref[:, 0:CMID], w2_ref[...],
                  preferred_element_type=jnp.float32) + b2_ref[...]

    # Channel-last per-anchor stores: combined with the wrapper's free reshape this realizes
    # PyTorch's reshape(B, A, nc+5, H, W).permute(0, 1, 3, 4, 2) with no XLA transpose pass.
    for a in range(A):
        out_ref[0, a, :, :] = out[:, a * NOUT:(a + 1) * NOUT]


def _round_up(x, m):
    return (x + m - 1) // m * m


def _buf_bytes(rows, cols, itemsize):
    """VMEM bytes of a (rows, cols) buffer after (8, 128) layout padding."""
    return _round_up(max(rows, 1), 8) * _round_up(max(cols, 1), 128) * itemsize


def _step_vmem_bytes(TH, W, CIN, CMID, COUT, NOUT, A):
    """Per-grid-step VMEM residency with true buffer multiplicities.

    Pipelined inputs/outputs are double-buffered (x2).  The weight operands have constant
    index maps (so they are only DMA'd once) but still occupy two buffers by default, so
    they are also counted x2.  Scratch buffers are single.
    """
    THW = TH * W
    act_in = 2 * _buf_bytes(THW, CIN, 2) + 2 * _buf_bytes(2 * W, CIN, 2)
    weights = 2 * (_buf_bytes(9 * CIN, CMID, 2) + _buf_bytes(1, CMID, 4)
                   + _buf_bytes(CMID, COUT, 2) + _buf_bytes(1, COUT, 4))
    out = 2 * A * _buf_bytes(THW, NOUT, 4)
    scratch = _buf_bytes(THW + 2 * W + 2, CIN, 2) + _buf_bytes(THW, 9 * CIN, 2)
    temps = _buf_bytes(THW, CMID, 4) + _buf_bytes(THW, COUT, 4)  # live f32 matmul results
    return act_in + weights + out + scratch + temps


def _vmem_capacity_bytes(default=64 << 20):
    try:
        info = pltpu.get_tpu_info()
        return int(getattr(info, "vmem_capacity_bytes", default))
    except Exception:
        return default


def _pick_tile_h(B, H, W, CIN, CMID, COUT, NOUT, A, budget_bytes):
    """Largest TH dividing H with (TH*W) % 128 == 0 (or TH == H) that fits the budget."""
    legal = [th for th in range(H, 0, -1)
             if H % th == 0 and (th == H or (th * W) % 128 == 0)]
    fitting = [th for th in legal
               if _step_vmem_bytes(th, W, CIN, CMID, COUT, NOUT, A) <= budget_bytes]
    th = fitting[0] if fitting else legal[-1]       # best effort if nothing fits
    # Guarantee >= 2 grid steps so the pipeline has work to overlap with the weight DMA
    # and both v7x TensorCores are used (only matters for B == 1 whole-image tiles).
    if B * (H // th) < 2:
        smaller = [t for t in legal if t < th]
        if smaller:
            th = smaller[0]
    return th


def scale_prediction_block(x_nchw, w1, bn_gamma, bn_beta, bn_mean, bn_var,
                           w2, b2, *, num_classes, anchors_per_scale=3,
                           eps=1e-5, tile_h=None):
    """x_nchw: (B, Cin, H, W).  Returns (B, anchors, H, W, num_classes + 5)."""
    B, CIN, H, W = x_nchw.shape
    CMID = 2 * CIN
    A = anchors_per_scale
    NOUT = num_classes + 5
    COUT = NOUT * A
    assert w1.shape == (CMID, CIN, 3, 3)
    assert w2.shape == (COUT, CMID, 1, 1)

    vmem_cap = _vmem_capacity_bytes()
    budget = min(max(vmem_cap // 4, 8 << 20), 32 << 20)   # bigger tiles on 128 MiB chips
    TH = _pick_tile_h(B, H, W, CIN, CMID, COUT, NOUT, A, budget) if tile_h is None else tile_h
    assert H % TH == 0 and (TH == H or (TH * W) % 128 == 0), (H, W, TH)
    n_t = H // TH
    THW = TH * W

    # ---- plain-JAX glue (layout-only / tiny) --------------------------------
    # Channel-last activations: one bf16 cast+transpose of the INPUT replaces the far larger
    # f32 transpose of the OUTPUT that a channel-first kernel would leave to XLA.
    x_nhwc = jnp.transpose(x_nchw, (0, 2, 3, 1)).astype(jnp.bfloat16)   # (B, H, W, CIN)
    x_flat = x_nhwc.reshape(B, H * W, CIN)

    # Single merged halo input per row-tile: [row above | row below] (zeros at the border).
    zrow = jnp.zeros((B, 1, W, CIN), jnp.bfloat16)
    if n_t > 1:
        top_rows = jnp.concatenate([zrow, x_nhwc[:, TH - 1:H - 1:TH]], axis=1)
        bot_rows = jnp.concatenate([x_nhwc[:, TH::TH], zrow], axis=1)
    else:
        top_rows, bot_rows = zrow, zrow
    halo = jnp.concatenate([top_rows, bot_rows], axis=2)                # (B, n_t, 2*W, CIN)

    # Fold BN scale into the 3x3 weights; only the BN bias stays in the kernel.
    bn_scale = bn_gamma.astype(jnp.float32) / jnp.sqrt(bn_var.astype(jnp.float32) + eps)
    bn_bias = (bn_beta.astype(jnp.float32)
               - bn_mean.astype(jnp.float32) * bn_scale).reshape(1, CMID)
    # (Cmid, Cin, 3, 3) -> (ky, kx, Cin, Cmid) -> (9*Cin, Cmid): tap-major rows (ky*3+kx).
    w1_t = (jnp.transpose(w1.astype(jnp.float32) * bn_scale[:, None, None, None],
                          (2, 3, 1, 0))
            .reshape(9 * CIN, CMID).astype(jnp.bfloat16))
    w2_t = jnp.transpose(w2[:, :, 0, 0]).astype(jnp.bfloat16)           # (Cmid, Cout)
    b2_r = b2.reshape(1, COUT).astype(jnp.float32)

    kernel = functools.partial(_scale_pred_kernel, CIN=CIN, W=W, TH=TH,
                               CMID=CMID, NOUT=NOUT, A=A)

    # Accurate VMEM request: padded per-buffer accounting + 25% margin, chip-gated cap.
    step_bytes = _step_vmem_bytes(TH, W, CIN, CMID, COUT, NOUT, A)
    cap = min(int(vmem_cap * 3 // 4), 100 << 20)
    vmem_limit = int(min(max(step_bytes * 5 // 4 + (4 << 20), 32 << 20), cap))
    flops = 2 * B * H * W * CMID * (9 * CIN + COUT)
    bytes_accessed = int(x_flat.size * 2 + halo.size * 2 + w1_t.size * 2 + w2_t.size * 2
                         + bn_bias.size * 4 + b2_r.size * 4 + B * A * H * W * NOUT * 4)

    out4 = pl.pallas_call(
        kernel,
        out_shape=jax.ShapeDtypeStruct((B, A, H * W, NOUT), jnp.float32),
        grid=(B, n_t),
        in_specs=[
            pl.BlockSpec((1, THW, CIN), lambda b, t: (b, t, 0)),
            pl.BlockSpec((1, 1, 2 * W, CIN), lambda b, t: (b, t, 0, 0)),
            pl.BlockSpec((9 * CIN, CMID), lambda b, t: (0, 0)),
            pl.BlockSpec((1, CMID), lambda b, t: (0, 0)),
            pl.BlockSpec((CMID, COUT), lambda b, t: (0, 0)),
            pl.BlockSpec((1, COUT), lambda b, t: (0, 0)),
        ],
        out_specs=pl.BlockSpec((1, A, THW, NOUT), lambda b, t: (b, 0, t, 0)),
        scratch_shapes=[
            pltpu.VMEM((THW + 2 * W + 2, CIN), jnp.bfloat16),   # extended tile (bf16)
            pltpu.VMEM((THW, 9 * CIN), jnp.bfloat16),           # im2col patch / bf16 mid
        ],
        compiler_params=pltpu.CompilerParams(
            dimension_semantics=("parallel", "parallel"),
            vmem_limit_bytes=vmem_limit),
        cost_estimate=pl.CostEstimate(flops=flops, transcendentals=0,
                                      bytes_accessed=bytes_accessed),
    )(x_flat, halo, w1_t, bn_bias, w2_t, b2_r)

    # out4[b, a, h*W + w, c] is exactly PyTorch's output[b, a, h, w, c]: only a free
    # contiguous reshape remains — no XLA transpose of the f32 output.
    return out4.reshape(B, A, H, W, NOUT)


def _reference(x_nchw, w1, bn_gamma, bn_beta, bn_mean, bn_var, w2, b2,
               *, num_classes, anchors_per_scale=3, eps=1e-5):
    """Pure-JAX f32 reference using lax convolutions (NCHW, like PyTorch)."""
    y = lax.conv_general_dilated(
        x_nchw, w1, window_strides=(1, 1), padding=((1, 1), (1, 1)),
        dimension_numbers=("NCHW", "OIHW", "NCHW"))
    scale = bn_gamma / jnp.sqrt(bn_var + eps)
    bias = bn_beta - bn_mean * scale
    y = y * scale[None, :, None, None] + bias[None, :, None, None]
    y = jnp.where(y > 0, y, 0.1 * y)
    y = lax.conv_general_dilated(
        y, w2, window_strides=(1, 1), padding=((0, 0), (0, 0)),
        dimension_numbers=("NCHW", "OIHW", "NCHW"))
    y = y + b2[None, :, None, None]
    B, C, H, W = y.shape
    y = y.reshape(B, anchors_per_scale, num_classes + 5, H, W)
    return jnp.transpose(y, (0, 1, 3, 4, 2))


if __name__ == "__main__":
    B, CIN, H, W = 2, 4, 16, 16
    NUM_CLASSES = 3
    ANCHORS = 3
    CMID = 2 * CIN
    COUT = (NUM_CLASSES + 5) * ANCHORS

    key = jax.random.PRNGKey(0)
    k = jax.random.split(key, 7)
    x = jax.random.normal(k[0], (B, CIN, H, W), jnp.float32)
    w1 = jax.random.normal(k[1], (CMID, CIN, 3, 3), jnp.float32) * 0.1
    bn_gamma = 1.0 + 0.1 * jax.random.normal(k[2], (CMID,), jnp.float32)
    bn_beta = 0.1 * jax.random.normal(k[3], (CMID,), jnp.float32)
    bn_mean = 0.1 * jax.random.normal(k[4], (CMID,), jnp.float32)
    bn_var = jnp.abs(1.0 + 0.1 * jax.random.normal(k[5], (CMID,), jnp.float32))
    w2 = jax.random.normal(k[6], (COUT, CMID, 1, 1), jnp.float32) * 0.1
    b2 = jnp.linspace(-0.5, 0.5, COUT, dtype=jnp.float32)

    ref = _reference(x, w1, bn_gamma, bn_beta, bn_mean, bn_var, w2, b2,
                     num_classes=NUM_CLASSES, anchors_per_scale=ANCHORS)

    # Run both the auto-picked tile (whole image per step, grid=(2,1)) and an explicit
    # smaller row-tile (TH*W = 128) that exercises the halo / H-tiling path (grid=(2,2)).
    for th in (None, 8):
        out = scale_prediction_block(
            x, w1, bn_gamma, bn_beta, bn_mean, bn_var, w2, b2,
            num_classes=NUM_CLASSES, anchors_per_scale=ANCHORS, tile_h=th)
        out = jax.block_until_ready(out)
        assert out.shape == (B, ANCHORS, H, W, NUM_CLASSES + 5), out.shape
        # bf16 matmul operands vs the f32 reference -> loosened tolerance.
        np.testing.assert_allclose(np.asarray(out), np.asarray(ref),
                                   rtol=2e-2, atol=5e-2)
    print("KERNEL_OK")
</pallas_src>

<mosaic_0001>
module attributes {stable_mosaic.version = 11 : i64} {
  func.func @_scale_pred_kernel(%arg0: i32, %arg1: i32, %arg2: memref<1x256x4xbf16, #tpu.memory_space<vmem>>, %arg3: memref<1x1x32x4xbf16, #tpu.memory_space<vmem>>, %arg4: memref<36x8xbf16, #tpu.memory_space<vmem>>, %arg5: memref<1x8xf32, #tpu.memory_space<vmem>>, %arg6: memref<8x24xbf16, #tpu.memory_space<vmem>>, %arg7: memref<1x24xf32, #tpu.memory_space<vmem>>, %arg8: memref<1x3x256x8xf32, #tpu.memory_space<vmem>>, %arg9: memref<290x4xbf16, #tpu.memory_space<vmem>>, %arg10: memref<256x36xbf16, #tpu.memory_space<vmem>>) attributes {dimension_semantics = [#tpu.dimension_semantics<parallel>, #tpu.dimension_semantics<parallel>], iteration_bounds = array<i64: 2, 1>, scalar_prefetch = 0 : i64, scratch_operands = 2 : i64, tpu.core_type = #tpu.core_type<tc>, window_params = [{transform_indices = @transform_0, window_bounds = array<i64: 1, 256, 4>}, {transform_indices = @transform_1, window_bounds = array<i64: 1, 1, 32, 4>}, {pipeline_mode = #tpu.pipeline_mode<synchronous>, transform_indices = @transform_2, window_bounds = array<i64: 36, 8>}, {pipeline_mode = #tpu.pipeline_mode<synchronous>, transform_indices = @transform_3, window_bounds = array<i64: 1, 8>}, {pipeline_mode = #tpu.pipeline_mode<synchronous>, transform_indices = @transform_4, window_bounds = array<i64: 8, 24>}, {pipeline_mode = #tpu.pipeline_mode<synchronous>, transform_indices = @transform_5, window_bounds = array<i64: 1, 24>}, {transform_indices = @transform_6, window_bounds = array<i64: 1, 3, 256, 8>}]} {
    %c0 = arith.constant 0 : index
    %c0_0 = arith.constant 0 : index
    %c0_1 = arith.constant 0 : index
    %c0_2 = arith.constant 0 : index
    %0 = vector.load %arg3[%c0, %c0_0, %c0_1, %c0_2] : memref<1x1x32x4xbf16, #tpu.memory_space<vmem>>, vector<1x1x16x4xbf16>
    %1 = vector.shape_cast %0 : vector<1x1x16x4xbf16> to vector<16x4xbf16>
    %c1 = arith.constant 1 : index
    %c0_3 = arith.constant 0 : index
    %2 = vector.load %arg9[%c1, %c0_3] : memref<290x4xbf16, #tpu.memory_space<vmem>>, vector<16x4xbf16>
    tpu.vector_store %arg9[%c1, %c0_3], %1 {strides = array<i32>} : memref<290x4xbf16, #tpu.memory_space<vmem>>, vector<16x4xbf16>,
    %c0_4 = arith.constant 0 : index
    %c0_5 = arith.constant 0 : index
    %c0_6 = arith.constant 0 : index
    %3 = vector.load %arg2[%c0_4, %c0_5, %c0_6] : memref<1x256x4xbf16, #tpu.memory_space<vmem>>, vector<1x256x4xbf16>
    %4 = vector.shape_cast %3 : vector<1x256x4xbf16> to vector<256x4xbf16>
    %c17 = arith.constant 17 : index
    %c0_7 = arith.constant 0 : index
    %5 = vector.load %arg9[%c17, %c0_7] : memref<290x4xbf16, #tpu.memory_space<vmem>>, vector<256x4xbf16>
    tpu.vector_store %arg9[%c17, %c0_7], %4 {strides = array<i32>} : memref<290x4xbf16, #tpu.memory_space<vmem>>, vector<256x4xbf16>,
    %c0_8 = arith.constant 0 : index
    %c0_9 = arith.constant 0 : index
    %c16 = arith.constant 16 : index
    %c0_10 = arith.constant 0 : index
    %6 = vector.load %arg3[%c0_8, %c0_9, %c16, %c0_10] : memref<1x1x32x4xbf16, #tpu.memory_space<vmem>>, vector<1x1x16x4xbf16>
    %7 = vector.shape_cast %6 : vector<1x1x16x4xbf16> to vector<16x4xbf16>
    %c273 = arith.constant 273 : index
    %c0_11 = arith.constant 0 : index
    %8 = vector.load %arg9[%c273, %c0_11] : memref<290x4xbf16, #tpu.memory_space<vmem>>, vector<16x4xbf16>
    tpu.vector_store %arg9[%c273, %c0_11], %7 {strides = array<i32>} : memref<290x4xbf16, #tpu.memory_space<vmem>>, vector<16x4xbf16>,
    %9 = tpu.iota {dimensions = array<i32: 0>} : vector<256x1xi32>
    %c16_i32 = arith.constant 16 : i32
    %c0_i32 = arith.constant 0 : i32
    %10 = arith.cmpi eq, %c16_i32, %c0_i32 : i32
    %c1_i32 = arith.constant 1 : i32
    %11 = arith.select %10, %c1_i32, %c16_i32 : i32
    %12 = vector.broadcast %11 : i32 to vector<256x1xi32>
    %13 = arith.remsi %9, %12 : vector<256x1xi32>
    %c0_i32_12 = arith.constant 0 : i32
    %14 = vector.broadcast %c0_i32_12 : i32 to vector<256x1xi32>
    %15 = arith.cmpi ne, %13, %14 : vector<256x1xi32>
    %c0_i32_13 = arith.constant 0 : i32
    %16 = vector.broadcast %c0_i32_13 : i32 to vector<256x1xi32>
    %17 = arith.cmpi slt, %13, %16 : vector<256x1xi32>
    %c0_i32_14 = arith.constant 0 : i32
    %18 = arith.cmpi slt, %11, %c0_i32_14 : i32
    %19 = vector.broadcast %18 : i1 to vector<256x1xi1>
    %20 = vector.broadcast %19 : vector<256x1xi1> to vector<256x1xi1>
    %21 = arith.xori %17, %20 : vector<256x1xi1>
    %22 = arith.andi %21, %15 : vector<256x1xi1>
    %23 = vector.broadcast %11 : i32 to vector<256x1xi32>
    %24 = arith.addi %13, %23 : vector<256x1xi32>
    %25 = arith.select %22, %24, %13 : vector<256x1xi1>, vector<256x1xi32>
    %c0_i32_15 = arith.constant 0 : i32
    %26 = vector.broadcast %c0_i32_15 : i32 to vector<256x1xi32>
    %27 = arith.cmpi ne, %25, %26 : vector<256x1xi32>
    %c15_i32 = arith.constant 15 : i32
    %28 = vector.broadcast %c15_i32 : i32 to vector<256x1xi32>
    %29 = arith.cmpi ne, %25, %28 : vector<256x1xi32>
    %c0_16 = arith.constant 0 : index
    %c0_17 = arith.constant 0 : index
    %30 = vector.load %arg9[%c0_16, %c0_17] : memref<290x4xbf16, #tpu.memory_space<vmem>>, vector<256x4xbf16>
    %cst = arith.constant 0.000000e+00 : bf16
    %31 = vector.broadcast %cst : bf16 to vector<256x4xbf16>
    %32 = vector.shape_cast %27 : vector<256x1xi1> to vector<256x1xi1>
    %33 = vector.broadcast %32 : vector<256x1xi1> to vector<256x4xi1>
    %34 = arith.select %33, %30, %31 : vector<256x4xi1>, vector<256x4xbf16>
    %c0_18 = arith.constant 0 : index
    %c0_19 = arith.constant 0 : index
    %35 = vector.load %arg10[%c0_18, %c0_19] : memref<256x36xbf16, #tpu.memory_space<vmem>>, vector<256x4xbf16>
    tpu.vector_store %arg10[%c0_18, %c0_19], %34 {strides = array<i32>} : memref<256x36xbf16, #tpu.memory_space<vmem>>, vector<256x4xbf16>,
    %c1_20 = arith.constant 1 : index
    %c0_21 = arith.constant 0 : index
    %36 = vector.load %arg9[%c1_20, %c0_21] : memref<290x4xbf16, #tpu.memory_space<vmem>>, vector<256x4xbf16>
    %c0_22 = arith.constant 0 : index
    %c4 = arith.constant 4 : index
    %37 = vector.load %arg10[%c0_22, %c4] : memref<256x36xbf16, #tpu.memory_space<vmem>>, vector<256x4xbf16>
    tpu.vector_store %arg10[%c0_22, %c4], %36 {strides = array<i32>} : memref<256x36xbf16, #tpu.memory_space<vmem>>, vector<256x4xbf16>,
    %c2 = arith.constant 2 : index
    %c0_23 = arith.constant 0 : index
    %38 = vector.load %arg9[%c2, %c0_23] : memref<290x4xbf16, #tpu.memory_space<vmem>>, vector<256x4xbf16>
    %cst_24 = arith.constant 0.000000e+00 : bf16
    %39 = vector.broadcast %cst_24 : bf16 to vector<256x4xbf16>
    %40 = vector.shape_cast %29 : vector<256x1xi1> to vector<256x1xi1>
    %41 = vector.broadcast %40 : vector<256x1xi1> to vector<256x4xi1>
    %42 = arith.select %41, %38, %39 : vector<256x4xi1>, vector<256x4xbf16>
    %c0_25 = arith.constant 0 : index
    %c8 = arith.constant 8 : index
    %43 = vector.load %arg10[%c0_25, %c8] : memref<256x36xbf16, #tpu.memory_space<vmem>>, vector<256x4xbf16>
    tpu.vector_store %arg10[%c0_25, %c8], %42 {strides = array<i32>} : memref<256x36xbf16, #tpu.memory_space<vmem>>, vector<256x4xbf16>,
    %c16_26 = arith.constant 16 : index
    %c0_27 = arith.constant 0 : index
    %44 = vector.load %arg9[%c16_26, %c0_27] : memref<290x4xbf16, #tpu.memory_space<vmem>>, vector<256x4xbf16>
    %cst_28 = arith.constant 0.000000e+00 : bf16
    %45 = vector.broadcast %cst_28 : bf16 to vector<256x4xbf16>
    %46 = vector.shape_cast %27 : vector<256x1xi1> to vector<256x1xi1>
    %47 = vector.broadcast %46 : vector<256x1xi1> to vector<256x4xi1>
    %48 = arith.select %47, %44, %45 : vector<256x4xi1>, vector<256x4xbf16>
    %c0_29 = arith.constant 0 : index
    %c12 = arith.constant 12 : index
    %49 = vector.load %arg10[%c0_29, %c12] : memref<256x36xbf16, #tpu.memory_space<vmem>>, vector<256x4xbf16>
    tpu.vector_store %arg10[%c0_29, %c12], %48 {strides = array<i32>} : memref<256x36xbf16, #tpu.memory_space<vmem>>, vector<256x4xbf16>,
    %c17_30 = arith.constant 17 : index
    %c0_31 = arith.constant 0 : index
    %50 = vector.load %arg9[%c17_30, %c0_31] : memref<290x4xbf16, #tpu.memory_space<vmem>>, vector<256x4xbf16>
    %c0_32 = arith.constant 0 : index
    %c16_33 = arith.constant 16 : index
    %51 = vector.load %arg10[%c0_32, %c16_33] : memref<256x36xbf16, #tpu.memory_space<vmem>>, vector<256x4xbf16>
    tpu.vector_store %arg10[%c0_32, %c16_33], %50 {strides = array<i32>} : memref<256x36xbf16, #tpu.memory_space<vmem>>, vector<256x4xbf16>,
    %c18 = arith.constant 18 : index
    %c0_34 = arith.constant 0 : index
    %52 = vector.load %arg9[%c18, %c0_34] : memref<290x4xbf16, #tpu.memory_space<vmem>>, vector<256x4xbf16>
    %cst_35 = arith.constant 0.000000e+00 : bf16
    %53 = vector.broadcast %cst_35 : bf16 to vector<256x4xbf16>
    %54 = vector.shape_cast %29 : vector<256x1xi1> to vector<256x1xi1>
    %55 = vector.broadcast %54 : vector<256x1xi1> to vector<256x4xi1>
    %56 = arith.select %55, %52, %53 : vector<256x4xi1>, vector<256x4xbf16>
    %c0_36 = arith.constant 0 : index
    %c20 = arith.constant 20 : index
    %57 = vector.load %arg10[%c0_36, %c20] : memref<256x36xbf16, #tpu.memory_space<vmem>>, vector<256x4xbf16>
    tpu.vector_store %arg10[%c0_36, %c20], %56 {strides = array<i32>} : memref<256x36xbf16, #tpu.memory_space<vmem>>, vector<256x4xbf16>,
    %c32 = arith.constant 32 : index
    %c0_37 = arith.constant 0 : index
    %58 = vector.load %arg9[%c32, %c0_37] : memref<290x4xbf16, #tpu.memory_space<vmem>>, vector<256x4xbf16>
    %cst_38 = arith.constant 0.000000e+00 : bf16
    %59 = vector.broadcast %cst_38 : bf16 to vector<256x4xbf16>
    %60 = vector.shape_cast %27 : vector<256x1xi1> to vector<256x1xi1>
    %61 = vector.broadcast %60 : vector<256x1xi1> to vector<256x4xi1>
    %62 = arith.select %61, %58, %59 : vector<256x4xi1>, vector<256x4xbf16>
    %c0_39 = arith.constant 0 : index
    %c24 = arith.constant 24 : index
    %63 = vector.load %arg10[%c0_39, %c24] : memref<256x36xbf16, #tpu.memory_space<vmem>>, vector<256x4xbf16>
    tpu.vector_store %arg10[%c0_39, %c24], %62 {strides = array<i32>} : memref<256x36xbf16, #tpu.memory_space<vmem>>, vector<256x4xbf16>,
    %c33 = arith.constant 33 : index
    %c0_40 = arith.constant 0 : index
    %64 = vector.load %arg9[%c33, %c0_40] : memref<290x4xbf16, #tpu.memory_space<vmem>>, vector<256x4xbf16>
    %c0_41 = arith.constant 0 : index
    %c28 = arith.constant 28 : index
    %65 = vector.load %arg10[%c0_41, %c28] : memref<256x36xbf16, #tpu.memory_space<vmem>>, vector<256x4xbf16>
    tpu.vector_store %arg10[%c0_41, %c28], %64 {strides = array<i32>} : memref<256x36xbf16, #tpu.memory_space<vmem>>, vector<256x4xbf16>,
    %c34 = arith.constant 34 : index
    %c0_42 = arith.constant 0 : index
    %66 = vector.load %arg9[%c34, %c0_42] : memref<290x4xbf16, #tpu.memory_space<vmem>>, vector<256x4xbf16>
    %cst_43 = arith.constant 0.000000e+00 : bf16
    %67 = vector.broadcast %cst_43 : bf16 to vector<256x4xbf16>
    %68 = vector.shape_cast %29 : vector<256x1xi1> to vector<256x1xi1>
    %69 = vector.broadcast %68 : vector<256x1xi1> to vector<256x4xi1>
    %70 = arith.select %69, %66, %67 : vector<256x4xi1>, vector<256x4xbf16>
    %c0_44 = arith.constant 0 : index
    %c32_45 = arith.constant 32 : index
    %71 = vector.load %arg10[%c0_44, %c32_45] : memref<256x36xbf16, #tpu.memory_space<vmem>>, vector<256x4xbf16>
    tpu.vector_store %arg10[%c0_44, %c32_45], %70 {strides = array<i32>} : memref<256x36xbf16, #tpu.memory_space<vmem>>, vector<256x4xbf16>,
    %c0_46 = arith.constant 0 : index
    %c0_47 = arith.constant 0 : index
    %72 = vector.load %arg10[%c0_46, %c0_47] : memref<256x36xbf16, #tpu.memory_space<vmem>>, vector<256x36xbf16>
    %c0_48 = arith.constant 0 : index
    %c0_49 = arith.constant 0 : index
    %73 = vector.load %arg4[%c0_48, %c0_49] : memref<36x8xbf16, #tpu.memory_space<vmem>>, vector<36x8xbf16>
    %cst_50 = arith.constant dense<0.000000e+00> : vector<256x8xf32>
    %74 = tpu.matmul %72, %73, %cst_50 {dimension_numbers = #tpu.dot_dimension_numbers<[1], [0], [0], [1], [0, 0, 1, 1], [], []>} : vector<256x36xbf16>, vector<36x8xbf16>, vector<256x8xf32> -> vector<256x8xf32>
    %c0_51 = arith.constant 0 : index
    %c0_52 = arith.constant 0 : index
    %75 = vector.load %arg5[%c0_51, %c0_52] : memref<1x8xf32, #tpu.memory_space<vmem>>, vector<1x8xf32>
    %76 = vector.broadcast %75 : vector<1x8xf32> to vector<256x8xf32>
    %77 = arith.addf %74, %76 : vector<256x8xf32>
    %cst_53 = arith.constant 0.000000e+00 : f32
    %78 = vector.broadcast %cst_53 : f32 to vector<256x8xf32>
    %79 = arith.cmpf ogt, %77, %78 : vector<256x8xf32>
    %cst_54 = arith.constant 1.000000e-01 : f32
    %80 = vector.broadcast %cst_54 : f32 to vector<256x8xf32>
    %81 = arith.mulf %80, %77 : vector<256x8xf32>
    %82 = arith.select %79, %77, %81 : vector<256x8xi1>, vector<256x8xf32>
    %83 = arith.truncf %82 : vector<256x8xf32> to vector<256x8xbf16>
    %c0_55 = arith.constant 0 : index
    %c0_56 = arith.constant 0 : index
    %84 = vector.load %arg10[%c0_55, %c0_56] : memref<256x36xbf16, #tpu.memory_space<vmem>>, vector<256x8xbf16>
    tpu.vector_store %arg10[%c0_55, %c0_56], %83 {strides = array<i32>} : memref<256x36xbf16, #tpu.memory_space<vmem>>, vector<256x8xbf16>,
    %c0_57 = arith.constant 0 : index
    %c0_58 = arith.constant 0 : index
    %85 = vector.load %arg10[%c0_57, %c0_58] : memref<256x36xbf16, #tpu.memory_space<vmem>>, vector<256x8xbf16>
    %c0_59 = arith.constant 0 : index
    %c0_60 = arith.constant 0 : index
    %86 = vector.load %arg6[%c0_59, %c0_60] : memref<8x24xbf16, #tpu.memory_space<vmem>>, vector<8x24xbf16>
    %cst_61 = arith.constant dense<0.000000e+00> : vector<256x24xf32>
    %87 = tpu.matmul %85, %86, %cst_61 {dimension_numbers = #tpu.dot_dimension_numbers<[1], [0], [0], [1], [0, 0, 1, 1], [], []>} : vector<256x8xbf16>, vector<8x24xbf16>, vector<256x24xf32> -> vector<256x24xf32>
    %c0_62 = arith.constant 0 : index
    %c0_63 = arith.constant 0 : index
    %88 = vector.load %arg7[%c0_62, %c0_63] : memref<1x24xf32, #tpu.memory_space<vmem>>, vector<1x24xf32>
    %89 = vector.broadcast %88 : vector<1x24xf32> to vector<256x24xf32>
    %90 = arith.addf %87, %89 : vector<256x24xf32>
    %91 = vector.extract_strided_slice %90 {offsets = [0, 0], sizes = [256, 8], strides = [1, 1]} : vector<256x24xf32> to vector<256x8xf32>
    %c0_64 = arith.constant 0 : index
    %c0_65 = arith.constant 0 : index
    %c0_66 = arith.constant 0 : index
    %c0_67 = arith.constant 0 : index
    %92 = vector.load %arg8[%c0_64, %c0_65, %c0_66, %c0_67] : memref<1x3x256x8xf32, #tpu.memory_space<vmem>>, vector<1x1x256x8xf32>
    %93 = vector.shape_cast %92 : vector<1x1x256x8xf32> to vector<256x8xf32>
    %94 = vector.shape_cast %91 : vector<256x8xf32> to vector<1x1x256x8xf32>
    tpu.vector_store %arg8[%c0_64, %c0_65, %c0_66, %c0_67], %94 {strides = array<i32>} : memref<1x3x256x8xf32, #tpu.memory_space<vmem>>, vector<1x1x256x8xf32>,
    %95 = vector.extract_strided_slice %90 {offsets = [0, 8], sizes = [256, 8], strides = [1, 1]} : vector<256x24xf32> to vector<256x8xf32>
    %c0_68 = arith.constant 0 : index
    %c1_69 = arith.constant 1 : index
    %c0_70 = arith.constant 0 : index
    %c0_71 = arith.constant 0 : index
    %96 = vector.load %arg8[%c0_68, %c1_69, %c0_70, %c0_71] : memref<1x3x256x8xf32, #tpu.memory_space<vmem>>, vector<1x1x256x8xf32>
    %97 = vector.shape_cast %96 : vector<1x1x256x8xf32> to vector<256x8xf32>
    %98 = vector.shape_cast %95 : vector<256x8xf32> to vector<1x1x256x8xf32>
    tpu.vector_store %arg8[%c0_68, %c1_69, %c0_70, %c0_71], %98 {strides = array<i32>} : memref<1x3x256x8xf32, #tpu.memory_space<vmem>>, vector<1x1x256x8xf32>,
    %99 = vector.extract_strided_slice %90 {offsets = [0, 16], sizes = [256, 8], strides = [1, 1]} : vector<256x24xf32> to vector<256x8xf32>
    %c0_72 = arith.constant 0 : index
    %c2_73 = arith.constant 2 : index
    %c0_74 = arith.constant 0 : index
    %c0_75 = arith.constant 0 : index
    %100 = vector.load %arg8[%c0_72, %c2_73, %c0_74, %c0_75] : memref<1x3x256x8xf32, #tpu.memory_space<vmem>>, vector<1x1x256x8xf32>
    %101 = vector.shape_cast %100 : vector<1x1x256x8xf32> to vector<256x8xf32>
    %102 = vector.shape_cast %99 : vector<256x8xf32> to vector<1x1x256x8xf32>
    tpu.vector_store %arg8[%c0_72, %c2_73, %c0_74, %c0_75], %102 {strides = array<i32>} : memref<1x3x256x8xf32, #tpu.memory_space<vmem>>, vector<1x1x256x8xf32>,
    return
  }
  func.func @transform_0(%arg0: i32, %arg1: i32) -> (i32, i32, i32) {
    %c0_i32 = arith.constant 0 : i32
    %c0_i32_0 = arith.constant 0 : i32
    return %arg0, %arg1, %c0_i32 : i32, i32, i32
  }
  func.func @transform_1(%arg0: i32, %arg1: i32) -> (i32, i32, i32, i32) {
    %c0_i32 = arith.constant 0 : i32
    %c0_i32_0 = arith.constant 0 : i32
    %c0_i32_1 = arith.constant 0 : i32
    return %arg0, %arg1, %c0_i32, %c0_i32_0 : i32, i32, i32, i32
  }
  func.func @transform_2(%arg0: i32, %arg1: i32) -> (i32, i32) {
    %c0_i32 = arith.constant 0 : i32
    %c0_i32_0 = arith.constant 0 : i32
    %c0_i32_1 = arith.constant 0 : i32
    return %c0_i32, %c0_i32_0 : i32, i32
  }
  func.func @transform_3(%arg0: i32, %arg1: i32) -> (i32, i32) {
    %c0_i32 = arith.constant 0 : i32
    %c0_i32_0 = arith.constant 0 : i32
    %c0_i32_1 = arith.constant 0 : i32
    return %c0_i32, %c0_i32_0 : i32, i32
  }
  func.func @transform_4(%arg0: i32, %arg1: i32) -> (i32, i32) {
    %c0_i32 = arith.constant 0 : i32
    %c0_i32_0 = arith.constant 0 : i32
    %c0_i32_1 = arith.constant 0 : i32
    return %c0_i32, %c0_i32_0 : i32, i32
  }
  func.func @transform_5(%arg0: i32, %arg1: i32) -> (i32, i32) {
    %c0_i32 = arith.constant 0 : i32
    %c0_i32_0 = arith.constant 0 : i32
    %c0_i32_1 = arith.constant 0 : i32
    return %c0_i32, %c0_i32_0 : i32, i32
  }
  func.func @transform_6(%arg0: i32, %arg1: i32) -> (i32, i32, i32, i32) {
    %c0_i32 = arith.constant 0 : i32
    %c0_i32_0 = arith.constant 0 : i32
    %c0_i32_1 = arith.constant 0 : i32
    return %arg0, %c0_i32, %arg1, %c0_i32_0 : i32, i32, i32, i32
  }
}

</mosaic_0001>

<bundles_post_ra>
// kernel: tpu_custom_call.1
= control target key start
LH: loop header
LB: loop body
LE: loop exit
PB: predicated region body
PF: predicated region fallthrough
CT: control target
= control target key end

     0   :  { %s6447_s21 = smov 0   ;;  %s6449_s22 = smov 0   ;;  %s9512_s0 = inlined_call_operand.vmem [shape: bf16[2,256,4], index: 0, kind: input, shape index: {}]   ;;  %s9513_s1 = inlined_call_operand.vmem [shape: bf16[2,1,32,4], index: 1, kind: input, shape index: {}]   ;;  %s9514_s2 = inlined_call_operand.vmem [shape: bf16[36,8], index: 2, kind: input, shape index: {}]   ;;  %s9515_s3 = inlined_call_operand.vmem [shape: f32[1,8], index: 3, kind: input, shape index: {}]   ;;  %s9516_s4 = inlined_call_operand.vmem [shape: bf16[8,24], index: 4, kind: input, shape index: {}]   ;;  %s9517_s5 = inlined_call_operand.vmem [shape: f32[1,24], index: 5, kind: input, shape index: {}]   ;;  %s9518_s6 = inlined_call_operand.vmem [shape: f32[2,3,256,8], index: 6, kind: output, shape index: {}]  }
   0x1   :  { %s6451_s23 = smov 0  }
   0x2 LB: > { %s28_s24 = sadd.s32 1, %s6394_s22  ;;  %p5983_p0 = scmp.ge.s32.totalorder %s6398_s23, 1  ;;  %s6398_s23 = sphi %s6451_s23, %s16_s23   ;;  %s6394_s22 = sphi %s6449_s22, %s9905_s22   ;;  %s6390_s21 = sphi %s6447_s21, %s9904_s21  }
   0x3   : > { %p30_p1 = scmp.ge.s32.totalorder %s28_s24, 2  ;;  %p249_p2 = scmp.lt.s32.totalorder %s6398_s23, 3 }
   0x5   : > { %s9907_s24 = smov (%p30_p1, %s28_s24), 0  ;;  %p250_p3 = pnand %p5983_p0, %p249_p2 }
   0x6   : > { %p297_p4 = scmp.lt.s32.totalorder (!%p250_p3), %s6390_s21, 1  ;;  %s6402_s9 = smov (!%p250_p3), 4  }
   0x7   : > { %253 = sbr.rel (%p250_p3) target bundleno = 1231 (0x4cf), region = 44  ;;  %s6403_s10 = smov (!%p250_p3), 8  }
   0x8   : > { %s6404_s11 = smov (!%p250_p3), 12   ;;  %s6405_s12 = smov (!%p250_p3), 16  }
   0x9   : > { %s6406_s13 = smov (!%p250_p3), 20   ;;  %s6407_s14 = smov (!%p250_p3), 24  }
   0xa   : > { %s6408_s15 = smov (!%p250_p3), 28   ;;  %s6409_s16 = smov (!%p250_p3), 32  }
   0xc   : > { %v784_v0 = vlaneseq  ;;  %s9909_s21 = smov (!%p297_p4, %s6390_s21), 1  ;;  %vm330_vm0 = vsmask.f32 256  ;;  %vm331_vm1 = vsmask.f32 4368  ;;  %vm6400_vm2 = vmmov 1  }
   0xd   : > { %s6160_s25 = sshll.u32 %s9909_s21, 4  ;;  %vm6473_vm3 = vmpackc.low %vm6400_vm2, %vm6400_vm2  ;;  %vm9519_vm4 = vcmask 27648   ;;  %vm354_vm5 = vsmask.f32 7938  ;;  %s6159_s29 = sshll.u32 %s9909_s21, 7  ;;  %v6401_v4 = vmov 0  }
   0xe   : > { %v6467_v1 = vshrl.u32 %v784_v0, 7  ;;  %s6480_s28 = scalar_lea.vmem %s9513_s1, %s6160_s25  ;;  %v2075_v5 = vsel %vm6473_vm3, 65537, %v6401_v4  ;;  %s6491_s8 = scalar_lea.vmem %s9512_s0, %s6159_s29  ;;  %vm361_vm6 = vcmask 24576   ;;  %v356_v15 = vld [vmem:[#allocation2] sm:$0xf]  ;;  %vm6510_vm7 = vmand %vm9519_vm4, %vm354_vm5  ;;  %v9544_v25 = vmov 0 }
   0xf   : > { %v328_v6 = vld [vmem:[%s6480_s28] sm:$0xf]  ;;  %v329_v7 = vld [vmem:[%s6480_s28 + $0x4] sm:$0xf]  ;;  %v368_v17 = vld [vmem:[%s6491_s8 + $0x8] sm:$0xf] }
  0x10   : > { %v6471_v2 = vadd.s32 8, %v6467_v1  ;;  %v6495_v9 = vadd.s32 24, %v6467_v1  ;;  %v334_v10 = vshrl.u32 %v328_v6, 16  ;;  %v337_v11 = vshll.u32 %v328_v6, 16  ;;  %v6498_v14 = vld [vmem:[%s6491_s8] sm:$0xf]  ;;  %vm6521_vm8 = vmor %vm330_vm0, %vm331_vm1 }
  0x11   : > { %v342_v12 = vshrl.u32 %v329_v7, 16  ;;  %v345_v13 = vshll.u32 %v329_v7, 16  ;;  %v367_v16 = vld [vmem:[%s6491_s8 + $0x4] sm:$0xf]  ;;  %v399_v18 = vshrl.u32 %v6498_v14, 16  ;;  %v6503_v19 = vrot.slane %v2075_v5, 7  ;;  %vm6550_vm11 = vmand %vm361_vm6, %vm330_vm0 }
  0x12   : > { %v828_v8 = vand.u32 15, %v6471_v2  ;;  %v336_v20 = vrot.slane %v334_v10, 7  ;;  %v407_v22 = vshrl.u32 %v367_v16, 16  ;;  %v410_v23 = vshll.u32 %v367_v16, 16  ;;  %v369_v24 = vld [vmem:[%s6491_s8 + $0xc] sm:$0xf] }
  0x13   : > { %v6505_v21 = vrot.slane %v342_v12, 7  ;;  %v9545_v25 = vsel %vm6510_vm7, 4294967295, %v9544_v25  ;;  %v6514_v26 = vrot.slane %v399_v18, 7  ;;  %v416_v27 = vshrl.u32 %v368_v17, 16  ;;  %v370_v30 = vld [vmem:[%s6491_s8 + $0x10] sm:$0xf] }
  0x14   : > { %v419_v28 = vshll.u32 %v368_v17, 16  ;;  %v425_v29 = vshrl.u32 %v369_v24, 16  ;;  %v339_v31 = vor.u32 %v337_v11, %v336_v20  ;;  %v340_v32 = vrot.slane %v336_v20, 4  ;;  %v371_v44 = vld [vmem:[%s6491_s8 + $0x14] sm:$0xf] }
  0x15   : > { %v347_v33 = vor.u32 %v345_v13, %v6505_v21  ;;  %v402_v34 = vshll.u32 %v6498_v14, 16  ;;  %v9546_v35 = vmov 0  ;;  %v405_v36 = vrot.slane %v6514_v26, 4  ;;  %v372_v49 = vld [vmem:[%s6491_s8 + $0x18] sm:$0xf] }
  0x16   : > { %v9547_v35 = vsel %vm6521_vm8, 4294967295, %v9546_v35  ;;  %v409_v37 = vrot.slane %v407_v22, 7  ;;  %v418_v38 = vrot.slane %v416_v27, 7  ;;  %v427_v39 = vrot.slane %v425_v29, 7  ;;  %v373_v54 = vld [vmem:[%s6491_s8 + $0x1c] sm:$0xf] }
  0x17   : > { %v348_v40 = vsel %vm6521_vm8, %v340_v32, %v347_v33  ;;  %v357_v41 = vsel %vm6510_vm7, %v339_v31, %v356_v15  ;;  %v428_v42 = vshll.u32 %v369_v24, 16  ;;  %v434_v43 = vshrl.u32 %v370_v30, 16  ;;  %v374_v59 = vld [vmem:[%s6491_s8 + $0x20] sm:$0xf]  ;;  %v363_v0 = vld [vmem:[#allocation2 + $0x8] sm:$0x1] }
  0x18   : > { %358 = vst [vmem:[#allocation2] sm:$0xf] %v357_v41  ;;  %360 = vst.msk [vmem:[#allocation2 + $0x4] sm:$0xf] %vm9519_vm4, %v348_v40  ;;  %v412_v45 = vor.u32 %v410_v23, %v409_v37  ;;  %v414_v46 = vrot.slane %v409_v37, 4  ;;  %v421_v47 = vor.u32 %v419_v28, %v418_v38  ;;  %v423_v48 = vrot.slane %v418_v38, 4 }
  0x19   : > { %v430_v50 = vor.u32 %v428_v42, %v427_v39  ;;  %v432_v51 = vrot.slane %v427_v39, 4  ;;  %v436_v52 = vrot.slane %v434_v43, 7  ;;  %v437_v53 = vshll.u32 %v370_v30, 16  ;;  %v6546_v11 = vld [vmem:[%s6491_s8 + $0x24] sm:$0xf] }
  0x1a   : > { %vm1490_vm9 = vsmask.f32 3328  ;;  %vm1491_vm10 = vsmask.f32 7440  ;;  %v413_v55 = vsel %vm6521_vm8, %v405_v36, %v412_v45  ;;  %v422_v56 = vsel %vm6521_vm8, %v414_v46, %v421_v47 }
  0x1b   : > { %v443_v57 = vshrl.u32 %v371_v44, 16  ;;  %v446_v58 = vshll.u32 %v371_v44, 16  ;;  %v349_v60 = vrot.slane %v6505_v21, 4  ;;  %721 = vst.msk [vmem:[#allocation2 + $0xc] sm:$0xf] %vm9519_vm4, %v413_v55  ;;  %v431_v61 = vsel %vm6521_vm8, %v423_v48, %v430_v50  ;;  %vm6580_vm12 = vmor %vm1490_vm9, %vm1491_vm10 }
  0x1c   : > { %722 = vst.msk [vmem:[#allocation2 + $0x10] sm:$0xf] %vm9519_vm4, %v422_v56  ;;  %v439_v62 = vor.u32 %v437_v53, %v436_v52  ;;  %v452_v63 = vshrl.u32 %v372_v49, 16  ;;  %723 = vst.msk [vmem:[#allocation2 + $0x14] sm:$0xf] %vm9519_vm4, %v431_v61  ;;  %v441_v5 = vrot.slane %v436_v52, 4 }
  0x1d   : > { %v445_v6 = vrot.slane %v443_v57, 7  ;;  %v455_v7 = vshll.u32 %v372_v49, 16  ;;  %v461_v10 = vshrl.u32 %v373_v54, 16  ;;  %v9548_v12 = vmov 0 }
  0x1e   : > { %v9549_v12 = vsel %vm6550_vm11, 4294967295, %v9548_v12  ;;  %v440_v13 = vsel %vm6521_vm8, %v432_v51, %v439_v62  ;;  %v454_v15 = vrot.slane %v452_v63, 7  ;;  %v464_v16 = vshll.u32 %v373_v54, 16 }
  0x1f   : > { %v470_v17 = vshrl.u32 %v374_v59, 16  ;;  %724 = vst.msk [vmem:[#allocation2 + $0x18] sm:$0xf] %vm9519_vm4, %v440_v13  ;;  %v448_v18 = vor.u32 %v446_v58, %v445_v6  ;;  %v450_v20 = vrot.slane %v445_v6, 4  ;;  %v463_v21 = vrot.slane %v461_v10, 7 }
  0x20   : > { %v473_v22 = vshll.u32 %v374_v59, 16  ;;  %v1457_v23 = vld [vmem:[#allocation2] sm:$0xf]  ;;  %v6557_v24 = vld [vmem:[#allocation2 + $0x4] sm:$0xf]  ;;  %v457_v27 = vor.u32 %v455_v7, %v454_v15  ;;  %v459_v28 = vrot.slane %v454_v15, 4  ;;  %v364_v30 = vsel %vm6550_vm11, %v349_v60, %v363_v0 }
  0x21   : > { %v6559_v29 = vrot.slane %v470_v17, 7  ;;  %v1494_v31 = vshrl.u32 %v1457_v23, 16  ;;  %v1497_v32 = vshll.u32 %v1457_v23, 16  ;;  %v1503_v33 = vshll.u32 %v6557_v24, 16  ;;  %365 = vst [vmem:[#allocation2 + $0x8] sm:$0x1] %v364_v30 }
  0x22   : > { %v479_v36 = vshrl.u32 %v6546_v11, 16  ;;  %v449_v37 = vsel %vm6521_vm8, %v441_v5, %v448_v18  ;;  %v458_v38 = vsel %vm6521_vm8, %v450_v20, %v457_v27  ;;  %v466_v39 = vor.u32 %v464_v16, %v463_v21  ;;  %v1460_v45 = vld [vmem:[#allocation2 + $0xc] sm:$0xf]  ;;  %v1946_v2 = vld [vmem:[#allocation2] sm:$0xe] }
  0x23   : > { %v468_v40 = vrot.slane %v463_v21, 4  ;;  %v1496_v41 = vrot.slane %v1494_v31, 4  ;;  %v1499_v42 = vrot.slane %v1497_v32, 5  ;;  %v6569_v43 = vrot.slane %v1503_v33, 5  ;;  %725 = vst.msk [vmem:[#allocation2 + $0x1c] sm:$0xf] %vm9519_vm4, %v449_v37 }
  0x24   : > { %v1507_v44 = vshrl.u32 %v6557_v24, 16  ;;  %726 = vst.msk [vmem:[#allocation2 + $0x20] sm:$0xf] %vm9519_vm4, %v458_v38  ;;  %v1461_v46 = vld [vmem:[#allocation2 + $0x10] sm:$0xf]  ;;  %v1523_v47 = vshll.u32 %v1460_v45, 16  ;;  %v467_v50 = vsel %vm6521_vm8, %v459_v28, %v466_v39  ;;  %v475_v51 = vor.u32 %v473_v22, %v6559_v29 }
  0x25   : > { %v1527_v48 = vshrl.u32 %v1460_v45, 16  ;;  %v1462_v49 = vld [vmem:[#allocation2 + $0x14] sm:$0xf]  ;;  %v1500_v52 = vor.u32 %v1499_v42, %v1496_v41  ;;  %v1533_v53 = vshll.u32 %v1461_v46, 16  ;;  %v1537_v54 = vshrl.u32 %v1461_v46, 16 }
  0x26   : > { %v1543_v55 = vshll.u32 %v1462_v49, 16  ;;  %727 = vst.msk [vmem:[#allocation2 + $0x24] sm:$0xf] %vm9519_vm4, %v467_v50  ;;  %v6584_v57 = vrot.slane %v1523_v47, 5  ;;  %v1547_v59 = vshrl.u32 %v1462_v49, 16  ;;  %v476_v61 = vsel %vm6521_vm8, %v468_v40, %v475_v51 }
  0x27   : > { %v1529_v58 = vrot.slane %v1527_v48, 4  ;;  %v1463_v60 = vld [vmem:[#allocation2 + $0x18] sm:$0xf]  ;;  %v1501_v62 = vrot.slane %v1500_v52, 4  ;;  %v1535_v63 = vrot.slane %v1533_v53, 5  ;;  %v1539_v0 = vrot.slane %v1537_v54, 4 }
  0x28   : > { %v1545_v5 = vrot.slane %v1543_v55, 5  ;;  %728 = vst.msk [vmem:[#allocation2 + $0x28] sm:$0xf] %vm9519_vm4, %v476_v61  ;;  %v1549_v7 = vrot.slane %v1547_v59, 4  ;;  %v1553_v10 = vshll.u32 %v1463_v60, 16  ;;  %v1557_v13 = vshrl.u32 %v1463_v60, 16 }
  0x29   : > { %v1530_v6 = vor.u32 %v1529_v58, %v6584_v57  ;;  %v1506_v15 = vsel %vm6580_vm12, %v1501_v62, %v6569_v43  ;;  %v1540_v16 = vor.u32 %v1539_v0, %v1535_v63  ;;  %v477_v17 = vrot.slane %v6559_v29, 4  ;;  %v376_v54 = vld [vmem:[%s6491_s8 + $0x28] sm:$0xf] }
  0x2a   : > { %v6594_v18 = vrot.slane %v479_v36, 7  ;;  %1817 = vrot.lane.b32.xlu0 %v1506_v15, %s6402_s9  ;;  %v1550_v21 = vor.u32 %v1549_v7, %v1545_v5  ;;  %v1555_v22 = vrot.slane %v1553_v10, 5  ;;  %v1464_v23 = vld [vmem:[#allocation2 + $0x1c] sm:$0xf]  ;;  %v1559_v27 = vrot.slane %v1557_v13, 4 }
  0x2b   : > { %v1531_v20 = vrot.slane %v1530_v6, 4  ;;  %v1541_v28 = vrot.slane %v1540_v16, 4  ;;  %v1563_v30 = vshll.u32 %v1464_v23, 16  ;;  %v1567_v31 = vshrl.u32 %v1464_v23, 16  ;;  %v1465_v32 = vld [vmem:[#allocation2 + $0x20] sm:$0xf] }
  0x2c   : > { %v482_v33 = vshll.u32 %v6546_v11, 16  ;;  %v1551_v29 = vrot.slane %v1550_v21, 4  ;;  %v1560_v36 = vor.u32 %v1559_v27, %v1555_v22  ;;  %v1573_v38 = vshll.u32 %v1465_v32, 16  ;;  %v378_v15 = vld [vmem:[%s6491_s8 + $0x30] sm:$0xf] }
  0x2d   : > { %v1536_v37 = vsel %vm6580_vm12, %v1531_v20, %v1535_v63  ;;  %v1466_v39 = vld [vmem:[#allocation2 + $0x24] sm:$0xf]  ;;  %v1546_v40 = vsel %vm6580_vm12, %v1541_v28, %v1545_v5  ;;  %v1565_v41 = vrot.slane %v1563_v30, 5  ;;  %v1569_v42 = vrot.slane %v1567_v31, 4  ;;  %v377_v5 = vld [vmem:[%s6491_s8 + $0x2c] sm:$0xf] }
  0x2e   : > { %1823 = vrot.lane.b32.xlu1 %v1536_v37, %s6402_s9  ;;  %v1577_v45 = vshrl.u32 %v1465_v32, 16  ;;  %1825 = vrot.lane.b32.xlu0 %v1546_v40, %s6402_s9  ;;  %v1556_v11 = vsel %vm6580_vm12, %v1551_v29, %v1555_v22  ;;  %v1561_v46 = vrot.slane %v1560_v36, 4  ;;  %v1575_v47 = vrot.slane %v1573_v38, 5  ;;  %v379_v31 = vld [vmem:[%s6491_s8 + $0x34] sm:$0xf] }
  0x2f   : > { %v1583_v48 = vshll.u32 %v1466_v39, 16  ;;  %v1467_v49 = vld [vmem:[#allocation2 + $0x28] sm:$0xf]  ;;  %v1570_v50 = vor.u32 %v1569_v42, %v1565_v41  ;;  %v1587_v52 = vshrl.u32 %v1466_v39, 16  ;;  %v484_v60 = vor.u32 %v482_v33, %v6594_v18  ;;  %v380_v37 = vld [vmem:[%s6491_s8 + $0x38] sm:$0xf] }
  0x30   : > { %v1579_v51 = vrot.slane %v1577_v45, 4  ;;  %v1593_v53 = vshll.u32 %v1467_v49, 16  ;;  %v1566_v55 = vsel %vm6580_vm12, %v1561_v46, %v1565_v41  ;;  %v1597_v59 = vshrl.u32 %v1467_v49, 16 }
  0x31   : > { %v1585_v58 = vrot.slane %v1583_v48, 5  ;;  %v1571_v61 = vrot.slane %v1570_v50, 4  ;;  %v1589_v63 = vrot.slane %v1587_v52, 4  ;;  %v485_v6 = vsel %vm6521_vm8, %v477_v17, %v484_v60 }
  0x32   : > { %1827 = vrot.lane.b32.xlu1 %v1556_v11, %s6402_s9  ;;  %v1580_v62 = vor.u32 %v1579_v51, %v1575_v47  ;;  %v1595_v0 = vrot.slane %v1593_v53, 5  ;;  %1829 = vrot.lane.b32.xlu0 %v1566_v55, %s6402_s9  ;;  %v1599_v7 = vrot.slane %v1597_v59, 4  ;;  %v486_v10 = vrot.slane %v6594_v18, 4  ;;  %729 = vst.msk [vmem:[#allocation2 + $0x2c] sm:$0xf] %vm9519_vm4, %v485_v6 }
  0x33   : > { %v488_v13 = vshrl.u32 %v376_v54, 16  ;;  %v1576_v16 = vsel %vm6580_vm12, %v1571_v61, %v1575_v47  ;;  %v1590_v21 = vor.u32 %v1589_v63, %v1585_v58  ;;  %v491_v22 = vshll.u32 %v376_v54, 16  ;;  %v381_v11 = vld [vmem:[%s6491_s8 + $0x3c] sm:$0xf] }
  0x34   : > { %v1581_v20 = vrot.slane %v1580_v62, 4  ;;  %v1600_v23 = vor.u32 %v1599_v7, %v1595_v0  ;;  %v497_v28 = vshrl.u32 %v377_v5, 16  ;;  %v500_v30 = vshll.u32 %v377_v5, 16 }
  0x35   : > { %v490_v27 = vrot.slane %v488_v13, 7  ;;  %vm2107_vm13 = vcmask 1040384   ;;  %vm2108_vm14 = vcmask 1044484   ;;  %v1591_v18 = vrot.slane %v1590_v21, 4 }
  0x36   : > { %1831 = vrot.lane.b32.xlu1 %v1576_v16, %s6402_s9  ;;  %v1586_v17 = vsel %vm6580_vm12, %v1581_v20, %v1585_v58  ;;  %v506_v32 = vshrl.u32 %v378_v15, 16  ;;  %v509_v33 = vshll.u32 %v378_v15, 16  ;;  %v1601_v29 = vrot.slane %v1600_v23, 4  ;;  %vm6659_vm1 = vmor %vm2107_vm13, %vm2108_vm14 }
  0x37   : > { %1833 = vrot.lane.b32.xlu0 %v1586_v17, %s6402_s9  ;;  %v493_v36 = vor.u32 %v491_v22, %v490_v27  ;;  %v495_v38 = vrot.slane %v490_v27, 4  ;;  %v499_v39 = vrot.slane %v497_v28, 7  ;;  %v1596_v40 = vsel %vm6580_vm12, %v1591_v18, %v1595_v0 }
  0x38   : > { %v508_v41 = vrot.slane %v506_v32, 7  ;;  %v515_v42 = vshrl.u32 %v379_v31, 16  ;;  %v518_v45 = vshll.u32 %v379_v31, 16  ;;  %v524_v49 = vshrl.u32 %v380_v37, 16  ;;  %v718_v31 = vld [vmem:[#allocation2 + $0x8] sm:$0xf] }
  0x39   : > { %v494_v46 = vsel %vm6521_vm8, %v486_v10, %v493_v36  ;;  %v502_v47 = vor.u32 %v500_v30, %v499_v39  ;;  %v504_v48 = vrot.slane %v499_v39, 4  ;;  %v527_v53 = vshll.u32 %v380_v37, 16  ;;  %v1468_v54 = vld [vmem:[#allocation2 + $0x2c] sm:$0xf] }
  0x3a   : > { %1835 = vrot.lane.b32.xlu1 %v1596_v40, %s6402_s9  ;;  %730 = vst.msk [vmem:[#allocation2 + $0x30] sm:$0xf] %vm9519_vm4, %v494_v46  ;;  %v511_v50 = vor.u32 %v509_v33, %v508_v41  ;;  %v513_v51 = vrot.slane %v508_v41, 4  ;;  %v517_v52 = vrot.slane %v515_v42, 7  ;;  %v526_v58 = vrot.slane %v524_v49, 7 }
  0x3b   : > { %v503_v55 = vsel %vm6521_vm8, %v495_v38, %v502_v47  ;;  %v533_v59 = vshrl.u32 %v381_v11, 16  ;;  %v536_v60 = vshll.u32 %v381_v11, 16  ;;  %v1603_v61 = vshll.u32 %v1468_v54, 16  ;;  %v1265_v47 = vld [vmem:[#allocation2] sm:$0xf] }
  0x3c   : > { %v1607_v62 = vshrl.u32 %v1468_v54, 16  ;;  %731 = vst.msk [vmem:[#allocation2 + $0x34] sm:$0xf] %vm9519_vm4, %v503_v55  ;;  %v512_v63 = vsel %vm6521_vm8, %v504_v48, %v511_v50  ;;  %v520_v0 = vor.u32 %v518_v45, %v517_v52  ;;  %v522_v5 = vrot.slane %v517_v52, 4 }
  0x3d   : > { %732 = vst.msk [vmem:[#allocation2 + $0x38] sm:$0xf] %vm9519_vm4, %v512_v63  ;;  %v529_v6 = vor.u32 %v527_v53, %v526_v58  ;;  %v531_v7 = vrot.slane %v526_v58, 4  ;;  %v6639_v10 = vrot.slane %v533_v59, 7  ;;  %v1605_v13 = vrot.slane %v1603_v61, 5 }
  0x3e   : > { %v1609_v15 = vrot.slane %v1607_v62, 4  ;;  %v521_v16 = vsel %vm6521_vm8, %v513_v51, %v520_v0  ;;  %vm1234_vm15 = vcmp.ne.s32.totalorder %v828_v8, 15  ;;  %v6650_v22 = vrot.slane %v6503_v19, 4  ;;  %v1947_v53 = vld [vmem:[#allocation2 + $0x4] sm:$0xf] }
  0x3f   : > { %733 = vst.msk [vmem:[#allocation2 + $0x3c] sm:$0xf] %vm9519_vm4, %v521_v16  ;;  %v530_v20 = vsel %vm6521_vm8, %v522_v5, %v529_v6  ;;  %v538_v21 = vor.u32 %v536_v60, %v6639_v10  ;;  %vm2044_vm0 = vmpackc.low %vm1234_vm15, %vm1234_vm15  ;;  %v821_v23 = vand.u32 15, %v6467_v1  ;;  %v1606_v27 = vsel %vm6580_vm12, %v1601_v29, %v1605_v13 }
  0x40   : > { %v1610_v28 = vor.u32 %v1609_v15, %v1605_v13  ;;  %734 = vst.msk [vmem:[#allocation2 + $0x40] sm:$0xf] %vm9519_vm4, %v530_v20  ;;  %v2076_v8 = vsel %vm2044_vm0, 65537, %v6401_v4  ;;  %vm2205_vm2 = vcmp.ne.s16.totalorder %v6503_v19, 0  ;;  %v6666_v17 = vrot.slane %v1507_v44, 4  ;;  %1837 = vrot.lane.b32.xlu0 %v1606_v27, %s6402_s9 }
  0x41   : > { %v1469_v18 = vld [vmem:[#allocation2 + $0x30] sm:$0xf]  ;;  %v539_v32 = vsel %vm6521_vm8, %v531_v7, %v538_v21  ;;  %v2112_v33 = vrot.slane %v2076_v8, 7  ;;  %v404_v37 = vor.u32 %v402_v34, %v6514_v26  ;;  %v842_v24 = vand.u32 15, %v6495_v9 }
  0x42   : > { %v1611_v29 = vrot.slane %v1610_v28, 4  ;;  %v1613_v36 = vshll.u32 %v1469_v18, 16  ;;  %v1617_v38 = vshrl.u32 %v1469_v18, 16  ;;  %735 = vst.msk [vmem:[#allocation2 + $0x44] sm:$0xf] %vm9519_vm4, %v539_v32  ;;  %v6683_v40 = vsel %vm2205_vm2, %v1946_v2, 0 }
  0x43   : > { %v1470_v44 = vld [vmem:[#allocation2 + $0x34] sm:$0xf]  ;;  %v6679_v39 = vsel %vm6659_vm1, %v6650_v22, %v2112_v33  ;;  %v719_v14 = vsel %vm6510_vm7, %v404_v37, %v718_v31  ;;  %v6687_v26 = vrot.slane %v2112_v33, 4  ;;  %vm2304_vm5 = vcmask 1042432  }
  0x44   : > { %v1615_v34 = vrot.slane %v1613_v36, 5  ;;  %v1619_v41 = vrot.slane %v1617_v38, 4  ;;  %v1623_v42 = vshll.u32 %v1470_v44, 16  ;;  %v1627_v45 = vshrl.u32 %v1470_v44, 16  ;;  %v1471_v9 = vld [vmem:[#allocation2 + $0x38] sm:$0xf] }
  0x45   : > { %vm2305_vm6 = vcmask 1046532   ;;  %720 = vst [vmem:[#allocation2 + $0x8] sm:$0xf] %v719_v14  ;;  %v1633_v11 = vshll.u32 %v1471_v9, 16  ;;  %v1637_v46 = vshrl.u32 %v1471_v9, 16  ;;  %vm2206_vm9 = vcmp.ne.s16.totalorder %v6679_v39, 0 }
  0x46   : > { %vm6690_vm10 = vcmp.ne.s32.totalorder %v842_v24, 15  ;;  %v1616_v48 = vsel %vm6580_vm12, %v1611_v29, %v1615_v34  ;;  %v1620_v49 = vor.u32 %v1619_v41, %v1615_v34  ;;  %v1625_v50 = vrot.slane %v1623_v42, 5  ;;  %v1472_v52 = vld [vmem:[#allocation2 + $0x3c] sm:$0xf]  ;;  %vm6727_vm14 = vmor %vm2304_vm5, %vm2305_vm6 }
  0x47   : > { %v1629_v51 = vrot.slane %v1627_v45, 4  ;;  %1839 = vrot.lane.b32.xlu1 %v1616_v48, %s6402_s9  ;;  %v1635_v54 = vrot.slane %v1633_v11, 5  ;;  %v1639_v55 = vrot.slane %v1637_v46, 4  ;;  %v1643_v58 = vshll.u32 %v1472_v52, 16  ;;  %v1473_v60 = vld [vmem:[#allocation2 + $0x40] sm:$0xf]  ;;  %vm2046_vm13 = vmpackc.low %vm6690_vm10, %vm6690_vm10 }
  0x48   : > { %v1647_v59 = vshrl.u32 %v1472_v52, 16  ;;  %v1621_v61 = vrot.slane %v1620_v49, 4  ;;  %v1653_v63 = vshll.u32 %v1473_v60, 16  ;;  %v1657_v0 = vshrl.u32 %v1473_v60, 16 }
  0x49   : > { %v1630_v62 = vor.u32 %v1629_v51, %v1625_v50  ;;  %v1640_v5 = vor.u32 %v1639_v55, %v1635_v54  ;;  %v1645_v6 = vrot.slane %v1643_v58, 5  ;;  %v1474_v13 = vld [vmem:[#allocation2 + $0x44] sm:$0xf]  ;;  %v2239_v15 = vsel %vm2206_vm9, %v1947_v53, 0 }
  0x4a   : > { %v1649_v7 = vrot.slane %v1647_v59, 4  ;;  %v1626_v16 = vsel %vm6580_vm12, %v1621_v61, %v1625_v50  ;;  %v1655_v21 = vrot.slane %v1653_v63, 5  ;;  %v1659_v27 = vrot.slane %v1657_v0, 4 }
  0x4b   : > { %v1631_v20 = vrot.slane %v1630_v62, 4  ;;  %1841 = vrot.lane.b32.xlu0 %v1626_v16, %s6402_s9  ;;  %v1641_v28 = vrot.slane %v1640_v5, 4  ;;  %v1663_v8 = vshll.u32 %v1474_v13, 16  ;;  %v1667_v31 = vshrl.u32 %v1474_v13, 16 }
  0x4c   : > { %v1650_v2 = vor.u32 %v1649_v7, %v1645_v6  ;;  %v1660_v32 = vor.u32 %v1659_v27, %v1655_v21  ;;  %v2309_v33 = vrot.slane %v2239_v15, 5  ;;  %v2078_v37 = vsel %vm2046_vm13, 65537, %v6401_v4  ;;  %v1948_v44 = vld [vmem:[#allocation2 + $0x8] sm:$0xf]  ;;  %v2759_v15 = vld [vmem:[#allocation2 + $0xc] sm:$0xf] }
  0x4d   : > { %v1636_v18 = vsel %vm6580_vm12, %v1631_v20, %v1635_v54  ;;  %v1646_v29 = vsel %vm6580_vm12, %v1641_v28, %v1645_v6  ;;  %v6711_v38 = vrot.slane %v1663_v8, 5  ;;  %v6713_v24 = vrot.slane %v1667_v31, 4  ;;  %v1459_v45 = vld [vmem:[#allocation2 + $0x8] sm:$0xf] }
  0x4e   : > { %1843 = vrot.lane.b32.xlu1 %v1636_v18, %s6402_s9  ;;  %v1651_v36 = vrot.slane %v1650_v2, 4  ;;  %v1661_v14 = vrot.slane %v1660_v32, 4  ;;  %v5989_v34 = vrot.slane %v6683_v40, 9  ;;  %v2116_v41 = vsel %vm6659_vm1, %v6687_v26, %v6503_v19  ;;  %v1949_v40 = vld [vmem:[#allocation2 + $0xc] sm:$0xf] }
  0x4f   : > { %v2118_v42 = vrot.slane %v2078_v37, 7  ;;  %1845 = vrot.lane.b32.xlu0 %v1646_v29, %s6402_s9  ;;  %v1670_v11 = vor.u32 %v6713_v24, %v6711_v38  ;;  %vm6731_vm15 = vcmp.ne.s16.totalorder %v2116_v41, 0  ;;  %v2311_v26 = vrot.slane %v2309_v33, 4  ;;  %v2758_v7 = vld [vmem:[#allocation2 + $0x8] sm:$0xf] }
  0x50   : > { %v1656_v9 = vsel %vm6580_vm12, %v1651_v36, %v1655_v21  ;;  %v1666_v48 = vsel %vm6580_vm12, %v1661_v14, %v6711_v38  ;;  %v2240_v50 = vsel %vm6731_vm15, %v1948_v44, 0  ;;  %v787_v51 = vadd.s32 16, %v6467_v1  ;;  %v2533_v20 = vld [vmem:[#allocation2 + $0x8] sm:$0xf]  ;;  %v2760_v32 = vld [vmem:[#allocation2 + $0x10] sm:$0xf] }
  0x51   : > { %v6741_v49 = vsel %vm6659_vm1, %v6650_v22, %v2118_v42  ;;  %v2312_v52 = vrot.slane %v2240_v50, 5  ;;  %v1510_v53 = vor.u32 %v6666_v17, %v6569_v43  ;;  %v1513_v54 = vshll.u32 %v1459_v45, 16  ;;  %v1950_v43 = vld [vmem:[#allocation2 + $0x10] sm:$0xf]  ;;  %v2761_v14 = vld [vmem:[#allocation2 + $0x14] sm:$0xf] }
  0x52   : > { %1847 = vrot.lane.b32.xlu1 %v1656_v9, %s6402_s9  ;;  %vm9520_vm0 = vcmp.ne.s16.totalorder %v6741_v49, 0  ;;  %v2310_v55 = vsel %vm6727_vm14, %v5989_v34, %v2309_v33  ;;  %v1517_v59 = vshrl.u32 %v1459_v45, 16  ;;  %v2120_v60 = vrot.slane %v2118_v42, 4 }
  0x53   : > { %v2241_v58 = vsel %vm9520_vm0, %v1949_v40, 0  ;;  %1849 = vrot.lane.b32.xlu0 %v1666_v48, %s6402_s9  ;;  %v2314_v61 = vrot.slane %v2312_v52, 4  ;;  %v2313_v63 = vsel %vm6727_vm14, %v2311_v26, %v2312_v52  ;;  %vm1201_vm5 = vcmp.ne.s32.totalorder %v821_v23, 0 }
  0x54   : > { %v2315_v62 = vrot.slane %v2241_v58, 5  ;;  %v1511_v17 = vrot.slane %v1510_v53, 4  ;;  %v1515_v0 = vrot.slane %v1513_v54, 5  ;;  %v1519_v5 = vrot.slane %v1517_v59, 4  ;;  %vm6769_vm10 = vmpackc.low %vm1201_vm5, %vm1201_vm5  ;;  %v2535_v59 = vld [vmem:[#allocation2 + $0x10] sm:$0xf] }
  0x55   : > { %v2122_v6 = vsel %vm6659_vm1, %v2120_v60, %v6503_v19  ;;  %v835_v28 = vand.u32 15, %v787_v51  ;;  %v2792_v31 = vshrl.u32 %v2758_v7, 16  ;;  %v2795_v18 = vshll.u32 %v2758_v7, 16  ;;  %v2534_v51 = vld [vmem:[#allocation2 + $0xc] sm:$0xf] }
  0x56   : > { %2404 = vrot.lane.b32.xlu1 %v2310_v55, %s6403_s10  ;;  %vm6763_vm6 = vcmp.ne.s16.totalorder %v2122_v6, 0  ;;  %v2316_v23 = vsel %vm6727_vm14, %v2314_v61, %v2315_v62  ;;  %v1520_v21 = vor.u32 %v1519_v5, %v1515_v0  ;;  %v2317_v2 = vrot.slane %v2315_v62, 4  ;;  %v3245_v6 = vld [vmem:[#allocation2 + $0xc] sm:$0xf]  ;;  %v3246_v7 = vld [vmem:[#allocation2 + $0x10] sm:$0xf] }
  0x57   : > { %v2242_v27 = vsel %vm6763_vm6, %v1950_v43, 0  ;;  %2406 = vrot.lane.b32.xlu0 %v2313_v63, %s6403_s10  ;;  %v1516_v33 = vsel %vm6580_vm12, %v1511_v17, %v1515_v0  ;;  %v2801_v37 = vshll.u32 %v2759_v15, 16  ;;  %v2805_v29 = vshrl.u32 %v2759_v15, 16  ;;  %v2536_v43 = vld [vmem:[#allocation2 + $0x14] sm:$0xf] }
  0x58   : > { %v6776_v8 = vrot.slane %v2242_v27, 5  ;;  %v2565_v36 = vsel %vm6769_vm10, %v2533_v20, 0  ;;  %v1521_v44 = vrot.slane %v1520_v21, 4  ;;  %v2794_v34 = vrot.slane %v2792_v31, 4  ;;  %v3244_v20 = vld [vmem:[#allocation2 + $0x8] sm:$0xe] }
  0x59   : > { %v2797_v41 = vrot.slane %v2795_v18, 5  ;;  %v2811_v42 = vshll.u32 %v2760_v32, 16  ;;  %v2815_v45 = vshrl.u32 %v2760_v32, 16  ;;  %vm1203_vm13 = vcmp.ne.s32.totalorder %v835_v28, 0 }
  0x5a   : > { %2408 = vrot.lane.b32.xlu1 %v2316_v23, %s6403_s10  ;;  %v2319_v9 = vsel %vm6727_vm14, %v2317_v2, %v6776_v8  ;;  %v2803_v40 = vrot.slane %v2801_v37, 5  ;;  %v2821_v26 = vshll.u32 %v2761_v14, 16  ;;  %v2825_v48 = vshrl.u32 %v2761_v14, 16  ;;  %vm6792_vm5 = vmpackc.low %vm1203_vm13, %vm1203_vm13 }
  0x5b   : > { %1819 = vrot.lane.b32.xlu0 %v1516_v33, %s6402_s9  ;;  %v2807_v50 = vrot.slane %v2805_v29, 4  ;;  %v1526_v52 = vsel %vm6580_vm12, %v1521_v44, %v6584_v57  ;;  %v2798_v53 = vor.u32 %v2797_v41, %v2794_v34  ;;  %v2813_v54 = vrot.slane %v2811_v42, 5  ;;  %v6799_v57 = vld [vmem:[#allocation2 + $0x18] sm:$0xf]  ;;  %v3247_v33 = vld [vmem:[#allocation2 + $0x14] sm:$0xf] }
  0x5c   : > { %v2817_v55 = vrot.slane %v2815_v45, 4  ;;  %v2566_v60 = vsel %vm6473_vm3, %v2534_v51, 0  ;;  %v2823_v61 = vrot.slane %v2821_v26, 5  ;;  %v2827_v63 = vrot.slane %v2825_v48, 4  ;;  %v3248_v45 = vld [vmem:[#allocation2 + $0x18] sm:$0xf] }
  0x5d   : > { %v2808_v62 = vor.u32 %v2807_v50, %v2803_v40  ;;  %v2567_v17 = vsel %vm6792_vm5, %v2535_v59, 0  ;;  %v2799_v0 = vrot.slane %v2798_v53, 4  ;;  %v2568_v15 = vsel %vm6473_vm3, %v2536_v43, 0 }
  0x5e   : > { %2629 = vrot.lane.b32.xlu1 %v2565_v36, %s6404_s11  ;;  %v2818_v5 = vor.u32 %v2817_v55, %v2813_v54  ;;  %v2828_v21 = vor.u32 %v2827_v63, %v2823_v61  ;;  %v2831_v27 = vshll.u32 %v6799_v57, 16  ;;  %v3278_v31 = vsel %vm2206_vm9, %v3245_v6, 0 }
  0x5f   : > { %2410 = vrot.lane.b32.xlu0 %v2319_v9, %s6403_s10  ;;  %v2809_v23 = vrot.slane %v2808_v62, 4  ;;  %v2804_v28 = vsel %vm6580_vm12, %v2799_v0, %v2803_v40  ;;  %v3279_v18 = vsel %vm6731_vm15, %v3246_v7, 0  ;;  %v3277_v32 = vsel %vm2205_vm2, %v3244_v20, 0  ;;  %v3794_v40 = vld [vmem:[#allocation2 + $0x10] sm:$0xf] }
  0x60   : > { %v2819_v2 = vrot.slane %v2818_v5, 4  ;;  %v2829_v29 = vrot.slane %v2828_v21, 4  ;;  %v6819_v36 = vrot.slane %v2831_v27, 5  ;;  %v3345_v44 = vrot.slane %v3278_v31, 5  ;;  %v3797_v0 = vld [vmem:[#allocation2 + $0x1c] sm:$0xf] }
  0x61   : > { %v2814_v37 = vsel %vm6580_vm12, %v2809_v23, %v2813_v54  ;;  %v3348_v14 = vrot.slane %v3279_v18, 5  ;;  %v5990_v41 = vrot.slane %v3277_v32, 9  ;;  %v3280_v42 = vsel %vm9520_vm0, %v3247_v33, 0 }
  0x62   : > { %1821 = vrot.lane.b32.xlu1 %v1526_v52, %s6402_s9  ;;  %v2824_v34 = vsel %vm6580_vm12, %v2819_v2, %v2823_v61  ;;  %v3347_v9 = vrot.slane %v3345_v44, 4  ;;  %v2834_v26 = vsel %vm6580_vm12, %v2829_v29, %v6819_v36  ;;  %v3351_v50 = vrot.slane %v3280_v42, 5  ;;  %v3795_v52 = vld [vmem:[#allocation2 + $0x14] sm:$0xf]  ;;  %v3796_v61 = vld [vmem:[#allocation2 + $0x18] sm:$0xf] }
  0x63   : > { %2631 = vrot.lane.b32.xlu0 %v2566_v60, %s6404_s11  ;;  %v3350_v48 = vrot.slane %v3348_v14, 4  ;;  %v3281_v51 = vsel %vm6763_vm6, %v3248_v45, 0  ;;  %v3346_v53 = vsel %vm6727_vm14, %v5990_v41, %v3345_v44  ;;  %v3828_v54 = vshrl.u32 %v3794_v40, 16  ;;  %v3570_v29 = vld [vmem:[#allocation2 + $0x14] sm:$0xf] }
  0x64   : > { %v3831_v55 = vshll.u32 %v3794_v40, 16  ;;  %v3349_v59 = vsel %vm6727_vm14, %v3347_v9, %v3348_v14  ;;  %v3353_v60 = vrot.slane %v3351_v50, 4  ;;  %v790_v62 = vadd.s32 40, %v6467_v1  ;;  %v3571_v42 = vld [vmem:[#allocation2 + $0x18] sm:$0xf] }
  0x65   : > { %v6839_v63 = vrot.slane %v3281_v51, 5  ;;  %v3837_v43 = vshll.u32 %v3795_v52, 16  ;;  %v792_v5 = vadd.s32 56, %v6467_v1  ;;  %v3352_v6 = vsel %vm6727_vm14, %v3350_v48, %v3351_v50  ;;  %v6862_v50 = vld [vmem:[#allocation2 + $0x20] sm:$0xf] }
  0x66   : > { %2633 = vrot.lane.b32.xlu1 %v2567_v17, %s6404_s11  ;;  %v3841_v17 = vshrl.u32 %v3795_v52, 16  ;;  %v856_v7 = vand.u32 15, %v790_v62  ;;  %v3830_v23 = vrot.slane %v3828_v54, 4  ;;  %v3833_v20 = vrot.slane %v3831_v55, 5  ;;  %v3572_v51 = vld [vmem:[#allocation2 + $0x1c] sm:$0xf] }
  0x67   : > { %2635 = vrot.lane.b32.xlu0 %v2568_v15, %s6404_s11  ;;  %v3569_v15 = vld [vmem:[#allocation2 + $0x10] sm:$0xf]  ;;  %v3847_v21 = vshll.u32 %v3796_v61, 16  ;;  %v3851_v27 = vshrl.u32 %v3796_v61, 16  ;;  %v3861_v2 = vshrl.u32 %v3797_v0, 16  ;;  %v870_v31 = vand.u32 15, %v792_v5 }
  0x68   : > { %vm1238_vm13 = vcmp.ne.s32.totalorder %v856_v7, 15  ;;  %v3355_v18 = vsel %vm6727_vm14, %v3353_v60, %v6839_v63  ;;  %v3839_v32 = vrot.slane %v3837_v43, 5  ;;  %v3843_v33 = vrot.slane %v3841_v17, 4  ;;  %v4281_v52 = vld [vmem:[#allocation2 + $0x14] sm:$0xf] }
  0x69   : > { %vm2048_vm4 = vmpackc.low %vm1238_vm13, %vm1238_vm13  ;;  %v3834_v44 = vor.u32 %v3833_v20, %v3830_v23  ;;  %v3849_v14 = vrot.slane %v3847_v21, 5  ;;  %v3863_v9 = vrot.slane %v3861_v2, 4  ;;  %vm6856_vm0 = vcmp.ne.s32.totalorder %v870_v31, 15  ;;  %v4280_v60 = vld [vmem:[#allocation2 + $0x10] sm:$0xe] }
  0x6a   : > { %3115 = vrot.lane.b32.xlu1 %v2804_v28, %s6405_s12  ;;  %v3857_v28 = vshll.u32 %v3797_v0, 16  ;;  %v2080_v41 = vsel %vm2048_vm4, 65537, %v6401_v4  ;;  %v3844_v48 = vor.u32 %v3843_v33, %v3839_v32  ;;  %v3603_v54 = vsel %vm6792_vm5, %v3571_v42, 0  ;;  %vm2050_vm4 = vmpackc.low %vm6856_vm0, %vm6856_vm0  ;;  %v4282_v17 = vld [vmem:[#allocation2 + $0x18] sm:$0xf] }
  0x6b   : > { %3117 = vrot.lane.b32.xlu0 %v2814_v37, %s6405_s12  ;;  %v3601_v37 = vsel %vm6769_vm10, %v3569_v15, 0  ;;  %v3835_v55 = vrot.slane %v3834_v44, 4  ;;  %v789_v61 = vadd.s32 32, %v6467_v1  ;;  %v3867_v43 = vshll.u32 %v6862_v50, 16  ;;  %v1951_v40 = vld [vmem:[#allocation2 + $0x14] sm:$0xf] }
  0x6c   : > { %v6854_v45 = vrot.slane %v3857_v28, 5  ;;  %v3604_v0 = vsel %vm6473_vm3, %v3572_v51, 0  ;;  %v3845_v5 = vrot.slane %v3844_v48, 4  ;;  %v791_v7 = vadd.s32 48, %v6467_v1  ;;  %v4283_v28 = vld [vmem:[#allocation2 + $0x1c] sm:$0xf] }
  0x6d   : > { %v4313_v15 = vsel %vm2205_vm2, %v4280_v60, 0  ;;  %v2082_v23 = vsel %vm2050_vm4, 65537, %v6401_v4  ;;  %v3840_v21 = vsel %vm6580_vm12, %v3835_v55, %v3839_v32  ;;  %v4315_v2 = vsel %vm6731_vm15, %v4282_v17, 0  ;;  %v4284_v32 = vld [vmem:[#allocation2 + $0x20] sm:$0xf] }
  0x6e   : > { %3119 = vrot.lane.b32.xlu1 %v2824_v34, %s6405_s12  ;;  %v3853_v34 = vrot.slane %v3851_v27, 4  ;;  %v3864_v62 = vor.u32 %v3863_v9, %v6854_v45  ;;  %v849_v39 = vand.u32 15, %v789_v61  ;;  %v6888_v33 = vrot.slane %v3867_v43, 5  ;;  %v1952_v60 = vld [vmem:[#allocation2 + $0x18] sm:$0xf] }
  0x6f   : > { %3121 = vrot.lane.b32.xlu0 %v2834_v26, %s6405_s12  ;;  %v3602_v26 = vsel %vm6473_vm3, %v3570_v29, 0  ;;  %v2130_v44 = vrot.slane %v2082_v23, 7  ;;  %vm9568_vm2 = vcmp.ne.s16.totalorder %v6741_v49, 0  ;;  %v4384_v9 = vrot.slane %v4315_v2, 5 }
  0x70   : > { %v4316_v42 = vsel %vm9568_vm2, %v4283_v28, 0  ;;  %v4317_v55 = vsel %vm6763_vm6, %v4284_v32, 0  ;;  %vm9575_vm4 = vcmask 27648  }
  0x71   : > { %v6922_v61 = vsel %vm6659_vm1, %v6650_v22, %v2130_v44  ;;  %v4386_v17 = vrot.slane %v4384_v9, 4  ;;  %v6956_v2 = vrot.slane %v4317_v55, 5 }
  0x72   : > { %3440 = vrot.lane.b32.xlu1 %v3346_v53, %s6406_s13  ;;  %v2124_v53 = vrot.slane %v2080_v41, 7  ;;  %v5991_v41 = vrot.slane %v4313_v15, 9  ;;  %vm9521_vm2 = vcmp.ne.s16.totalorder %v6922_v61, 0 }
  0x73   : > { %3442 = vrot.lane.b32.xlu0 %v3349_v59, %s6406_s13  ;;  %v3854_v59 = vor.u32 %v3853_v34, %v3849_v14  ;;  %v863_v34 = vand.u32 15, %v791_v7  ;;  %v1271_v7 = vld [vmem:[#allocation2 + $0x18] sm:$0xf] }
  0x74   : > { %v2126_v20 = vrot.slane %v2124_v53, 4  ;;  %v6895_v29 = vsel %vm6659_vm1, %v6650_v22, %v2124_v53  ;;  %v2132_v53 = vrot.slane %v2130_v44, 4  ;;  %v2320_v44 = vrot.slane %v6776_v8, 4 }
  0x75   : > { %v3855_v27 = vrot.slane %v3854_v59, 4  ;;  %vm9522_vm15 = vcmp.ne.s16.totalorder %v6895_v29, 0  ;;  %v1270_v59 = vld [vmem:[#allocation2 + $0x14] sm:$0xf]  ;;  %vm6928_vm13 = vcmp.ne.s32.totalorder %v863_v34, 0 }
  0x76   : > { %3444 = vrot.lane.b32.xlu1 %v3352_v6, %s6406_s13  ;;  %v4314_v6 = vsel %vm2206_vm9, %v4281_v52, 0  ;;  %vm6906_vm9 = vcmp.ne.s32.totalorder %v849_v39, 0  ;;  %v2243_v15 = vsel %vm9522_vm15, %v1951_v40, 0  ;;  %v2134_v23 = vsel %vm6659_vm1, %v2132_v53, %v6503_v19  ;;  %v2763_v52 = vld [vmem:[#allocation2 + $0x1c] sm:$0xf] }
  0x77   : > { %3446 = vrot.lane.b32.xlu0 %v3355_v18, %s6406_s13  ;;  %v4381_v31 = vrot.slane %v4314_v6, 5  ;;  %v3865_v18 = vrot.slane %v3864_v62, 4  ;;  %v3860_v48 = vsel %vm6580_vm12, %v3855_v27, %v6854_v45  ;;  %v1393_v45 = vsel %vm6769_vm10, %v1265_v47, 0  ;;  %vm6941_vm6 = vmpackc.low %vm6906_vm9, %vm6906_vm9  ;;  %v1272_v27 = vld [vmem:[#allocation2 + $0x1c] sm:$0xf] }
  0x78   : > { %1425 = vst.msk [vmem:[#allocation3] sm:$0xf] %vm9575_vm4, %v1393_v45  ;;  %vm9578_vm10 = vmmov %vm9575_vm4  ;;  %v1276_v47 = vld [vmem:[#allocation2 + $0x2c] sm:$0xf]  ;;  %v1400_v8 = vsel %vm6473_vm3, %v1272_v27, 0  ;;  %v795_v53 = vadd.s32 80, %v6467_v1 }
  0x79   : > { %v4383_v51 = vrot.slane %v4381_v31, 4  ;;  %v3870_v49 = vsel %vm6580_vm12, %v3865_v18, %v6888_v33  ;;  %v4382_v16 = vsel %vm6727_vm14, %v5991_v41, %v4381_v31  ;;  %v1954_v31 = vld [vmem:[#allocation2 + $0x20] sm:$0xf]  ;;  %vm6964_vm9 = vmpackc.low %vm6928_vm13, %vm6928_vm13  ;;  %vm6978_vm13 = vcmp.ne.s16.totalorder %v2134_v23, 0 }
  0x7a   : > { %3665 = vrot.lane.b32.xlu1 %v3601_v37, %s6407_s14  ;;  %v3850_v37 = vsel %vm6580_vm12, %v3845_v5, %v3849_v14  ;;  %v2128_v14 = vsel %vm6659_vm1, %v2126_v20, %v6503_v19  ;;  %v1953_v5 = vld [vmem:[#allocation2 + $0x1c] sm:$0xf]  ;;  %v1399_v34 = vsel %vm6964_vm9, %v1271_v7, 0  ;;  %v1273_v45 = vld [vmem:[#allocation2 + $0x20] sm:$0xf] }
  0x7b   : > { %3667 = vrot.lane.b32.xlu0 %v3602_v26, %s6407_s14  ;;  %v1268_v26 = vld [vmem:[#allocation2 + $0xc] sm:$0xf]  ;;  %vm6924_vm0 = vcmp.ne.s16.totalorder %v2128_v14, 0  ;;  %v4385_v32 = vsel %vm6727_vm14, %v4383_v51, %v4384_v9  ;;  %1431 = vst.msk [vmem:[#allocation3 + $0x18] sm:$0xf] %vm9575_vm4, %v1399_v34  ;;  %v2245_v9 = vsel %vm9521_vm2, %v1953_v5, 0 }
  0x7c   : > { %v1396_v13 = vsel %vm6473_vm3, %v1268_v26, 0  ;;  %v2244_v39 = vsel %vm6924_vm0, %v1952_v60, 0  ;;  %v793_v26 = vadd.s32 64, %v6467_v1  ;;  %v2835_v60 = vshrl.u32 %v6799_v57, 16  ;;  %v1275_v7 = vld [vmem:[#allocation2 + $0x28] sm:$0xf] }
  0x7d   : > { %1428 = vst.msk [vmem:[#allocation3 + $0xc] sm:$0xf] %vm9578_vm10, %v1396_v13  ;;  %vm9581_vm10 = vmmov %vm9575_vm4  ;;  %v2324_v14 = vrot.slane %v2244_v39, 5  ;;  %v2327_v43 = vrot.slane %v2245_v9, 5  ;;  %v891_v13 = vand.u32 15, %v795_v53  ;;  %v2841_v5 = vshll.u32 %v2763_v52, 16 }
  0x7e   : > { %3669 = vrot.lane.b32.xlu1 %v3603_v54, %s6407_s14  ;;  %v1269_v54 = vld [vmem:[#allocation2 + $0x10] sm:$0xf]  ;;  %v877_v55 = vand.u32 15, %v793_v26  ;;  %v2845_v57 = vshrl.u32 %v2763_v52, 16  ;;  %v2837_v34 = vrot.slane %v2835_v60, 4  ;;  %v9593_v60 = vmov 0 }
  0x7f   : > { %3671 = vrot.lane.b32.xlu0 %v3604_v0, %s6407_s14  ;;  %v4387_v0 = vrot.slane %v4316_v42, 5  ;;  %v1397_v20 = vsel %vm6941_vm6, %v1269_v54, 0  ;;  %v2321_v42 = vrot.slane %v2243_v15, 5  ;;  %v2329_v15 = vrot.slane %v2327_v43, 4  ;;  %v1277_v52 = vld [vmem:[#allocation2 + $0x30] sm:$0xf] }
  0x80   : > { %1429 = vst.msk [vmem:[#allocation3 + $0x10] sm:$0xf] %vm9575_vm4, %v1397_v20  ;;  %v2764_v20 = vld [vmem:[#allocation2 + $0x20] sm:$0xf]  ;;  %v7033_v26 = vrot.slane %v2841_v5, 5 }
  0x81   : > { %v4389_v28 = vrot.slane %v4387_v0, 4  ;;  %v4388_v41 = vsel %vm6727_vm14, %v4386_v17, %v4387_v0  ;;  %v2323_v54 = vrot.slane %v2321_v42, 4  ;;  %v2322_v17 = vsel %vm6727_vm14, %v2320_v44, %v2321_v42  ;;  %v2537_v44 = vld [vmem:[#allocation2 + $0x18] sm:$0xf] }
  0x82   : > { %4151 = vrot.lane.b32.xlu1 %v3840_v21, %s6408_s15  ;;  %v1398_v21 = vsel %vm6473_vm3, %v1270_v59, 0  ;;  %v1404_v59 = vsel %vm6473_vm3, %v1276_v47, 0  ;;  %v2326_v0 = vrot.slane %v2324_v14, 4  ;;  %v2851_v42 = vshll.u32 %v2764_v20, 16 }
  0x83   : > { %4153 = vrot.lane.b32.xlu0 %v3850_v37, %s6408_s15  ;;  %1430 = vst.msk [vmem:[#allocation3 + $0x14] sm:$0xf] %vm9581_vm10, %v1398_v21  ;;  %v1274_v37 = vld [vmem:[#allocation2 + $0x24] sm:$0xf]  ;;  %vm9584_vm10 = vmmov %vm9575_vm4  ;;  %v4391_v51 = vsel %vm6727_vm14, %v4389_v28, %v6956_v2  ;;  %v2325_v27 = vsel %vm6727_vm14, %v2323_v54, %v2324_v14  ;;  %v1280_v14 = vld [vmem:[#allocation2 + $0x3c] sm:$0xf] }
  0x84   : > { %1432 = vst.msk [vmem:[#allocation3 + $0x1c] sm:$0xf] %vm9584_vm10, %v1400_v8  ;;  %vm9585_vm10 = vmmov %vm9575_vm4  ;;  %v2765_v28 = vld [vmem:[#allocation2 + $0x24] sm:$0xf]  ;;  %v2855_v8 = vshrl.u32 %v2764_v20, 16 }
  0x85   : > { %1436 = vst.msk [vmem:[#allocation3 + $0x2c] sm:$0xf] %vm9585_vm10, %v1404_v59  ;;  %vm1211_vm10 = vcmp.ne.s32.totalorder %v891_v13, 0  ;;  %v2538_v54 = vld [vmem:[#allocation2 + $0x1c] sm:$0xf]  ;;  %v2838_v59 = vor.u32 %v2837_v34, %v6819_v36 }
  0x86   : > { %4155 = vrot.lane.b32.xlu1 %v3860_v48, %s6408_s15  ;;  %v1402_v48 = vsel %vm6473_vm3, %v1274_v37, 0  ;;  %vm7017_vm15 = vmpackc.low %vm1211_vm10, %vm1211_vm10  ;;  %v797_v37 = vadd.s32 96, %v6467_v1  ;;  %v2539_v13 = vld [vmem:[#allocation2 + $0x20] sm:$0xf]  ;;  %v2570_v36 = vsel %vm6473_vm3, %v2538_v54, 0 }
  0x87   : > { %4157 = vrot.lane.b32.xlu0 %v3870_v49, %s6408_s15  ;;  %1434 = vst.msk [vmem:[#allocation3 + $0x24] sm:$0xf] %vm9575_vm4, %v1402_v48  ;;  %v2246_v49 = vsel %vm6978_vm13, %v1954_v31, 0  ;;  %vm1209_vm4 = vcmp.ne.s32.totalorder %v877_v55, 0  ;;  %v1403_v47 = vsel %vm7017_vm15, %v1275_v7, 0  ;;  %v2861_v48 = vshll.u32 %v2765_v28, 16 }
  0x88   : > { %v7007_v23 = vrot.slane %v2246_v49, 5  ;;  %vm7009_vm2 = vmpackc.low %vm1209_vm4, %vm1209_vm4  ;;  %vm9590_vm4 = vcmask 27648   ;;  %v905_v9 = vand.u32 15, %v797_v37  ;;  %v2847_v49 = vrot.slane %v2845_v57, 4  ;;  %v2540_v7 = vld [vmem:[#allocation2 + $0x24] sm:$0xf] }
  0x89   : > { %v1401_v39 = vsel %vm7009_vm2, %v1273_v45, 0  ;;  %vm9591_vm7 = vmmov %vm9590_vm4  ;;  %v799_v55 = vadd.s32 112, %v6467_v1  ;;  %v2569_v45 = vsel %vm6941_vm6, %v2537_v44, 0  ;;  %v801_v57 = vadd.s32 128, %v6467_v1  ;;  %v1281_v44 = vld [vmem:[#allocation2 + $0x40] sm:$0xf] }
  0x8a   : > { %4476 = vrot.lane.b32.xlu1 %v4382_v16, %s6409_s16  ;;  %v1278_v16 = vld [vmem:[#allocation2 + $0x34] sm:$0xf]  ;;  %1433 = vst.msk [vmem:[#allocation3 + $0x20] sm:$0xf] %vm9590_vm4, %v1401_v39  ;;  %vm9592_vm10 = vmmov %vm9590_vm4  ;;  %v2331_v53 = vsel %vm6727_vm14, %v2329_v15, %v7007_v23  ;;  %v1279_v15 = vld [vmem:[#allocation2 + $0x38] sm:$0xf] }
  0x8b   : > { %4478 = vrot.lane.b32.xlu0 %v4385_v32, %s6409_s16  ;;  %v1406_v32 = vsel %vm6473_vm3, %v1278_v16, 0  ;;  %1435 = vst.msk [vmem:[#allocation3 + $0x28] sm:$0xf] %vm9592_vm10, %v1403_v47  ;;  %v7049_v16 = vrot.slane %v2851_v42, 5  ;;  %v919_v5 = vand.u32 15, %v799_v55  ;;  %v7059_v20 = vrot.slane %v2861_v48, 5 }
  0x8c   : > { %1438 = vst.msk [vmem:[#allocation3 + $0x34] sm:$0xf] %vm9591_vm7, %v1406_v32  ;;  %vm1213_vm7 = vcmp.ne.s32.totalorder %v905_v9, 0  ;;  %v9596_v37 = vmov 0  ;;  %v933_v32 = vand.u32 15, %v801_v57  ;;  %v2571_v47 = vsel %vm6964_vm9, %v2539_v13, 0 }
  0x8d   : > { %vm7043_vm4 = vmpackc.low %vm1213_vm7, %vm1213_vm7  ;;  %vm1215_vm11 = vcmp.ne.s32.totalorder %v919_v5, 0  ;;  %v1266_v34 = vld [vmem:[#allocation2 + $0x4] sm:$0xf]  ;;  %v1267_v9 = vld [vmem:[#allocation2 + $0x8] sm:$0xf]  ;;  %v794_v57 = vadd.s32 72, %v6467_v1 }
  0x8e   : > { %4480 = vrot.lane.b32.xlu1 %v4388_v41, %s6409_s16  ;;  %v2328_v41 = vsel %vm6727_vm14, %v2326_v0, %v2327_v43  ;;  %v9594_v60 = vsel %vm7043_vm4, 4294967295, %v9593_v60  ;;  %v1408_v43 = vsel %vm6473_vm3, %v1280_v14, 0  ;;  %v1405_v0 = vsel %vm7043_vm4, %v1277_v52, 0  ;;  %vm9595_vm7 = vmmov %vm9592_vm10  ;;  %v3249_v48 = vld [vmem:[#allocation2 + $0x1c] sm:$0xf] }
  0x8f   : > { %4482 = vrot.lane.b32.xlu0 %v4391_v51, %s6409_s16  ;;  %v2865_v51 = vshrl.u32 %v2765_v28, 16  ;;  %1440 = vst.msk [vmem:[#allocation3 + $0x3c] sm:$0xf] %vm9592_vm10, %v1408_v43  ;;  %v7062_v28 = vld [vmem:[#allocation2 + $0x28] sm:$0xf]  ;;  %vm7065_vm10 = vmpackc.low %vm1215_vm11, %vm1215_vm11  ;;  %v2572_v14 = vsel %vm6473_vm3, %v2540_v7, 0 }
  0x90   : > { %1437 = vst.msk [vmem:[#allocation3 + $0x30] sm:$0xf] %vm9595_vm7, %v1405_v0  ;;  %v9597_v37 = vsel %vm7065_vm10, 4294967295, %v9596_v37  ;;  %vm9534_vm11 = vcmask 60448   ;;  %vm1217_vm4 = vcmp.ne.s32.totalorder %v933_v32, 0  ;;  %v1394_v55 = vsel %vm6473_vm3, %v1266_v34, 0 }
  0x91   : > { %v2867_v39 = vrot.slane %v2865_v51, 4  ;;  %v3250_v54 = vld [vmem:[#allocation2 + $0x20] sm:$0xf]  ;;  %vm7080_vm8 = vmpackc.low %vm1217_vm4, %vm1217_vm4  ;;  %1426 = vst.msk [vmem:[#allocation3 + $0x4] sm:$0xf] %vm9595_vm7, %v1394_v55  ;;  %v1395_v43 = vsel %vm6792_vm5, %v1267_v9, 0 }
  0x92   : > { %2412 = vrot.lane.b32.xlu1 %v2322_v17, %s6403_s10  ;;  %v2857_v17 = vrot.slane %v2855_v8, 4  ;;  %v1407_v8 = vsel %vm7065_vm10, %v1279_v15, 0  ;;  %vm9600_vm4 = vmmov %vm9595_vm7  ;;  %v3251_v5 = vld [vmem:[#allocation2 + $0x24] sm:$0xf]  ;;  %v3283_v58 = vsel %vm6924_vm0, %v3250_v54, 0 }
  0x93   : > { %2414 = vrot.lane.b32.xlu0 %v2325_v27, %s6403_s10  ;;  %v2848_v27 = vor.u32 %v2847_v49, %v7033_v26  ;;  %1439 = vst.msk [vmem:[#allocation3 + $0x38] sm:$0xf] %vm9595_vm7, %v1407_v8  ;;  %v2868_v52 = vor.u32 %v2867_v39, %v7059_v20  ;;  %v9598_v49 = vmov 0  ;;  %vm9601_vm10 = vmmov %vm9600_vm4  ;;  %v3252_v32 = vld [vmem:[#allocation2 + $0x28] sm:$0xf] }
  0x94   : > { %v2858_v42 = vor.u32 %v2857_v17, %v7049_v16  ;;  %v9599_v49 = vsel %vm7080_vm8, 4294967295, %v9598_v49  ;;  %1427 = vst.msk [vmem:[#allocation3 + $0x8] sm:$0xf] %vm9601_vm10, %v1395_v43  ;;  %v3285_v8 = vsel %vm6978_vm13, %v3252_v32, 0  ;;  %v3799_v9 = vld [vmem:[#allocation2 + $0x24] sm:$0xf] }
  0x95   : > { %v2849_v51 = vrot.slane %v2848_v27, 4  ;;  %v3356_v27 = vrot.slane %v6839_v63, 4  ;;  %v7131_v55 = vrot.slane %v3285_v8, 5 }
  0x96   : > { %2416 = vrot.lane.b32.xlu1 %v2328_v41, %s6403_s10  ;;  %v2839_v41 = vrot.slane %v2838_v59, 4  ;;  %v1409_v59 = vsel %vm7080_vm8, %v1281_v44, 0  ;;  %v2859_v17 = vrot.slane %v2858_v42, 4  ;;  %vm9602_vm8 = vcmp.ne.s16.totalorder %v6895_v29, 0 }
  0x97   : > { %2418 = vrot.lane.b32.xlu0 %v2331_v53, %s6403_s10  ;;  %v2871_v53 = vshll.u32 %v7062_v28, 16  ;;  %1441 = vst.msk [vmem:[#allocation3 + $0x40] sm:$0xf] %vm9600_vm4, %v1409_v59  ;;  %v3282_v0 = vsel %vm9602_vm8, %v3249_v48, 0  ;;  %vm9603_vm8 = vcmp.ne.s16.totalorder %v6922_v61, 0 }
  0x98   : > { %v2844_v13 = vsel %vm6580_vm12, %v2839_v41, %v7033_v26  ;;  %v2854_v26 = vsel %vm6580_vm12, %v2849_v51, %v7049_v16  ;;  %v2864_v44 = vsel %vm6580_vm12, %v2859_v17, %v7059_v20  ;;  %v3357_v34 = vrot.slane %v3282_v0, 5  ;;  %v3800_v59 = vld [vmem:[#allocation2 + $0x28] sm:$0xf] }
  0x99   : > { %v7106_v7 = vrot.slane %v2871_v53, 5  ;;  %v3284_v16 = vsel %vm9603_vm8, %v3251_v5, 0  ;;  %v884_v20 = vand.u32 15, %v794_v57  ;;  %v3871_v51 = vshrl.u32 %v6862_v50, 16 }
  0x9a   : > { %2637 = vrot.lane.b32.xlu1 %v2569_v45, %s6404_s11  ;;  %v3359_v41 = vrot.slane %v3357_v34, 4  ;;  %v3881_v17 = vshrl.u32 %v3799_v9, 16  ;;  %v796_v0 = vadd.s32 88, %v6467_v1  ;;  %v3887_v57 = vshll.u32 %v3800_v59, 16 }
  0x9b   : > { %2639 = vrot.lane.b32.xlu0 %v2570_v36, %s6404_s11  ;;  %v2869_v36 = vrot.slane %v2868_v52, 4  ;;  %v3358_v52 = vsel %vm6727_vm14, %v3356_v27, %v3357_v34  ;;  %vm7135_vm5 = vcmp.ne.s32.totalorder %v884_v20, 15  ;;  %v3891_v27 = vshrl.u32 %v3800_v59, 16 }
  0x9c   : > { %v1818_v45 = vpop.permute.xlu0 %1817  ;;  %vm2052_vm10 = vmpackc.low %vm7135_vm5, %vm7135_vm5  ;;  %vm4793_vm5 = vcmask 1041408  }
  0x9d   : > { %1914 = vst.msk [vmem:[#allocation3] sm:$0xf] %vm9534_vm11, %v1818_v45  ;;  %v2874_v63 = vsel %vm6580_vm12, %v2869_v36, %v7106_v7  ;;  %v3877_v45 = vshll.u32 %v3799_v9, 16  ;;  %v3573_v36 = vld [vmem:[#allocation2 + $0x20] sm:$0xf]  ;;  %v3889_v9 = vrot.slane %v3887_v57, 5 }
  0x9e   : > { %2641 = vrot.lane.b32.xlu1 %v2571_v47, %s6404_s11  ;;  %v3360_v47 = vrot.slane %v3283_v58, 5  ;;  %v3801_v58 = vld [vmem:[#allocation2 + $0x2c] sm:$0xf]  ;;  %v3893_v20 = vrot.slane %v3891_v27, 4 }
  0x9f   : > { %2643 = vrot.lane.b32.xlu0 %v2572_v14, %s6404_s11  ;;  %v3363_v14 = vrot.slane %v3284_v16, 5  ;;  %v3879_v32 = vrot.slane %v3877_v45, 5  ;;  %v3897_v16 = vshll.u32 %v3801_v58, 16  ;;  %v7166_v45 = vld [vmem:[#allocation2 + $0x30] sm:$0xf] }
  0xa0   : > { %v1824_v15 = vpop.permute.xlu1 %1823  ;;  %v1826_v39 = vpop.permute.xlu0 %1825  ;;  %v3362_v53 = vrot.slane %v3360_v47, 4  ;;  %v3361_v43 = vsel %vm6727_vm14, %v3359_v41, %v3360_v47  ;;  %v3901_v47 = vshrl.u32 %v3801_v58, 16  ;;  %v898_v41 = vand.u32 15, %v796_v0  ;;  %v4285_v0 = vld [vmem:[#allocation2 + $0x24] sm:$0xf] }
  0xa1   : > { %1917 = vst.msk [vmem:[#allocation3 + $0xc] sm:$0xf] %vm9534_vm11, %v1824_v15  ;;  %1918 = vst.msk [vmem:[#allocation3 + $0x10] sm:$0xf] %vm9534_vm11, %v1826_v39  ;;  %v3365_v54 = vrot.slane %v3363_v14, 4  ;;  %v3873_v15 = vrot.slane %v3871_v51, 4 }
  0xa2   : > { %3123 = vrot.lane.b32.xlu1 %v2844_v13, %s6405_s12  ;;  %vm7161_vm7 = vcmp.ne.s32.totalorder %v898_v41, 15  ;;  %v3907_v18 = vshll.u32 %v7166_v45, 16  ;;  %v4287_v41 = vld [vmem:[#allocation2 + $0x2c] sm:$0xf] }
  0xa3   : > { %3125 = vrot.lane.b32.xlu0 %v2854_v26, %s6405_s12  ;;  %v3364_v26 = vsel %vm6727_vm14, %v3362_v53, %v3363_v14  ;;  %v3367_v39 = vsel %vm6727_vm14, %v3365_v54, %v7131_v55  ;;  %v3874_v8 = vor.u32 %v3873_v15, %v6888_v33  ;;  %v2084_v14 = vsel %vm2052_vm10, 65537, %v6401_v4  ;;  %v3576_v33 = vld [vmem:[#allocation2 + $0x2c] sm:$0xf] }
  0xa4   : > { %v1828_v42 = vpop.permute.xlu1 %1827  ;;  %v1830_v48 = vpop.permute.xlu0 %1829  ;;  %v3903_v54 = vrot.slane %v3901_v47, 4  ;;  %v2136_v59 = vrot.slane %v2084_v14, 7 }
  0xa5   : > { %1919 = vst.msk [vmem:[#allocation3 + $0x14] sm:$0xf] %vm9534_vm11, %v1828_v42  ;;  %1920 = vst.msk [vmem:[#allocation3 + $0x18] sm:$0xf] %vm9534_vm11, %v1830_v48  ;;  %v3605_v42 = vsel %vm6941_vm6, %v3573_v36, 0 }
  0xa6   : > { %3127 = vrot.lane.b32.xlu1 %v2864_v44, %s6405_s12  ;;  %v3574_v44 = vld [vmem:[#allocation2 + $0x24] sm:$0xf]  ;;  %v3575_v48 = vld [vmem:[#allocation2 + $0x28] sm:$0xf]  ;;  %vm2054_vm6 = vmpackc.low %vm7161_vm7, %vm7161_vm7  ;;  %v2138_v15 = vrot.slane %v2136_v59, 4  ;;  %vm9541_vm7 = vcmask 93248  }
  0xa7   : > { %3129 = vrot.lane.b32.xlu0 %v2874_v63, %s6405_s12  ;;  %v3883_v63 = vrot.slane %v3881_v17, 4  ;;  %v3606_v51 = vsel %vm6473_vm3, %v3574_v44, 0  ;;  %v3894_v17 = vor.u32 %v3893_v20, %v3889_v9  ;;  %v4286_v36 = vld [vmem:[#allocation2 + $0x28] sm:$0xf]  ;;  %v2086_v44 = vsel %vm2054_vm6, 65537, %v6401_v4 }
  0xa8   : > { %v1832_v13 = vpop.permute.xlu1 %1831  ;;  %v2140_v62 = vsel %vm6659_vm1, %v2138_v15, %v6503_v19  ;;  %v4392_v20 = vrot.slane %v6956_v2, 4  ;;  %vm9535_vm6 = vcmask 126048  }
  0xa9   : > { %1921 = vst.msk [vmem:[#allocation3 + $0x1c] sm:$0xf] %vm9534_vm11, %v1832_v13  ;;  %v1834_v5 = vpop.permute.xlu0 %1833  ;;  %v3884_v53 = vor.u32 %v3883_v63, %v3879_v32  ;;  %v3875_v13 = vrot.slane %v3874_v8, 4  ;;  %v3895_v27 = vrot.slane %v3894_v17, 4  ;;  %v7189_v63 = vrot.slane %v3907_v18, 5 }
  0xaa   : > { %3448 = vrot.lane.b32.xlu1 %v3358_v52, %s6406_s13  ;;  %1922 = vst.msk [vmem:[#allocation3 + $0x20] sm:$0xf] %vm9534_vm11, %v1834_v5  ;;  %v3899_v52 = vrot.slane %v3897_v16, 5  ;;  %v3608_v5 = vsel %vm6473_vm3, %v3576_v33, 0  ;;  %v2142_v8 = vrot.slane %v2086_v44, 7  ;;  %v2332_v44 = vrot.slane %v7007_v23, 4 }
  0xab   : > { %3450 = vrot.lane.b32.xlu0 %v3361_v43, %s6406_s13  ;;  %v3607_v43 = vsel %vm6964_vm9, %v3575_v48, 0  ;;  %v3885_v58 = vrot.slane %v3884_v53, 4  ;;  %v3880_v57 = vsel %vm6580_vm12, %v3875_v13, %v3879_v32  ;;  %vm9608_vm9 = vcmp.ne.s16.totalorder %v6895_v29, 0  ;;  %v4288_v48 = vld [vmem:[#allocation2 + $0x30] sm:$0xf] }
  0xac   : > { %v1836_v34 = vpop.permute.xlu1 %1835  ;;  %v7195_v29 = vsel %vm6659_vm1, %v6650_v22, %v2136_v59  ;;  %v1955_v33 = vld [vmem:[#allocation2 + $0x24] sm:$0xf]  ;;  %v1956_v59 = vld [vmem:[#allocation2 + $0x28] sm:$0xf]  ;;  %v4321_v61 = vsel %vm6978_vm13, %v4288_v48, 0  ;;  %v2875_v48 = vshrl.u32 %v7062_v28, 16 }
  0xad   : > { %1923 = vst.msk [vmem:[#allocation3 + $0x24] sm:$0xf] %vm9534_vm11, %v1836_v34  ;;  %v4319_v34 = vsel %vm6924_vm0, %v4286_v36, 0  ;;  %v3890_v16 = vsel %vm6580_vm12, %v3885_v58, %v3889_v9  ;;  %v3900_v9 = vsel %vm6580_vm12, %v3895_v27, %v3899_v52  ;;  %vm9609_vm0 = vmmov %vm9603_vm8  ;;  %vm2214_vm4 = vcmp.ne.s16.totalorder %v7195_v29, 0  ;;  %v6341_v36 = vld [vmem:[%s9514_s2 + $0x8] sm:$0xff]  }
  0xae   : > { %3452 = vrot.lane.b32.xlu1 %v3364_v26, %s6406_s13  ;;  %v3904_v26 = vor.u32 %v3903_v54, %v3899_v52  ;;  %v4396_v14 = vrot.slane %v4319_v34, 5  ;;  %v2144_v54 = vrot.slane %v2142_v8, 4  ;;  %vm7211_vm8 = vcmp.ne.s16.totalorder %v2140_v62, 0  ;;  %v6340_v13 = vld [vmem:[%s9514_s2 + $0x10] ss:$0 sps:$4 sm:$0x33]  }
  0xaf   : > { %3454 = vrot.lane.b32.xlu0 %v3367_v39, %s6406_s13  ;;  %v4318_v39 = vsel %vm9608_vm9, %v4285_v0, 0  ;;  %v2247_v58 = vsel %vm2214_vm4, %v1955_v33, 0  ;;  %v1957_v27 = vld [vmem:[#allocation2 + $0x2c] sm:$0xf]  ;;  %6301 = vmatprep.subr.msk.bf16.mxu0 %vm4793_vm5, %v6340_v13  ;;  %v4795_v34 = vsel %vm4793_vm5, %v6340_v13, 0  ;;  %vm9540_vm9 = vcmask 158848  }
  0xb0   : > { %v3905_v47 = vrot.slane %v3904_v26, 4  ;;  %v2248_v26 = vsel %vm7211_vm8, %v1956_v59, 0  ;;  %v2146_v18 = vsel %vm6659_vm1, %v2144_v54, %v6503_v19  ;;  %6230 = vmatpush3.bf16.msra.mxu0 %v4795_v34  ;;  %v2768_v59 = vld [vmem:[#allocation2 + $0x30] sm:$0xf]  ;;  %vm9615_vm5 = vcmask 27648  }
  0xb1   : > { %vm7251_vm10 = vcmp.ne.s16.totalorder %v2146_v18, 0  ;;  %6231 = vmatprep.subr.bf16.mxu0 %v6341_v36 }
  0xb2   : > { %3673 = vrot.lane.b32.xlu1 %v3605_v42, %s6407_s14  ;;  %v1838_v50 = vpop.permute.xlu0 %1837  ;;  %v4393_v42 = vrot.slane %v4318_v39, 5  ;;  %v3910_v6 = vsel %vm6580_vm12, %v3905_v47, %v7189_v63  ;;  %v2333_v47 = vrot.slane %v2247_v58, 5  ;;  %v2891_v58 = vshll.u32 %v2768_v59, 16 }
  0xb3   : > { %3675 = vrot.lane.b32.xlu0 %v3606_v51, %s6407_s14  ;;  %1924 = vst.msk [vmem:[#allocation3 + $0x28] sm:$0xf] %vm9534_vm11, %v1838_v50  ;;  %v4320_v51 = vsel %vm9609_vm0, %v4287_v41, 0  ;;  %v4398_v50 = vrot.slane %v4396_v14, 4  ;;  %v2336_v41 = vrot.slane %v2248_v26, 5  ;;  %v2895_v26 = vshrl.u32 %v2768_v59, 16 }
  0xb4   : > { %v4395_v53 = vrot.slane %v4393_v42, 4  ;;  %v4394_v17 = vsel %vm6727_vm14, %v4392_v20, %v4393_v42  ;;  %v4399_v0 = vrot.slane %v4320_v51, 5  ;;  %v2335_v20 = vrot.slane %v2333_v47, 4  ;;  %6232 = vmatpush3.bf16.msra.mxu0 %v6341_v36 }
  0xb5   : > { %v2334_v54 = vsel %vm6727_vm14, %v2332_v44, %v2333_v47  ;;  %v2542_v47 = vld [vmem:[#allocation2 + $0x2c] sm:$0xf]  ;;  %vm9614_vm0 = vnez %v9547_v35 }
  0xb6   : > { %3677 = vrot.lane.b32.xlu1 %v3607_v43, %s6407_s14  ;;  %v7221_v43 = vsel %vm6659_vm1, %v6650_v22, %v2142_v8  ;;  %v4397_v40 = vsel %vm6727_vm14, %v4395_v53, %v4396_v14  ;;  %v4401_v15 = vrot.slane %v4399_v0, 4  ;;  %v6342_v8 = vld [vmem:[%s9514_s2] sm:$0xff]   ;;  %v2767_v14 = vld [vmem:[#allocation2 + $0x2c] sm:$0xf]  ;;  %v2337_v13 = vsel %vm6727_vm14, %v2335_v20, %v2336_v41 }
  0xb7   : > { %3679 = vrot.lane.b32.xlu0 %v3608_v5, %s6407_s14  ;;  %vm2216_vm13 = vcmp.ne.s16.totalorder %v7221_v43, 0  ;;  %v2881_v28 = vshll.u32 %v2767_v14, 16  ;;  %6233 = vmatprep.subr.bf16.mxu0 %v6342_v8 }
  0xb8   : > { %v2249_v23 = vsel %vm2216_vm13, %v1957_v27, 0  ;;  %6234 = vmatpush3.bf16.msra.mxu0 %v6342_v8  ;;  %v382_v8 = vld [vmem:[%s6491_s8 + $0x40] sm:$0xf] }
  0xb9   : > { %v1840_v32 = vpop.permute.xlu1 %1839  ;;  %v2339_v33 = vrot.slane %v2249_v23, 5  ;;  %v7282_v27 = vrot.slane %v2881_v28, 5  ;;  %v2897_v23 = vrot.slane %v2895_v26, 4  ;;  %v2544_v28 = vld [vmem:[#allocation2 + $0x34] sm:$0xf] }
  0xba   : > { %4159 = vrot.lane.b32.xlu1 %v3880_v57, %s6408_s15  ;;  %1925 = vst.msk [vmem:[#allocation3 + $0x2c] sm:$0xf] %vm9534_vm11, %v1840_v32  ;;  %v7243_v57 = vrot.slane %v4321_v61, 5  ;;  %v1958_v32 = vld [vmem:[#allocation2 + $0x30] sm:$0xf]  ;;  %v2885_v61 = vshrl.u32 %v2767_v14, 16 }
  0xbb   : > { %4161 = vrot.lane.b32.xlu0 %v3890_v16, %s6408_s15  ;;  %v4400_v16 = vsel %vm6727_vm14, %v4398_v50, %v4399_v0  ;;  %v2250_v53 = vsel %vm7251_vm10, %v1958_v32, 0  ;;  %v2769_v0 = vld [vmem:[#allocation2 + $0x34] sm:$0xf]  ;;  %v2543_v14 = vld [vmem:[#allocation2 + $0x30] sm:$0xf] }
  0xbc   : > { %v7276_v50 = vrot.slane %v2250_v53, 5  ;;  %v2905_v44 = vshrl.u32 %v2769_v0, 16  ;;  %v2887_v34 = vrot.slane %v2885_v61, 4  ;;  %v2574_v53 = vsel %vm6473_vm3, %v2542_v47, 0 }
  0xbd   : > { %v1842_v2 = vpop.permute.xlu0 %1841 }
  0xbe   : > { %4163 = vrot.lane.b32.xlu1 %v3900_v9, %s6408_s15  ;;  %1926 = vst.msk [vmem:[#allocation3 + $0x30] sm:$0xf] %vm9534_vm11, %v1842_v2  ;;  %v4403_v9 = vsel %vm6727_vm14, %v4401_v15, %v7243_v57  ;;  %v2541_v15 = vld [vmem:[#allocation2 + $0x28] sm:$0xf] }
  0xbf   : > { %4165 = vrot.lane.b32.xlu0 %v3910_v6, %s6408_s15  ;;  %v2338_v6 = vrot.slane %v2336_v41, 4 }
  0xc0   : > { %v1844_v5 = vpop.permute.xlu1 %1843 }
  0xc1   : > { %1927 = vst.msk [vmem:[#allocation3 + $0x34] sm:$0xf] %vm9534_vm11, %v1844_v5  ;;  %v1846_v39 = vpop.permute.xlu0 %1845  ;;  %v2340_v18 = vsel %vm6727_vm14, %v2338_v6, %v2339_v33  ;;  %v542_v6 = vshrl.u32 %v382_v8, 16 }
  0xc2   : > { %4484 = vrot.lane.b32.xlu1 %v4394_v17, %s6409_s16  ;;  %1928 = vst.msk [vmem:[#allocation3 + $0x38] sm:$0xf] %vm9534_vm11, %v1846_v39  ;;  %v2341_v17 = vrot.slane %v2339_v33, 4  ;;  %v2901_v39 = vshll.u32 %v2769_v0, 16  ;;  %v545_v33 = vshll.u32 %v382_v8, 16  ;;  %v540_v0 = vrot.slane %v6639_v10, 4 }
  0xc3   : > { %4486 = vrot.lane.b32.xlu0 %v4397_v40, %s6409_s16  ;;  %v2877_v40 = vrot.slane %v2875_v48, 4 }
  0xc4   : > { %v1848_v62 = vpop.permute.xlu1 %1847  ;;  %v7297_v48 = vrot.slane %v2901_v39, 5  ;;  %v383_v39 = vld [vmem:[%s6491_s8 + $0x44] sm:$0xf] }
  0xc5   : > { %1929 = vst.msk [vmem:[#allocation3 + $0x3c] sm:$0xf] %vm9534_vm11, %v1848_v62  ;;  %v1850_v51 = vpop.permute.xlu0 %1849  ;;  %v2878_v32 = vor.u32 %v2877_v40, %v7106_v7  ;;  %v7289_v62 = vrot.slane %v2891_v58, 5  ;;  %v2907_v7 = vrot.slane %v2905_v44, 4  ;;  %v2576_v44 = vsel %vm6473_vm3, %v2544_v28, 0 }
  0xc6   : > { %4488 = vrot.lane.b32.xlu1 %v4400_v16, %s6409_s16  ;;  %1930 = vst.msk [vmem:[#allocation3 + $0x40] sm:$0xf] %vm9534_vm11, %v1850_v51  ;;  %v2343_v16 = vsel %vm6727_vm14, %v2341_v17, %v7276_v50  ;;  %v2888_v51 = vor.u32 %v2887_v34, %v7282_v27  ;;  %v3253_v17 = vld [vmem:[#allocation2 + $0x2c] sm:$0xf] }
  0xc7   : > { %4490 = vrot.lane.b32.xlu0 %v4403_v9, %s6409_s16  ;;  %v2573_v9 = vsel %vm7009_vm2, %v2541_v15, 0  ;;  %v2898_v61 = vor.u32 %v2897_v23, %v7289_v62  ;;  %v2908_v26 = vor.u32 %v2907_v7, %v7297_v48  ;;  %v3254_v15 = vld [vmem:[#allocation2 + $0x30] sm:$0xf]  ;;  %v3255_v23 = vld [vmem:[#allocation2 + $0x34] sm:$0xf] }
  0xc8   : > { %v2405_v2 = vpop.permute.xlu1 %2404  ;;  %v2889_v58 = vrot.slane %v2888_v51, 4  ;;  %v3287_v8 = vsel %vm7211_vm8, %v3254_v15, 0 }
  0xc9   : > { %2501 = vst.msk [vmem:[#allocation3] sm:$0xf] %vm9541_vm7, %v2405_v2  ;;  %v2407_v5 = vpop.permute.xlu0 %2406  ;;  %v2879_v2 = vrot.slane %v2878_v32, 4  ;;  %v2899_v47 = vrot.slane %v2898_v61, 4  ;;  %v384_v32 = vld [vmem:[%s6491_s8 + $0x48] sm:$0xf] }
  0xca   : > { %2420 = vrot.lane.b32.xlu1 %v2334_v54, %s6403_s10  ;;  %v7303_v54 = vld [vmem:[#allocation2 + $0x38] sm:$0xf]  ;;  %v2909_v51 = vrot.slane %v2908_v26, 4  ;;  %v563_v28 = vshll.u32 %v384_v32, 16 }
  0xcb   : > { %2422 = vrot.lane.b32.xlu0 %v2337_v13, %s6403_s10  ;;  %v2575_v13 = vsel %vm7017_vm15, %v2543_v14, 0 }
  0xcc   : > { %v2409_v36 = vpop.permute.xlu1 %2408 }
  0xcd   : > { %v1820_v41 = vpop.permute.xlu0 %1819 }
  0xce   : > { %2424 = vrot.lane.b32.xlu1 %v2340_v18, %s6403_s10  ;;  %1915 = vst.msk [vmem:[#allocation3 + $0x4] sm:$0xf] %vm9534_vm11, %v1820_v41  ;;  %v2911_v18 = vshll.u32 %v7303_v54, 16  ;;  %v3286_v41 = vsel %vm2214_vm4, %v3253_v17, 0 }
  0xcf   : > { %2502 = vst.msk [vmem:[#allocation3 + $0x4] sm:$0xf] %vm9541_vm7, %v2407_v5  ;;  %2426 = vrot.lane.b32.xlu0 %v2343_v16, %s6403_s10  ;;  %v544_v5 = vrot.slane %v542_v6, 7  ;;  %v2884_v16 = vsel %vm6580_vm12, %v2879_v2, %v7282_v27  ;;  %v2894_v27 = vsel %vm6580_vm12, %v2889_v58, %v7289_v62  ;;  %v3256_v6 = vld [vmem:[#allocation2 + $0x38] sm:$0xf]  ;;  %v560_v2 = vshrl.u32 %v384_v32, 16 }
  0xd0   : > { %v2630_v20 = vpop.permute.xlu1 %2629  ;;  %v7335_v7 = vrot.slane %v2911_v18, 5  ;;  %v2904_v62 = vsel %vm6580_vm12, %v2899_v47, %v7297_v48  ;;  %v3369_v17 = vrot.slane %v3286_v41, 5  ;;  %v3289_v48 = vsel %vm7251_vm10, %v3256_v6, 0 }
  0xd1   : > { %2726 = vst.msk [vmem:[#allocation3] sm:$0xf] %vm9535_vm6, %v2630_v20  ;;  %v2411_v59 = vpop.permute.xlu0 %2410  ;;  %v547_v34 = vor.u32 %v545_v33, %v544_v5  ;;  %v554_v20 = vshll.u32 %v383_v39, 16  ;;  %v549_v33 = vrot.slane %v544_v5, 4  ;;  %v7348_v26 = vrot.slane %v560_v2, 7 }
  0xd2   : > { %2645 = vrot.lane.b32.xlu1 %v2573_v9, %s6404_s11  ;;  %2504 = vst.msk [vmem:[#allocation3 + $0xc] sm:$0xf] %vm9541_vm7, %v2411_v59  ;;  %v551_v9 = vshrl.u32 %v383_v39, 16  ;;  %v3371_v15 = vrot.slane %v3369_v17, 4  ;;  %v3803_v39 = vld [vmem:[#allocation2 + $0x34] sm:$0xf] }
  0xd3   : > { %2647 = vrot.lane.b32.xlu0 %v2574_v53, %s6404_s11  ;;  %v798_v53 = vadd.s32 104, %v6467_v1  ;;  %v3911_v41 = vshrl.u32 %v7166_v45, 16  ;;  %v800_v6 = vadd.s32 120, %v6467_v1  ;;  %v3805_v2 = vld [vmem:[#allocation2 + $0x3c] sm:$0xf] }
  0xd4   : > { %v1822_v40 = vpop.permute.xlu1 %1821  ;;  %v553_v59 = vrot.slane %v551_v9, 7 }
  0xd5   : > { %1916 = vst.msk [vmem:[#allocation3 + $0x8] sm:$0xf] %vm9534_vm11, %v1822_v40  ;;  %v2632_v10 = vpop.permute.xlu0 %2631  ;;  %v3372_v40 = vrot.slane %v3287_v8, 5 }
  0xd6   : > { %2503 = vst.msk [vmem:[#allocation3 + $0x8] sm:$0xf] %vm9541_vm7, %v2409_v36  ;;  %2649 = vrot.lane.b32.xlu1 %v2575_v13, %s6404_s11  ;;  %v548_v36 = vsel %vm9614_vm0, %v540_v0, %v547_v34  ;;  %v3368_v13 = vrot.slane %v7131_v55, 4  ;;  %v3288_v0 = vsel %vm2216_vm13, %v3255_v23, 0  ;;  %v556_v5 = vor.u32 %v554_v20, %v553_v59 }
  0xd7   : > { %2727 = vst.msk [vmem:[#allocation3 + $0x4] sm:$0xf] %vm9535_vm6, %v2632_v10  ;;  %2651 = vrot.lane.b32.xlu0 %v2576_v44, %s6404_s11  ;;  %v558_v58 = vrot.slane %v553_v59, 4  ;;  %v2914_v55 = vsel %vm6580_vm12, %v2909_v51, %v7335_v7  ;;  %v912_v44 = vand.u32 15, %v798_v53  ;;  %v565_v10 = vor.u32 %v563_v28, %v7348_v26  ;;  %v7417_v53 = vld [vmem:[#allocation2 + $0x40] sm:$0xf] }
  0xd8   : > { %v2634_v14 = vpop.permute.xlu1 %2633  ;;  %736 = vst.msk [vmem:[#allocation2 + $0x48] sm:$0xf] %vm9615_vm5, %v548_v36  ;;  %v557_v34 = vsel %vm9614_vm0, %v549_v33, %v556_v5  ;;  %v3375_v47 = vrot.slane %v3288_v0, 5  ;;  %v3370_v32 = vsel %vm6727_vm14, %v3368_v13, %v3369_v17  ;;  %v3374_v23 = vrot.slane %v3372_v40, 4  ;;  %v385_v33 = vld [vmem:[%s6491_s8 + $0x4c] sm:$0xf] }
  0xd9   : > { %2728 = vst.msk [vmem:[#allocation3 + $0x8] sm:$0xf] %vm9535_vm6, %v2634_v14  ;;  %v2636_v61 = vpop.permute.xlu0 %2635  ;;  %v566_v8 = vsel %vm9614_vm0, %v558_v58, %v565_v10  ;;  %v7369_v20 = vrot.slane %v3289_v48, 5  ;;  %v3917_v14 = vshll.u32 %v3803_v39, 16  ;;  %v3373_v45 = vsel %vm6727_vm14, %v3371_v15, %v3372_v40 }
  0xda   : > { %3131 = vrot.lane.b32.xlu1 %v2884_v16, %s6405_s12  ;;  %2729 = vst.msk [vmem:[#allocation3 + $0xc] sm:$0xf] %vm9535_vm6, %v2636_v61  ;;  %v3377_v9 = vrot.slane %v3375_v47, 4  ;;  %v3921_v51 = vshrl.u32 %v3803_v39, 16  ;;  %vm7375_vm11 = vcmp.ne.s32.totalorder %v912_v44, 15  ;;  %vm9539_vm6 = vcmask 191648  }
  0xdb   : > { %3133 = vrot.lane.b32.xlu0 %v2894_v27, %s6405_s12  ;;  %737 = vst.msk [vmem:[#allocation2 + $0x4c] sm:$0xf] %vm9615_vm5, %v557_v34  ;;  %v3804_v27 = vld [vmem:[#allocation2 + $0x38] sm:$0xf]  ;;  %738 = vst.msk [vmem:[#allocation2 + $0x50] sm:$0xf] %vm9615_vm5, %v566_v8  ;;  %v3376_v28 = vsel %vm6727_vm14, %v3374_v23, %v3375_v47 }
  0xdc   : > { %v3116_v18 = vpop.permute.xlu1 %3115  ;;  %v3577_v61 = vld [vmem:[#allocation2 + $0x30] sm:$0xf]  ;;  %v3927_v13 = vshll.u32 %v3804_v27, 16  ;;  %v3931_v17 = vshrl.u32 %v3804_v27, 16  ;;  %v3379_v40 = vsel %vm6727_vm14, %v3377_v9, %v7369_v20  ;;  %v7389_v5 = vrot.slane %v3917_v14, 5  ;;  %vm2056_vm5 = vmpackc.low %vm7375_vm11, %vm7375_vm11 }
  0xdd   : > { %3212 = vst.msk [vmem:[#allocation3] sm:$0xf] %vm9540_vm9, %v3116_v18  ;;  %v3118_v16 = vpop.permute.xlu0 %3117  ;;  %v569_v58 = vshrl.u32 %v385_v33, 16  ;;  %v3578_v18 = vld [vmem:[#allocation2 + $0x34] sm:$0xf]  ;;  %v3937_v15 = vshll.u32 %v3805_v2, 16 }
  0xde   : > { %3135 = vrot.lane.b32.xlu1 %v2904_v62, %s6405_s12  ;;  %3213 = vst.msk [vmem:[#allocation3 + $0x4] sm:$0xf] %vm9540_vm9, %v3118_v16  ;;  %v3913_v62 = vrot.slane %v3911_v41, 4  ;;  %v3941_v48 = vshrl.u32 %v3805_v2, 16  ;;  %v926_v39 = vand.u32 15, %v800_v6  ;;  %v3609_v34 = vsel %vm7009_vm2, %v3577_v61, 0 }
  0xdf   : > { %3137 = vrot.lane.b32.xlu0 %v2914_v55, %s6405_s12  ;;  %v3923_v55 = vrot.slane %v3921_v51, 4  ;;  %v7400_v16 = vrot.slane %v3927_v13, 5  ;;  %v3933_v47 = vrot.slane %v3931_v17, 4  ;;  %v2088_v41 = vsel %vm2056_vm5, 65537, %v6401_v4  ;;  %v3579_v23 = vld [vmem:[#allocation2 + $0x38] sm:$0xf] }
  0xe0   : > { %v3120_v36 = vpop.permute.xlu1 %3119  ;;  %v3914_v10 = vor.u32 %v3913_v62, %v7189_v63  ;;  %v3610_v8 = vsel %vm6473_vm3, %v3578_v18, 0  ;;  %v572_v21 = vshll.u32 %v385_v33, 16  ;;  %v7409_v9 = vrot.slane %v3937_v15, 5  ;;  %v3580_v51 = vld [vmem:[#allocation2 + $0x3c] sm:$0xf] }
  0xe1   : > { %3214 = vst.msk [vmem:[#allocation3 + $0x8] sm:$0xf] %vm9540_vm9, %v3120_v36  ;;  %v3122_v59 = vpop.permute.xlu0 %3121  ;;  %v7406_v36 = vrot.slane %v569_v58, 7  ;;  %v3924_v63 = vor.u32 %v3923_v55, %v7389_v5  ;;  %v3943_v14 = vrot.slane %v3941_v48, 4  ;;  %vm7412_vm2 = vcmp.ne.s32.totalorder %v926_v39, 15 }
  0xe2   : > { %3456 = vrot.lane.b32.xlu1 %v3370_v32, %s6406_s13  ;;  %3215 = vst.msk [vmem:[#allocation3 + $0xc] sm:$0xf] %vm9540_vm9, %v3122_v59  ;;  %vm9538_vm11 = vcmask 224448   ;;  %v2148_v6 = vrot.slane %v2088_v41, 7  ;;  %v3611_v33 = vsel %vm7017_vm15, %v3579_v23, 0  ;;  %v3915_v59 = vrot.slane %v3914_v10, 4  ;;  %vm2058_vm5 = vmpackc.low %vm7412_vm2, %vm7412_vm2 }
  0xe3   : > { %3458 = vrot.lane.b32.xlu0 %v3373_v45, %s6406_s13  ;;  %v3934_v2 = vor.u32 %v3933_v47, %v7400_v16  ;;  %v4289_v61 = vld [vmem:[#allocation2 + $0x34] sm:$0xf]  ;;  %v567_v62 = vrot.slane %v7348_v26, 4  ;;  %v574_v13 = vor.u32 %v572_v21, %v7406_v36  ;;  %v3612_v31 = vsel %vm6473_vm3, %v3580_v51, 0  ;;  %v4290_v58 = vld [vmem:[#allocation2 + $0x38] sm:$0xf] }
  0xe4   : > { %v3441_v0 = vpop.permute.xlu1 %3440  ;;  %v3925_v17 = vrot.slane %v3924_v63, 4  ;;  %v2150_v15 = vrot.slane %v2148_v6, 4  ;;  %v3920_v26 = vsel %vm6580_vm12, %v3915_v59, %v7389_v5  ;;  %v2090_v55 = vsel %vm2058_vm5, 65537, %v6401_v4  ;;  %v4292_v27 = vld [vmem:[#allocation2 + $0x40] sm:$0xf] }
  0xe5   : > { %3537 = vst.msk [vmem:[#allocation3] sm:$0xf] %vm9539_vm6, %v3441_v0  ;;  %v3443_v44 = vpop.permute.xlu0 %3442  ;;  %v3944_v0 = vor.u32 %v3943_v14, %v7409_v9  ;;  %v3935_v48 = vrot.slane %v3934_v2, 4  ;;  %v575_v10 = vsel %vm9614_vm0, %v567_v62, %v574_v13  ;;  %vm9620_vm15 = vcmask 27648  }
  0xe6   : > { %3460 = vrot.lane.b32.xlu1 %v3376_v28, %s6406_s13  ;;  %3538 = vst.msk [vmem:[#allocation3 + $0x4] sm:$0xf] %vm9539_vm6, %v3443_v44  ;;  %v4322_v44 = vsel %vm2214_vm4, %v4289_v61, 0  ;;  %v3930_v5 = vsel %vm6580_vm12, %v3925_v17, %v7400_v16  ;;  %vm9536_vm4 = vcmask 257248   ;;  %v7458_v52 = vsel %vm6659_vm1, %v6650_v22, %v2148_v6  ;;  %v1959_v6 = vld [vmem:[#allocation2 + $0x34] sm:$0xf] }
  0xe7   : > { %3462 = vrot.lane.b32.xlu0 %v3379_v40, %s6406_s13  ;;  %v3947_v40 = vshll.u32 %v7417_v53, 16  ;;  %v3945_v47 = vrot.slane %v3944_v0, 4  ;;  %739 = vst.msk [vmem:[#allocation2 + $0x54] sm:$0xf] %vm9620_vm15, %v575_v10  ;;  %v2152_v23 = vsel %vm6659_vm1, %v2150_v15, %v6503_v19  ;;  %v2154_v16 = vrot.slane %v2090_v55, 7 }
  0xe8   : > { %v3445_v32 = vpop.permute.xlu1 %3444  ;;  %v4404_v21 = vrot.slane %v7243_v57, 4  ;;  %v4405_v63 = vrot.slane %v4322_v44, 5  ;;  %v1960_v57 = vld [vmem:[#allocation2 + $0x38] sm:$0xf]  ;;  %vm7476_vm2 = vcmp.ne.s16.totalorder %v2152_v23, 0  ;;  %vm9629_vm9 = vcmask 126048  }
  0xe9   : > { %3539 = vst.msk [vmem:[#allocation3 + $0x8] sm:$0xf] %vm9539_vm6, %v3445_v32  ;;  %v3447_v45 = vpop.permute.xlu0 %3446  ;;  %v7451_v41 = vrot.slane %v3947_v40, 5  ;;  %v4291_v32 = vld [vmem:[#allocation2 + $0x3c] sm:$0xf]  ;;  %v7486_v61 = vsel %vm6659_vm1, %v6650_v22, %v2154_v16  ;;  %v2252_v40 = vsel %vm7476_vm2, %v1960_v57, 0 }
  0xea   : > { %3681 = vrot.lane.b32.xlu1 %v3609_v34, %s6407_s14  ;;  %3540 = vst.msk [vmem:[#allocation3 + $0xc] sm:$0xf] %vm9539_vm6, %v3447_v45  ;;  %v4323_v34 = vsel %vm7211_vm8, %v4290_v58, 0  ;;  %v4324_v51 = vsel %vm2216_vm13, %v4291_v32, 0  ;;  %v4407_v59 = vrot.slane %v4405_v63, 4  ;;  %vm2218_vm8 = vcmp.ne.s16.totalorder %v7458_v52, 0 }
  0xeb   : > { %3683 = vrot.lane.b32.xlu0 %v3610_v8, %s6407_s14  ;;  %v3940_v8 = vsel %vm6580_vm12, %v3935_v48, %v7409_v9  ;;  %v4408_v14 = vrot.slane %v4323_v34, 5  ;;  %v3950_v9 = vsel %vm6580_vm12, %v3945_v47, %v7451_v41  ;;  %v4406_v62 = vsel %vm6727_vm14, %v4404_v21, %v4405_v63  ;;  %v386_v17 = vld [vmem:[%s6491_s8 + $0x50] sm:$0xf]  ;;  %v1961_v48 = vld [vmem:[#allocation2 + $0x3c] sm:$0xf] }
  0xec   : > { %v3666_v28 = vpop.permute.xlu1 %3665  ;;  %v2251_v42 = vsel %vm2218_vm8, %v1959_v6, 0  ;;  %vm2220_vm13 = vcmp.ne.s16.totalorder %v7486_v61, 0  ;;  %v578_v44 = vshrl.u32 %v386_v17, 16  ;;  %v581_v34 = vshll.u32 %v386_v17, 16  ;;  %v1962_v32 = vld [vmem:[#allocation2 + $0x40] sm:$0xf] }
  0xed   : > { %3762 = vst.msk [vmem:[#allocation3] sm:$0xf] %vm9538_vm11, %v3666_v28  ;;  %v3668_v18 = vpop.permute.xlu0 %3667  ;;  %v4325_v28 = vsel %vm7251_vm10, %v4292_v27, 0  ;;  %v4410_v13 = vrot.slane %v4408_v14, 4  ;;  %vm9537_vm10 = vcmask 290048   ;;  %v2348_v47 = vrot.slane %v2252_v40, 5 }
  0xee   : > { %3685 = vrot.lane.b32.xlu1 %v3611_v33, %s6407_s14  ;;  %3763 = vst.msk [vmem:[#allocation3 + $0x4] sm:$0xf] %vm9538_vm11, %v3668_v18  ;;  %v2156_v33 = vrot.slane %v2154_v16, 4  ;;  %v4409_v18 = vsel %vm6727_vm14, %v4407_v59, %v4408_v14  ;;  %v2771_v16 = vld [vmem:[#allocation2 + $0x3c] sm:$0xf]  ;;  %v7519_v21 = vrot.slane %v578_v44, 7 }
  0xef   : > { %3687 = vrot.lane.b32.xlu0 %v3612_v31, %s6407_s14  ;;  %v4411_v31 = vrot.slane %v4324_v51, 5  ;;  %v2915_v27 = vshrl.u32 %v7303_v54, 16  ;;  %v2921_v59 = vshll.u32 %v2771_v16, 16  ;;  %v2772_v57 = vld [vmem:[#allocation2 + $0x40] sm:$0xf]  ;;  %v2925_v54 = vshrl.u32 %v2771_v16, 16 }
  0xf0   : > { %v3670_v39 = vpop.permute.xlu1 %3669  ;;  %v2158_v58 = vsel %vm6659_vm1, %v2156_v33, %v6503_v19  ;;  %v2350_v33 = vrot.slane %v2348_v47, 4  ;;  %v2546_v16 = vld [vmem:[#allocation2 + $0x3c] sm:$0xf] }
  0xf1   : > { %3764 = vst.msk [vmem:[#allocation3 + $0x8] sm:$0xf] %vm9538_vm11, %v3670_v39  ;;  %v3672_v29 = vpop.permute.xlu0 %3671  ;;  %v4413_v15 = vrot.slane %v4411_v31, 4  ;;  %v2344_v39 = vrot.slane %v7276_v50, 4  ;;  %v4412_v10 = vsel %vm6727_vm14, %v4410_v13, %v4411_v31  ;;  %vm7511_vm5 = vcmp.ne.s16.totalorder %v2158_v58, 0 }
  0xf2   : > { %4167 = vrot.lane.b32.xlu1 %v3920_v26, %s6408_s15  ;;  %3765 = vst.msk [vmem:[#allocation3 + $0xc] sm:$0xf] %vm9538_vm11, %v3672_v29  ;;  %v7503_v26 = vrot.slane %v4325_v28, 5  ;;  %v2253_v50 = vsel %vm2220_vm13, %v1961_v48, 0  ;;  %v2254_v51 = vsel %vm7511_vm5, %v1962_v32, 0  ;;  %v2917_v40 = vrot.slane %v2915_v27, 4 }
  0xf3   : > { %4169 = vrot.lane.b32.xlu0 %v3930_v5, %s6408_s15  ;;  %v2345_v5 = vrot.slane %v2251_v42, 5  ;;  %v7540_v17 = vrot.slane %v2254_v51, 5  ;;  %v388_v42 = vld [vmem:[%s6491_s8 + $0x58] sm:$0xf]  ;;  %v2927_v32 = vrot.slane %v2925_v54, 4  ;;  %vm9627_vm11 = vnez %v9597_v37 }
  0xf4   : > { %v4152_v45 = vpop.permute.xlu1 %4151  ;;  %v4415_v63 = vsel %vm6727_vm14, %v4413_v15, %v7503_v26  ;;  %v2935_v15 = vshrl.u32 %v2772_v57, 16  ;;  %v2918_v27 = vor.u32 %v2917_v40, %v7335_v7  ;;  %v2547_v7 = vld [vmem:[#allocation2 + $0x40] sm:$0xf]  ;;  %v7751_v37 = vld [vmem:[#allocation2 + $0x50] sm:$0xf] }
  0xf5   : > { %4248 = vst.msk [vmem:[#allocation3] sm:$0xf] %vm9536_vm4, %v4152_v45  ;;  %v4154_v43 = vpop.permute.xlu0 %4153  ;;  %v2347_v14 = vrot.slane %v2345_v5, 4  ;;  %v2346_v6 = vsel %vm6727_vm14, %v2344_v39, %v2345_v5  ;;  %v7548_v39 = vrot.slane %v2921_v59, 5 }
  0xf6   : > { %4171 = vrot.lane.b32.xlu1 %v3940_v8, %s6408_s15  ;;  %4249 = vst.msk [vmem:[#allocation3 + $0x4] sm:$0xf] %vm9536_vm4, %v4154_v43  ;;  %v576_v8 = vrot.slane %v7406_v36, 4  ;;  %v583_v36 = vor.u32 %v581_v34, %v7519_v21 }
  0xf7   : > { %4173 = vrot.lane.b32.xlu0 %v3950_v9, %s6408_s15  ;;  %v2351_v9 = vrot.slane %v2253_v50, 5  ;;  %v2349_v13 = vsel %vm6727_vm14, %v2347_v14, %v2348_v47  ;;  %v599_v14 = vshll.u32 %v388_v42, 16 }
  0xf8   : > { %v4156_v0 = vpop.permute.xlu1 %4155  ;;  %v584_v28 = vsel %vm9614_vm0, %v576_v8, %v583_v36  ;;  %v585_v8 = vrot.slane %v7519_v21, 4 }
  0xf9   : > { %4250 = vst.msk [vmem:[#allocation3 + $0x8] sm:$0xf] %vm9536_vm4, %v4156_v0  ;;  %v4158_v55 = vpop.permute.xlu0 %4157  ;;  %v2353_v31 = vrot.slane %v2351_v9, 4  ;;  %v2773_v0 = vld [vmem:[#allocation2 + $0x44] sm:$0xf]  ;;  %v2352_v48 = vsel %vm6727_vm14, %v2350_v33, %v2351_v9  ;;  %v2937_v9 = vrot.slane %v2935_v15, 4 }
  0xfa   : > { %4492 = vrot.lane.b32.xlu1 %v4406_v62, %s6409_s16  ;;  %4251 = vst.msk [vmem:[#allocation3 + $0xc] sm:$0xf] %vm9536_vm4, %v4158_v55  ;;  %v387_v62 = vld [vmem:[%s6491_s8 + $0x54] sm:$0xf]  ;;  %vm4744_vm4 = vcmask 293888   ;;  %v2941_v5 = vshll.u32 %v2773_v0, 16 }
  0xfb   : > { %4494 = vrot.lane.b32.xlu0 %v4409_v18, %s6409_s16  ;;  %740 = vst.msk [vmem:[#allocation2 + $0x58] sm:$0xf] %vm9620_vm15, %v584_v28  ;;  %v2931_v18 = vshll.u32 %v2772_v57, 16  ;;  %v2545_v55 = vld [vmem:[#allocation2 + $0x38] sm:$0xf]  ;;  %v587_v44 = vshrl.u32 %v387_v62, 16  ;;  %v2355_v50 = vsel %vm6727_vm14, %v2353_v31, %v7540_v17  ;;  %vm9625_vm15 = vnez %v9594_v60 }
  0xfc   : > { %v4477_v23 = vpop.permute.xlu1 %4476  ;;  %v590_v34 = vshll.u32 %v387_v62, 16  ;;  %v2945_v47 = vshrl.u32 %v2773_v0, 16  ;;  %v2577_v51 = vsel %vm9625_vm15, %v2545_v55, 0  ;;  %v2548_v28 = vld [vmem:[#allocation2 + $0x44] sm:$0xf]  ;;  %v2943_v62 = vrot.slane %v2941_v5, 5 }
  0xfd   : > { %4573 = vst.msk [vmem:[#allocation3] sm:$0xf] %vm9537_vm10, %v4477_v23  ;;  %v4479_v45 = vpop.permute.xlu0 %4478  ;;  %v596_v23 = vshrl.u32 %v388_v42, 16  ;;  %v2933_v33 = vrot.slane %v2931_v18, 5  ;;  %v2579_v15 = vsel %vm9627_vm11, %v2547_v7, 0 }
  0xfe   : > { %4496 = vrot.lane.b32.xlu1 %v4412_v10, %s6409_s16  ;;  %4574 = vst.msk [vmem:[#allocation3 + $0x4] sm:$0xf] %vm9537_vm10, %v4479_v45  ;;  %v2947_v31 = vrot.slane %v2945_v47, 4 }
  0xff   : > { %4498 = vrot.lane.b32.xlu0 %v4415_v63, %s6409_s16  ;;  %v589_v63 = vrot.slane %v587_v44, 7  ;;  %v2938_v55 = vor.u32 %v2937_v9, %v2933_v33  ;;  %v3259_v9 = vld [vmem:[#allocation2 + $0x44] sm:$0xf] }
 0x100   : > { %v4481_v43 = vpop.permute.xlu1 %4480  ;;  %v2948_v47 = vor.u32 %v2947_v31, %v2943_v62 }
 0x101   : > { %4575 = vst.msk [vmem:[#allocation3 + $0x8] sm:$0xf] %vm9537_vm10, %v4481_v43  ;;  %v4483_v58 = vpop.permute.xlu0 %4482  ;;  %v592_v59 = vor.u32 %v590_v34, %v589_v63  ;;  %v594_v57 = vrot.slane %v589_v63, 4  ;;  %v2578_v43 = vsel %vm6473_vm3, %v2546_v16, 0  ;;  %v3257_v34 = vld [vmem:[#allocation2 + $0x3c] sm:$0xf] }
 0x102   : > { %2428 = vrot.lane.b32.xlu1 %v2346_v6, %s6403_s10  ;;  %4576 = vst.msk [vmem:[#allocation3 + $0xc] sm:$0xf] %vm9537_vm10, %v4483_v58  ;;  %v7560_v6 = vrot.slane %v596_v23, 7  ;;  %v7573_v58 = vld [vmem:[#allocation2 + $0x48] sm:$0xf]  ;;  %vm9626_vm10 = vcmask 27648  }
 0x103   : > { %2430 = vrot.lane.b32.xlu0 %v2349_v13, %s6403_s10  ;;  %v2928_v13 = vor.u32 %v2927_v32, %v7548_v39  ;;  %v593_v0 = vsel %vm9614_vm0, %v585_v8, %v592_v59  ;;  %vm9628_vm6 = vmmov %vm9626_vm10  ;;  %v2951_v32 = vshll.u32 %v7573_v58, 16  ;;  %v3258_v23 = vld [vmem:[#allocation2 + $0x40] sm:$0xf]  ;;  %v2939_v8 = vrot.slane %v2938_v55, 4 }
 0x104   : > { %v2413_v10 = vpop.permute.xlu1 %2412  ;;  %v601_v54 = vor.u32 %v599_v14, %v7560_v6  ;;  %741 = vst.msk [vmem:[#allocation2 + $0x5c] sm:$0xf] %vm9626_vm10, %v593_v0  ;;  %v3290_v14 = vsel %vm2218_vm8, %v3257_v34, 0 }
 0x105   : > { %2505 = vst.msk [vmem:[#allocation3 + $0x10] sm:$0xf] %vm9541_vm7, %v2413_v10  ;;  %v2415_v45 = vpop.permute.xlu0 %2414  ;;  %v6343_v36 = vld [vmem:[#allocation3] sm:$0xff]   ;;  %v2580_v10 = vsel %vm6473_vm3, %v2548_v28, 0  ;;  %v2929_v5 = vrot.slane %v2928_v13, 4  ;;  %v2944_v59 = vsel %vm6580_vm12, %v2939_v8, %v2943_v62  ;;  %v3951_v62 = vshrl.u32 %v7417_v53, 16 }
 0x106   : > { %2432 = vrot.lane.b32.xlu1 %v2352_v48, %s6403_s10  ;;  %2506 = vst.msk [vmem:[#allocation3 + $0x14] sm:$0xf] %vm9541_vm7, %v2415_v45  ;;  %6235 = vmatprep.mubr.msk.bf16.mxu0 %vm4744_vm4, %v6343_v36  ;;  %v602_v18 = vsel %vm9614_vm0, %v594_v57, %v601_v54  ;;  %v2919_v48 = vrot.slane %v2918_v27, 4  ;;  %v3291_v27 = vsel %vm7476_vm2, %v3258_v23, 0  ;;  %v7601_v36 = vrot.slane %v2951_v32, 5 }
 0x107   : > { %2434 = vrot.lane.b32.xlu0 %v2355_v50, %s6403_s10  ;;  %742 = vst.msk [vmem:[#allocation2 + $0x60] sm:$0xf] %vm9628_vm6, %v602_v18  ;;  %vm9630_vm6 = vmmov %vm9629_vm9  ;;  %v2934_v45 = vsel %vm6580_vm12, %v2929_v5, %v2933_v33  ;;  %v3380_v57 = vrot.slane %v7369_v20, 4  ;;  %v3384_v7 = vrot.slane %v3291_v27, 5  ;;  %v3292_v33 = vsel %vm2220_vm13, %v3259_v9, 0 }
 0x108   : > { %v2417_v21 = vpop.permute.xlu1 %2416  ;;  %v2924_v16 = vsel %vm6580_vm12, %v2919_v48, %v7548_v39  ;;  %vm9632_vm10 = vmmov %vm9630_vm6  ;;  %v3807_v28 = vld [vmem:[#allocation2 + $0x44] sm:$0xf]  ;;  %v3387_v18 = vrot.slane %v3292_v33, 5  ;;  %v3808_v53 = vld [vmem:[#allocation2 + $0x48] sm:$0xf]  ;;  %v3953_v32 = vrot.slane %v3951_v62, 4 }
 0x109   : > { %2507 = vst.msk [vmem:[#allocation3 + $0x18] sm:$0xf] %vm9541_vm7, %v2417_v21  ;;  %v2419_v42 = vpop.permute.xlu0 %2418  ;;  %v6344_v40 = vld [vmem:[#allocation3 + $0x8] sm:$0xff]   ;;  %v3381_v21 = vrot.slane %v3290_v14, 5  ;;  %v3961_v55 = vshrl.u32 %v3807_v28, 16  ;;  %v3971_v14 = vshrl.u32 %v3808_v53, 16 }
 0x10a   : > { %2653 = vrot.lane.b32.xlu1 %v2577_v51, %s6404_s11  ;;  %2508 = vst.msk [vmem:[#allocation3 + $0x1c] sm:$0xf] %vm9541_vm7, %v2419_v42  ;;  %6236 = vmatmul.mubr.msk.bf16.vlgmr.msra.gmra.mxu0 %vm4744_vm4, %v6344_v40  ;;  %v2949_v51 = vrot.slane %v2948_v47, 4  ;;  %v3386_v40 = vrot.slane %v3384_v7, 4  ;;  %v389_v47 = vld [vmem:[%s6491_s8 + $0x5c] sm:$0xf]  ;;  %v3954_v62 = vor.u32 %v3953_v32, %v7451_v41 }
 0x10b   : > { %2655 = vrot.lane.b32.xlu0 %v2578_v43, %s6404_s11  ;;  %v3260_v43 = vld [vmem:[#allocation2 + $0x48] sm:$0xf]  ;;  %v3383_v31 = vrot.slane %v3381_v21, 4  ;;  %v3382_v42 = vsel %vm6727_vm14, %v3380_v57, %v3381_v21  ;;  %v3582_v33 = vld [vmem:[#allocation2 + $0x44] sm:$0xf] }
 0x10c   : > { %v2638_v44 = vpop.permute.xlu1 %2637  ;;  %v2954_v13 = vsel %vm6580_vm12, %v2949_v51, %v7601_v36  ;;  %v3293_v0 = vsel %vm7511_vm5, %v3260_v43, 0  ;;  %v3963_v51 = vrot.slane %v3961_v55, 4  ;;  %v608_v43 = vshll.u32 %v389_v47, 16  ;;  %v7669_v32 = vld [vmem:[#allocation2 + $0x50] sm:$0xf] }
 0x10d   : > { %2730 = vst.msk [vmem:[#allocation3 + $0x10] sm:$0xf] %vm9629_vm9, %v2638_v44  ;;  %v2640_v50 = vpop.permute.xlu0 %2639  ;;  %vm9631_vm9 = vmmov %vm9630_vm6  ;;  %v802_v44 = vadd.s32 136, %v6467_v1  ;;  %v3385_v34 = vsel %vm6727_vm14, %v3383_v31, %v3384_v7  ;;  %v7627_v5 = vrot.slane %v3293_v0, 5  ;;  %v3614_v60 = vsel %vm6473_vm3, %v3582_v33, 0 }
 0x10e   : > { %2657 = vrot.lane.b32.xlu1 %v2579_v15, %s6404_s11  ;;  %2731 = vst.msk [vmem:[#allocation3 + $0x14] sm:$0xf] %vm9630_vm6, %v2640_v50  ;;  %vm9633_vm6 = vcmask 158848   ;;  %v3957_v15 = vshll.u32 %v3807_v28, 16  ;;  %v3809_v50 = vld [vmem:[#allocation2 + $0x4c] sm:$0xf] }
 0x10f   : > { %2659 = vrot.lane.b32.xlu0 %v2580_v10, %s6404_s11  ;;  %v3389_v10 = vrot.slane %v3387_v18, 4  ;;  %v940_v9 = vand.u32 15, %v802_v44  ;;  %v3977_v21 = vshll.u32 %v3809_v50, 16  ;;  %v3981_v7 = vshrl.u32 %v3809_v50, 16  ;;  %v4293_v28 = vld [vmem:[#allocation2 + $0x44] sm:$0xf] }
 0x110   : > { %v2642_v63 = vpop.permute.xlu1 %2641  ;;  %v7634_v8 = vrot.slane %v3957_v15, 5 }
 0x111   : > { %2732 = vst.msk [vmem:[#allocation3 + $0x18] sm:$0xf] %vm9631_vm9, %v2642_v63  ;;  %v2644_v39 = vpop.permute.xlu0 %2643  ;;  %vm9634_vm9 = vmmov %vm9633_vm6  ;;  %v3967_v63 = vshll.u32 %v3808_v53, 16  ;;  %v3391_v57 = vsel %vm6727_vm14, %v3389_v10, %v7627_v5  ;;  %v7662_v55 = vrot.slane %v3977_v21, 5  ;;  %v7666_v53 = vsel %vm2218_vm8, %v4293_v28, 0 }
 0x112   : > { %3139 = vrot.lane.b32.xlu1 %v2924_v16, %s6405_s12  ;;  %2733 = vst.msk [vmem:[#allocation3 + $0x1c] sm:$0xf] %vm9632_vm10, %v2644_v39  ;;  %vm9635_vm10 = vmmov %vm9633_vm6  ;;  %v3388_v16 = vsel %vm6727_vm14, %v3386_v40, %v3387_v18  ;;  %v804_v39 = vadd.s32 152, %v6467_v1  ;;  %v3583_v18 = vld [vmem:[#allocation2 + $0x48] sm:$0xf]  ;;  %v3964_v15 = vor.u32 %v3963_v51, %v7634_v8  ;;  %v3983_v44 = vrot.slane %v3981_v7, 4 }
 0x113   : > { %3141 = vrot.lane.b32.xlu0 %v2934_v45, %s6405_s12  ;;  %v3581_v45 = vld [vmem:[#allocation2 + $0x40] sm:$0xf]  ;;  %v7650_v0 = vrot.slane %v3967_v63, 5  ;;  %v3615_v50 = vsel %vm9627_vm11, %v3583_v18, 0  ;;  %vm9644_vm11 = vcmask 224448   ;;  %v4416_v7 = vrot.slane %v7503_v26, 4 }
 0x114   : > { %v3124_v54 = vpop.permute.xlu1 %3123  ;;  %v1476_v26 = vld [vmem:[#allocation2 + $0x4c] sm:$0xf] }
 0x115   : > { %3216 = vst.msk [vmem:[#allocation3 + $0x10] sm:$0xf] %vm9633_vm6, %v3124_v54  ;;  %v3126_v20 = vpop.permute.xlu0 %3125 }
 0x116   : > { %3143 = vrot.lane.b32.xlu1 %v2944_v59, %s6405_s12  ;;  %3217 = vst.msk [vmem:[#allocation3 + $0x14] sm:$0xf] %vm9634_vm9, %v3126_v20  ;;  %v605_v59 = vshrl.u32 %v389_v47, 16  ;;  %vm9636_vm9 = vcmask 191648   ;;  %v3613_v20 = vsel %vm9625_vm15, %v3581_v45, 0  ;;  %v4417_v45 = vrot.slane %v7666_v53, 5 }
 0x117   : > { %3145 = vrot.lane.b32.xlu0 %v2954_v13, %s6405_s12  ;;  %v603_v13 = vrot.slane %v7560_v6, 4  ;;  %v3584_v47 = vld [vmem:[#allocation2 + $0x4c] sm:$0xf]  ;;  %vm9640_vm15 = vmmov %vm9636_vm9 }
 0x118   : > { %v3128_v48 = vpop.permute.xlu1 %3127  ;;  %v7644_v31 = vrot.slane %v605_v59, 7  ;;  %v3987_v59 = vshll.u32 %v7669_v32, 16 }
 0x119   : > { %3218 = vst.msk [vmem:[#allocation3 + $0x18] sm:$0xf] %vm9635_vm10, %v3128_v48  ;;  %v3130_v23 = vpop.permute.xlu0 %3129  ;;  %vm9637_vm10 = vmmov %vm9636_vm9  ;;  %v954_v48 = vand.u32 15, %v804_v39  ;;  %v3984_v39 = vor.u32 %v3983_v44, %v7662_v55 }
 0x11a   : > { %3464 = vrot.lane.b32.xlu1 %v3382_v42, %s6406_s13  ;;  %3219 = vst.msk [vmem:[#allocation3 + $0x1c] sm:$0xf] %vm9633_vm6, %v3130_v23  ;;  %v3973_v42 = vrot.slane %v3971_v14, 4  ;;  %vm7654_vm6 = vcmp.ne.s32.totalorder %v940_v9, 15  ;;  %v610_v41 = vor.u32 %v608_v43, %v7644_v31  ;;  %v3616_v9 = vsel %vm6473_vm3, %v3584_v47, 0 }
 0x11b   : > { %3466 = vrot.lane.b32.xlu0 %v3385_v34, %s6406_s13  ;;  %v1475_v34 = vld [vmem:[#allocation2 + $0x48] sm:$0xf]  ;;  %vm2060_vm8 = vmpackc.low %vm7654_vm6, %vm7654_vm6  ;;  %v7696_v43 = vrot.slane %v4417_v45, 4  ;;  %v3985_v6 = vrot.slane %v3984_v39, 4 }
 0x11c   : > { %v3449_v27 = vpop.permute.xlu1 %3448  ;;  %v611_v23 = vsel %vm9614_vm0, %v603_v13, %v610_v41  ;;  %v3974_v52 = vor.u32 %v3973_v42, %v7650_v0  ;;  %v1677_v63 = vshrl.u32 %v1475_v34, 16  ;;  %v1673_v51 = vshll.u32 %v1475_v34, 16  ;;  %vm9646_vm6 = vmmov %vm9644_vm11  ;;  %v4296_v41 = vld [vmem:[#allocation2 + $0x50] sm:$0xf] }
 0x11d   : > { %3541 = vst.msk [vmem:[#allocation3 + $0x10] sm:$0xf] %vm9636_vm9, %v3449_v27  ;;  %v3451_v54 = vpop.permute.xlu0 %3450  ;;  %v3965_v27 = vrot.slane %v3964_v15, 4  ;;  %v2092_v33 = vsel %vm2060_vm8, 65537, %v6401_v4  ;;  %v803_v15 = vadd.s32 144, %v6467_v1  ;;  %v1683_v34 = vshll.u32 %v1476_v26, 16 }
 0x11e   : > { %3468 = vrot.lane.b32.xlu1 %v3388_v16, %s6406_s13  ;;  %3542 = vst.msk [vmem:[#allocation3 + $0x14] sm:$0xf] %vm9637_vm10, %v3451_v54  ;;  %v3955_v16 = vrot.slane %v3954_v62, 4  ;;  %vm9641_vm10 = vcmask 27648   ;;  %v4295_v54 = vld [vmem:[#allocation2 + $0x4c] sm:$0xf] }
 0x11f   : > { %3470 = vrot.lane.b32.xlu0 %v3391_v57, %s6406_s13  ;;  %743 = vst.msk [vmem:[#allocation2 + $0x64] sm:$0xf] %vm9641_vm10, %v611_v23  ;;  %v4294_v57 = vld [vmem:[#allocation2 + $0x48] sm:$0xf]  ;;  %v3975_v13 = vrot.slane %v3974_v52, 4  ;;  %v7708_v62 = vrot.slane %v1677_v63, 4 }
 0x120   : > { %v3453_v40 = vpop.permute.xlu1 %3452  ;;  %v3960_v28 = vsel %vm6580_vm12, %v3955_v16, %v7634_v8  ;;  %v7718_v18 = vrot.slane %v1673_v51, 5  ;;  %v4327_v8 = vsel %vm7476_vm2, %v4294_v57, 0  ;;  %v2160_v44 = vrot.slane %v2092_v33, 7  ;;  %vm9647_vm2 = vmmov %vm9646_vm6 }
 0x121   : > { %3543 = vst.msk [vmem:[#allocation3 + $0x18] sm:$0xf] %vm9636_vm9, %v3453_v40  ;;  %v3455_v10 = vpop.permute.xlu0 %3454  ;;  %vm7683_vm9 = vcmp.ne.s32.totalorder %v954_v48, 15  ;;  %v3970_v40 = vsel %vm6580_vm12, %v3965_v27, %v7650_v0  ;;  %v7724_v48 = vrot.slane %v3987_v59, 5  ;;  %v3980_v61 = vsel %vm6580_vm12, %v3975_v13, %v7662_v55 }
 0x122   : > { %3689 = vrot.lane.b32.xlu1 %v3613_v20, %s6407_s14  ;;  %3544 = vst.msk [vmem:[#allocation3 + $0x1c] sm:$0xf] %vm9640_vm15, %v3455_v10  ;;  %vm9645_vm15 = vmmov %vm9644_vm11  ;;  %v390_v20 = vld [vmem:[%s6491_s8 + $0x60] sm:$0xf]  ;;  %v1687_v10 = vshrl.u32 %v1476_v26, 16  ;;  %v4420_v23 = vrot.slane %v4327_v8, 5  ;;  %v4418_v33 = vsel %vm6727_vm14, %v4416_v7, %v4417_v45 }
 0x123   : > { %3691 = vrot.lane.b32.xlu0 %v3614_v60, %s6407_s14  ;;  %vm2062_vm10 = vmpackc.low %vm7683_vm9, %vm7683_vm9  ;;  %v4328_v60 = vsel %vm2220_vm13, %v4295_v54, 0  ;;  %v614_v47 = vshrl.u32 %v390_v20, 16  ;;  %v617_v16 = vshll.u32 %v390_v20, 16  ;;  %v4329_v63 = vsel %vm7511_vm5, %v4296_v41, 0  ;;  %v391_v45 = vld [vmem:[%s6491_s8 + $0x64] sm:$0xf] }
 0x124   : > { %v3674_v14 = vpop.permute.xlu1 %3673  ;;  %v2094_v2 = vsel %vm2062_vm10, 65537, %v6401_v4  ;;  %v612_v27 = vrot.slane %v7644_v31, 4  ;;  %vm9648_vm13 = vcmask 257248   ;;  %v3990_v55 = vsel %vm6580_vm12, %v3985_v6, %v7724_v48  ;;  %v1964_v6 = vld [vmem:[#allocation2 + $0x48] sm:$0xf] }
 0x125   : > { %3766 = vst.msk [vmem:[#allocation3 + $0x10] sm:$0xf] %vm9644_vm11, %v3674_v14  ;;  %v3676_v21 = vpop.permute.xlu0 %3675  ;;  %v4423_v14 = vrot.slane %v4328_v60, 5  ;;  %v7745_v51 = vrot.slane %v614_v47, 7  ;;  %v2162_v29 = vrot.slane %v2160_v44, 4  ;;  %v2166_v39 = vrot.slane %v2094_v2, 7  ;;  %vm9649_vm5 = vmmov %vm9648_vm13 }
 0x126   : > { %3693 = vrot.lane.b32.xlu1 %v3615_v50, %s6407_s14  ;;  %3767 = vst.msk [vmem:[#allocation3 + $0x14] sm:$0xf] %vm9645_vm15, %v3676_v21  ;;  %v1680_v50 = vor.u32 %v7708_v62, %v7718_v18  ;;  %v7759_v59 = vrot.slane %v1683_v34, 5  ;;  %v1689_v57 = vrot.slane %v1687_v10, 4  ;;  %v947_v21 = vand.u32 15, %v803_v15  ;;  %vm9650_vm9 = vmmov %vm9649_vm5 }
 0x127   : > { %3695 = vrot.lane.b32.xlu0 %v3616_v9, %s6407_s14  ;;  %v7756_v9 = vsel %vm6659_vm1, %v6650_v22, %v2160_v44  ;;  %v619_v54 = vor.u32 %v617_v16, %v7745_v51  ;;  %v4422_v13 = vrot.slane %v4420_v23, 4  ;;  %v4421_v62 = vsel %vm6727_vm14, %v7696_v43, %v4420_v23  ;;  %v1282_v43 = vld [vmem:[#allocation2 + $0x44] sm:$0xf]  ;;  %vm9654_vm10 = vmmov %vm9649_vm5  ;;  %v1284_v2 = vld [vmem:[#allocation2 + $0x4c] sm:$0xf] }
 0x128   : > { %v3678_v42 = vpop.permute.xlu1 %3677  ;;  %v1693_v20 = vshll.u32 %v7751_v37, 16  ;;  %vm2222_vm8 = vcmp.ne.s16.totalorder %v7756_v9, 0  ;;  %v4425_v38 = vrot.slane %v4423_v14, 4  ;;  %v7780_v24 = vrot.slane %v4329_v63, 5  ;;  %v1283_v47 = vld [vmem:[#allocation2 + $0x48] sm:$0xf] }
 0x129   : > { %3768 = vst.msk [vmem:[#allocation3 + $0x18] sm:$0xf] %vm9646_vm6, %v3678_v42  ;;  %v3680_v0 = vpop.permute.xlu0 %3679  ;;  %v1963_v42 = vld [vmem:[#allocation2 + $0x44] sm:$0xf]  ;;  %v620_v53 = vsel %vm9614_vm0, %v612_v27, %v619_v54  ;;  %v2168_v7 = vrot.slane %v2166_v39, 4  ;;  %vm9651_vm11 = vcmask 27648   ;;  %v1690_v8 = vor.u32 %v1689_v57, %v7759_v59 }
 0x12a   : > { %4175 = vrot.lane.b32.xlu1 %v3960_v28, %s6408_s15  ;;  %3769 = vst.msk [vmem:[#allocation3 + $0x1c] sm:$0xf] %vm9647_vm2, %v3680_v0  ;;  %v1671_v28 = vrot.slane %v1670_v11, 4  ;;  %v2164_v11 = vsel %vm6659_vm1, %v2162_v29, %v6503_v19  ;;  %v1681_v15 = vrot.slane %v1680_v50, 4  ;;  %v7791_v41 = vsel %vm6659_vm1, %v6650_v22, %v2166_v39  ;;  %v1965_v63 = vld [vmem:[#allocation2 + $0x4c] sm:$0xf] }
 0x12b   : > { %4177 = vrot.lane.b32.xlu0 %v3970_v40, %s6408_s15  ;;  %744 = vst.msk [vmem:[#allocation2 + $0x68] sm:$0xf] %vm9651_vm11, %v620_v53  ;;  %vm7793_vm15 = vcmp.ne.s32.totalorder %v947_v21, 0  ;;  %v4424_v0 = vsel %vm6727_vm14, %v4422_v13, %v4423_v14  ;;  %v2255_v34 = vsel %vm2222_vm8, %v1963_v42, 0  ;;  %v623_v10 = vshrl.u32 %v391_v45, 16 }
 0x12c   : > { %v4160_v52 = vpop.permute.xlu1 %4159  ;;  %v1676_v44 = vsel %vm6580_vm12, %v1671_v28, %v7718_v18  ;;  %v7806_v23 = vrot.slane %v1693_v20, 5  ;;  %vm7808_vm6 = vcmp.ne.s16.totalorder %v2164_v11, 0  ;;  %v626_v16 = vshll.u32 %v391_v45, 16  ;;  %v1288_v20 = vld [vmem:[#allocation2 + $0x5c] sm:$0xf] }
 0x12d   : > { %4252 = vst.msk [vmem:[#allocation3 + $0x10] sm:$0xf] %vm9648_vm13, %v4160_v52  ;;  %v4162_v31 = vpop.permute.xlu0 %4161  ;;  %v1410_v18 = vsel %vm6473_vm3, %v1282_v43, 0  ;;  %v392_v52 = vld [vmem:[%s6491_s8 + $0x68] sm:$0xf]  ;;  %vm9657_vm2 = vcmask 290048   ;;  %v2170_v14 = vsel %vm6659_vm1, %v2168_v7, %v6503_v19  ;;  %v1686_v53 = vsel %vm6580_vm12, %v1681_v15, %v7759_v59 }
 0x12e   : > { %4179 = vrot.lane.b32.xlu1 %v3980_v61, %s6408_s15  ;;  %4253 = vst.msk [vmem:[#allocation3 + $0x14] sm:$0xf] %vm9649_vm5, %v4162_v31  ;;  %vm2224_vm13 = vcmp.ne.s16.totalorder %v7791_v41, 0  ;;  %vm7823_vm5 = vmpackc.low %vm7793_vm15, %vm7793_vm15  ;;  %v625_v29 = vrot.slane %v623_v10, 7  ;;  %v1691_v31 = vrot.slane %v1690_v8, 4  ;;  %v2357_v57 = vrot.slane %v2255_v34, 5 }
 0x12f   : > { %4181 = vrot.lane.b32.xlu0 %v3990_v55, %s6408_s15  ;;  %v621_v55 = vrot.slane %v7745_v51, 4  ;;  %v1412_v21 = vsel %vm6473_vm3, %v1284_v2, 0  ;;  %v1411_v54 = vsel %vm7823_vm5, %v1283_v47, 0  ;;  %v4427_v51 = vsel %vm6727_vm14, %v4425_v38, %v7780_v24  ;;  %v2775_v15 = vld [vmem:[#allocation2 + $0x4c] sm:$0xf] }
 0x130   : > { %v4164_v26 = vpop.permute.xlu1 %4163  ;;  %v628_v28 = vor.u32 %v626_v16, %v625_v29  ;;  %v632_v13 = vshrl.u32 %v392_v52, 16  ;;  %v2257_v42 = vsel %vm2224_vm13, %v1965_v63, 0  ;;  %v2356_v45 = vrot.slane %v7540_v17, 4  ;;  %v2776_v2 = vld [vmem:[#allocation2 + $0x50] sm:$0xf] }
 0x131   : > { %4254 = vst.msk [vmem:[#allocation3 + $0x18] sm:$0xf] %vm9650_vm9, %v4164_v26  ;;  %v4166_v40 = vpop.permute.xlu0 %4165  ;;  %vm9660_vm9 = vmmov %vm9651_vm11  ;;  %v635_v11 = vshll.u32 %v392_v52, 16  ;;  %v1696_v43 = vsel %vm6580_vm12, %v1691_v31, %v7806_v23  ;;  %v2363_v59 = vrot.slane %v2257_v42, 5  ;;  %v2961_v52 = vshll.u32 %v2775_v15, 16 }
 0x132   : > { %4500 = vrot.lane.b32.xlu1 %v4418_v33, %s6409_s16  ;;  %4255 = vst.msk [vmem:[#allocation3 + $0x1c] sm:$0xf] %vm9654_vm10, %v4166_v40  ;;  %vm9661_vm11 = vmmov %vm9657_vm2  ;;  %v2256_v33 = vsel %vm7808_vm6, %v1964_v6, 0  ;;  %v629_v38 = vsel %vm9614_vm0, %v621_v55, %v628_v28  ;;  %v2359_v40 = vrot.slane %v2357_v57, 4  ;;  %v630_v6 = vrot.slane %v625_v29, 4 }
 0x133   : > { %4502 = vrot.lane.b32.xlu0 %v4421_v62, %s6409_s16  ;;  %1442 = vst.msk [vmem:[#allocation3 + $0x44] sm:$0xf] %vm9660_vm9, %v1410_v18  ;;  %vm9662_vm15 = vmmov %vm9660_vm9  ;;  %v1966_v62 = vld [vmem:[#allocation2 + $0x50] sm:$0xf]  ;;  %v2360_v8 = vrot.slane %v2256_v33, 5  ;;  %v7864_v60 = vrot.slane %v632_v13, 7  ;;  %v2358_v34 = vsel %vm6727_vm14, %v2356_v45, %v2357_v57 }
 0x134   : > { %v4485_v61 = vpop.permute.xlu1 %4484  ;;  %1444 = vst.msk [vmem:[#allocation3 + $0x4c] sm:$0xf] %vm9662_vm15, %v1412_v21  ;;  %vm9663_vm10 = vmmov %vm9660_vm9  ;;  %v2365_v63 = vrot.slane %v2363_v59, 4  ;;  %v2971_v57 = vshll.u32 %v2776_v2, 16  ;;  %v2975_v21 = vshrl.u32 %v2776_v2, 16  ;;  %v2963_v13 = vrot.slane %v2961_v52, 5 }
 0x135   : > { %4577 = vst.msk [vmem:[#allocation3 + $0x10] sm:$0xf] %vm9657_vm2, %v4485_v61  ;;  %v4487_v39 = vpop.permute.xlu0 %4486  ;;  %vm7843_vm2 = vcmp.ne.s16.totalorder %v2170_v14, 0  ;;  %vm9666_vm9 = vmmov %vm9661_vm11  ;;  %v2362_v10 = vrot.slane %v2360_v8, 4  ;;  %v637_v47 = vor.u32 %v635_v11, %v7864_v60  ;;  %v2965_v14 = vshrl.u32 %v2775_v15, 16 }
 0x136   : > { %1851 = vrot.lane.b32.xlu1 %v1676_v44, %s6402_s9  ;;  %4578 = vst.msk [vmem:[#allocation3 + $0x14] sm:$0xf] %vm9661_vm11, %v4487_v39  ;;  %vm9667_vm11 = vmmov %vm9663_vm10  ;;  %v2258_v17 = vsel %vm7843_vm2, %v1966_v62, 0  ;;  %v2777_v39 = vld [vmem:[#allocation2 + $0x54] sm:$0xf]  ;;  %v808_v27 = vadd.s32 184, %v6467_v1 }
 0x137   : > { %1443 = vst.msk [vmem:[#allocation3 + $0x48] sm:$0xf] %vm9663_vm10, %v1411_v54  ;;  %4504 = vrot.lane.b32.xlu0 %v4424_v0, %s6409_s16  ;;  %vm9668_vm15 = vmmov %vm9666_vm9  ;;  %v2955_v0 = vshrl.u32 %v7573_v58, 16  ;;  %v7873_v18 = vrot.slane %v2258_v17, 5  ;;  %v2361_v58 = vsel %vm6727_vm14, %v2359_v40, %v2360_v8  ;;  %v638_v55 = vsel %vm9614_vm0, %v630_v6, %v637_v47  ;;  %v2549_v28 = vld [vmem:[#allocation2 + $0x48] sm:$0xf] }
 0x138   : > { %v4489_v26 = vpop.permute.xlu1 %4488  ;;  %745 = vst.msk [vmem:[#allocation2 + $0x6c] sm:$0xf] %vm9667_vm11, %v629_v38  ;;  %v2364_v31 = vsel %vm6727_vm14, %v2362_v10, %v2363_v59  ;;  %v2967_v62 = vrot.slane %v2965_v14, 4  ;;  %v2981_v42 = vshll.u32 %v2777_v39, 16  ;;  %v2550_v38 = vld [vmem:[#allocation2 + $0x4c] sm:$0xf]  ;;  %vm9670_vm11 = vnez %v9599_v49 }
 0x139   : > { %4579 = vst.msk [vmem:[#allocation3 + $0x18] sm:$0xf] %vm9666_vm9, %v4489_v26  ;;  %v4491_v7 = vpop.permute.xlu0 %4490  ;;  %v2957_v54 = vrot.slane %v2955_v0, 4  ;;  %v2367_v26 = vsel %vm6727_vm14, %v2365_v63, %v7873_v18  ;;  %vm9669_vm9 = vcmask 126048   ;;  %v2581_v11 = vsel %vm9670_vm11, %v2549_v28, 0 }
 0x13a   : > { %4506 = vrot.lane.b32.xlu1 %v4427_v51, %s6409_s16  ;;  %4580 = vst.msk [vmem:[#allocation3 + $0x1c] sm:$0xf] %vm9668_vm15, %v4491_v7  ;;  %v2973_v7 = vrot.slane %v2971_v57, 5  ;;  %v2977_v40 = vrot.slane %v2975_v21, 4  ;;  %v2551_v17 = vld [vmem:[#allocation2 + $0x50] sm:$0xf]  ;;  %vm9671_vm15 = vmmov %vm9669_vm9  ;;  %v2968_v6 = vor.u32 %v2967_v62, %v2963_v13 }
 0x13b   : > { %1853 = vrot.lane.b32.xlu0 %v1686_v53, %s6402_s9  ;;  %746 = vst.msk [vmem:[#allocation2 + $0x70] sm:$0xf] %vm9663_vm10, %v638_v55  ;;  %v2985_v53 = vshrl.u32 %v2777_v39, 16  ;;  %v2582_v59 = vsel %vm6473_vm3, %v2550_v38, 0  ;;  %v2552_v15 = vld [vmem:[#allocation2 + $0x54] sm:$0xf]  ;;  %vm9672_vm10 = vmmov %vm9669_vm9 }
 0x13c   : > { %v2421_v44 = vpop.permute.xlu1 %2420  ;;  %v7902_v10 = vld [vmem:[#allocation2 + $0x58] sm:$0xf]  ;;  %v2583_v2 = vsel %vm7823_vm5, %v2551_v17, 0  ;;  %v2584_v52 = vsel %vm6473_vm3, %v2552_v15, 0  ;;  %v3262_v21 = vld [vmem:[#allocation2 + $0x50] sm:$0xf] }
 0x13d   : > { %2509 = vst.msk [vmem:[#allocation3 + $0x20] sm:$0xf] %vm9541_vm7, %v2421_v44  ;;  %v2423_v61 = vpop.permute.xlu0 %2422  ;;  %v6345_v16 = vld [vmem:[#allocation3 + $0x10] sm:$0xff]   ;;  %v2983_v44 = vrot.slane %v2981_v42, 5  ;;  %v2987_v0 = vrot.slane %v2985_v53, 4  ;;  %v2991_v14 = vshll.u32 %v7902_v10, 16 }
 0x13e   : > { %1855 = vrot.lane.b32.xlu1 %v1696_v43, %s6402_s9  ;;  %2510 = vst.msk [vmem:[#allocation3 + $0x24] sm:$0xf] %vm9541_vm7, %v2423_v61  ;;  %6239 = vmatprep.mubr.msk.bf16.mxu0 %vm4744_vm4, %v6345_v16  ;;  %v2958_v43 = vor.u32 %v2957_v54, %v7601_v36  ;;  %v3261_v36 = vld [vmem:[#allocation2 + $0x4c] sm:$0xf]  ;;  %v2978_v61 = vor.u32 %v2977_v40, %v2973_v7  ;;  %v3263_v54 = vld [vmem:[#allocation2 + $0x54] sm:$0xf] }
 0x13f   : > { %2436 = vrot.lane.b32.xlu0 %v2358_v34, %s6403_s10  ;;  %v2988_v63 = vor.u32 %v2987_v0, %v2983_v44  ;;  %v3294_v55 = vsel %vm2222_vm8, %v3261_v36, 0  ;;  %v7923_v42 = vrot.slane %v2991_v14, 5  ;;  %v3811_v53 = vld [vmem:[#allocation2 + $0x54] sm:$0xf]  ;;  %v3392_v40 = vrot.slane %v7627_v5, 4 }
 0x140   : > { %v2425_v29 = vpop.permute.xlu1 %2424  ;;  %v2959_v47 = vrot.slane %v2958_v43, 4  ;;  %v2979_v57 = vrot.slane %v2978_v61, 4  ;;  %v639_v17 = vrot.slane %v7864_v60, 4  ;;  %v4001_v0 = vshrl.u32 %v3811_v53, 16  ;;  %v7947_v60 = vld [vmem:[#allocation2 + $0x54] sm:$0xf] }
 0x141   : > { %2511 = vst.msk [vmem:[#allocation3 + $0x28] sm:$0xf] %vm9541_vm7, %v2425_v29  ;;  %v2427_v51 = vpop.permute.xlu0 %2426  ;;  %v6346_v33 = vld [vmem:[#allocation3 + $0x18] sm:$0xff]   ;;  %v2989_v62 = vrot.slane %v2988_v63, 4  ;;  %v1697_v14 = vshrl.u32 %v7751_v37, 16 }
 0x142   : > { %2438 = vrot.lane.b32.xlu1 %v2361_v58, %s6403_s10  ;;  %2512 = vst.msk [vmem:[#allocation3 + $0x2c] sm:$0xf] %vm9541_vm7, %v2427_v51  ;;  %6240 = vmatmul.mubr.msk.bf16.gmra.mxu0 %vm4744_vm4, %v6346_v33  ;;  %v2969_v58 = vrot.slane %v2968_v6, 4  ;;  %v393_v29 = vld [vmem:[%s6491_s8 + $0x6c] sm:$0xf]  ;;  %v3393_v33 = vrot.slane %v3294_v55, 5 }
 0x143   : > { %2440 = vrot.lane.b32.xlu0 %v2364_v31, %s6403_s10  ;;  %v2964_v31 = vsel %vm6580_vm12, %v2959_v47, %v2963_v13  ;;  %v641_v28 = vshrl.u32 %v393_v29, 16  ;;  %v3295_v13 = vsel %vm7808_vm6, %v3262_v21, 0  ;;  %v3997_v6 = vshll.u32 %v3811_v53, 16  ;;  %v7970_v53 = vld [vmem:[#allocation2 + $0x58] sm:$0xf] }
 0x144   : > { %v2646_v45 = vpop.permute.xlu1 %2645  ;;  %v3395_v36 = vrot.slane %v3393_v33, 4  ;;  %v3396_v5 = vrot.slane %v3295_v13, 5  ;;  %v3394_v61 = vsel %vm6727_vm14, %v3392_v40, %v3393_v33  ;;  %v3813_v33 = vld [vmem:[#allocation2 + $0x5c] sm:$0xf]  ;;  %v4428_v40 = vrot.slane %v7780_v24, 4 }
 0x145   : > { %2734 = vst.msk [vmem:[#allocation3 + $0x20] sm:$0xf] %vm9669_vm9, %v2646_v45  ;;  %v2648_v8 = vpop.permute.xlu0 %2647  ;;  %v644_v45 = vshll.u32 %v393_v29, 16  ;;  %v7930_v43 = vrot.slane %v641_v28, 7  ;;  %v3585_v29 = vld [vmem:[#allocation2 + $0x50] sm:$0xf] }
 0x146   : > { %2442 = vrot.lane.b32.xlu1 %v2367_v26, %s6403_s10  ;;  %2735 = vst.msk [vmem:[#allocation3 + $0x24] sm:$0xf] %vm9671_vm15, %v2648_v8  ;;  %vm9673_vm15 = vcmask 158848   ;;  %v2974_v26 = vsel %vm6580_vm12, %v2969_v58, %v2973_v7  ;;  %v2984_v7 = vsel %vm6580_vm12, %v2979_v57, %v2983_v44  ;;  %v3264_v8 = vld [vmem:[#allocation2 + $0x58] sm:$0xf]  ;;  %v2994_v44 = vsel %vm6580_vm12, %v2989_v62, %v7923_v42 }
 0x147   : > { %2661 = vrot.lane.b32.xlu0 %v2581_v11, %s6404_s11  ;;  %v3296_v11 = vsel %vm2224_vm13, %v3263_v54, 0  ;;  %v4297_v58 = vld [vmem:[#allocation2 + $0x54] sm:$0xf]  ;;  %v3397_v21 = vsel %vm6727_vm14, %v3395_v36, %v3396_v5  ;;  %v3618_v62 = vsel %vm6473_vm3, %v7947_v60, 0  ;;  %v3619_v24 = vsel %vm7823_vm5, %v7970_v53, 0 }
 0x148   : > { %v2650_v34 = vpop.permute.xlu1 %2649  ;;  %v7964_v28 = vld [vmem:[#allocation2 + $0x54] sm:$0xf]  ;;  %v4330_v13 = vsel %vm2222_vm8, %v4297_v58, 0  ;;  %v3588_v53 = vld [vmem:[#allocation2 + $0x5c] sm:$0xf] }
 0x149   : > { %2736 = vst.msk [vmem:[#allocation3 + $0x28] sm:$0xf] %vm9672_vm10, %v2650_v34  ;;  %v2652_v16 = vpop.permute.xlu0 %2651  ;;  %vm9674_vm10 = vmmov %vm9673_vm15  ;;  %v646_v34 = vor.u32 %v644_v45, %v7930_v43  ;;  %v1703_v36 = vshll.u32 %v7964_v28, 16  ;;  %v1482_v35 = vld [vmem:[#allocation2 + $0x64] sm:$0xf] }
 0x14a   : > { %2663 = vrot.lane.b32.xlu1 %v2582_v59, %s6404_s11  ;;  %2737 = vst.msk [vmem:[#allocation3 + $0x2c] sm:$0xf] %vm9669_vm9, %v2652_v16  ;;  %vm9675_vm9 = vmmov %vm9674_vm10  ;;  %v3991_v59 = vshrl.u32 %v7669_v32, 16  ;;  %v3297_v32 = vsel %vm7843_vm2, %v3264_v8, 0  ;;  %v3398_v16 = vrot.slane %v3396_v5, 4  ;;  %v806_v8 = vadd.s32 168, %v6467_v1 }
 0x14b   : > { %2665 = vrot.lane.b32.xlu0 %v2583_v2, %s6404_s11  ;;  %v3399_v2 = vrot.slane %v3296_v11, 5  ;;  %v647_v63 = vsel %vm9614_vm0, %v639_v17, %v646_v34  ;;  %v394_v17 = vld [vmem:[%s6491_s8 + $0x70] sm:$0xf]  ;;  %v4298_v34 = vld [vmem:[#allocation2 + $0x58] sm:$0xf] }
 0x14c   : > { %v3132_v39 = vpop.permute.xlu1 %3131  ;;  %v3993_v57 = vrot.slane %v3991_v59, 4  ;;  %v4331_v60 = vsel %vm7808_vm6, %v4298_v34, 0 }
 0x14d   : > { %3220 = vst.msk [vmem:[#allocation3 + $0x20] sm:$0xf] %vm9673_vm15, %v3132_v39  ;;  %v3134_v51 = vpop.permute.xlu0 %3133  ;;  %vm9676_vm15 = vmmov %vm9675_vm9  ;;  %v7956_v39 = vrot.slane %v3997_v6, 5  ;;  %v3401_v54 = vrot.slane %v3399_v2, 4  ;;  %v3400_v11 = vsel %vm6727_vm14, %v3398_v16, %v3399_v2  ;;  %v4017_v6 = vshll.u32 %v3813_v33, 16 }
 0x14e   : > { %2667 = vrot.lane.b32.xlu1 %v2584_v52, %s6404_s11  ;;  %3221 = vst.msk [vmem:[#allocation3 + $0x24] sm:$0xf] %vm9674_vm10, %v3134_v51  ;;  %vm9677_vm10 = vcmask 191648   ;;  %v3812_v52 = vld [vmem:[#allocation2 + $0x58] sm:$0xf]  ;;  %v7962_v51 = vrot.slane %v3297_v32, 5  ;;  %v3994_v9 = vor.u32 %v3993_v57, %v7724_v48 }
 0x14f   : > { %3147 = vrot.lane.b32.xlu0 %v2964_v31, %s6405_s12  ;;  %v4003_v31 = vrot.slane %v4001_v0, 4  ;;  %v4007_v45 = vshll.u32 %v3812_v52, 16  ;;  %v4021_v0 = vshrl.u32 %v3813_v33, 16  ;;  %vm9680_vm8 = vmmov %vm9677_vm10  ;;  %v650_v32 = vshrl.u32 %v394_v17, 16  ;;  %v8015_v57 = vld [vmem:[#allocation2 + $0x58] sm:$0xf] }
 0x150   : > { %v3136_v38 = vpop.permute.xlu1 %3135  ;;  %v3403_v49 = vsel %vm6727_vm14, %v3401_v54, %v7962_v51  ;;  %v653_v16 = vshll.u32 %v394_v17, 16  ;;  %v648_v54 = vrot.slane %v7930_v43, 4  ;;  %v982_v43 = vand.u32 15, %v808_v27 }
 0x151   : > { %3222 = vst.msk [vmem:[#allocation3 + $0x28] sm:$0xf] %vm9675_vm9, %v3136_v38  ;;  %v3138_v15 = vpop.permute.xlu0 %3137  ;;  %vm9678_vm9 = vcmask 27648   ;;  %v4011_v38 = vshrl.u32 %v3812_v52, 16  ;;  %v7994_v48 = vrot.slane %v4007_v45, 5  ;;  %v8019_v33 = vrot.slane %v650_v32, 7 }
 0x152   : > { %3149 = vrot.lane.b32.xlu1 %v2974_v26, %s6405_s12  ;;  %3223 = vst.msk [vmem:[#allocation3 + $0x2c] sm:$0xf] %vm9676_vm15, %v3138_v15  ;;  %vm9679_vm15 = vmmov %vm9677_vm10  ;;  %v4004_v15 = vor.u32 %v4003_v31, %v7956_v39  ;;  %v4023_v31 = vrot.slane %v4021_v0, 4 }
 0x153   : > { %3151 = vrot.lane.b32.xlu0 %v2984_v7, %s6405_s12  ;;  %747 = vst.msk [vmem:[#allocation2 + $0x74] sm:$0xf] %vm9678_vm9, %v647_v63  ;;  %v3617_v7 = vsel %vm9670_vm11, %v3585_v29, 0  ;;  %v4013_v2 = vrot.slane %v4011_v38, 4  ;;  %vm9681_vm11 = vcmask 224448   ;;  %v8004_v63 = vrot.slane %v3994_v9, 4 }
 0x154   : > { %v3457_v47 = vpop.permute.xlu1 %3456  ;;  %v8002_v58 = vrot.slane %v4004_v15, 4  ;;  %v8008_v29 = vrot.slane %v4017_v6, 5  ;;  %vm9682_vm5 = vmmov %vm9681_vm11  ;;  %v1713_v15 = vshll.u32 %v8015_v57, 16  ;;  %v8041_v9 = vrot.slane %v1697_v14, 4 }
 0x155   : > { %3545 = vst.msk [vmem:[#allocation3 + $0x20] sm:$0xf] %vm9677_vm10, %v3457_v47  ;;  %v3459_v55 = vpop.permute.xlu0 %3458  ;;  %v805_v47 = vadd.s32 160, %v6467_v1  ;;  %v4014_v45 = vor.u32 %v4013_v2, %v7994_v48  ;;  %vm9683_vm6 = vmmov %vm9682_vm5  ;;  %v3620_v6 = vsel %vm6473_vm3, %v3588_v53, 0  ;;  %v4000_v14 = vsel %vm6580_vm12, %v8004_v63, %v7956_v39  ;;  %v395_v2 = vld [vmem:[%s6491_s8 + $0x74] sm:$0xf] }
 0x156   : > { %3153 = vrot.lane.b32.xlu1 %v2994_v44, %s6405_s12  ;;  %3546 = vst.msk [vmem:[#allocation3 + $0x24] sm:$0xf] %vm9679_vm15, %v3459_v55  ;;  %v4429_v44 = vrot.slane %v4330_v13, 5  ;;  %v8006_v55 = vld [vmem:[#allocation2 + $0x60] sm:$0xf]  ;;  %v8025_v13 = vrot.slane %v4331_v60, 5  ;;  %v4024_v17 = vor.u32 %v4023_v31, %v8008_v29  ;;  %vm9686_vm15 = vmmov %vm9682_vm5  ;;  %v4010_v27 = vsel %vm6580_vm12, %v8002_v58, %v7994_v48 }
 0x157   : > { %3472 = vrot.lane.b32.xlu0 %v3394_v61, %s6406_s13  ;;  %v968_v61 = vand.u32 15, %v806_v8  ;;  %v655_v8 = vor.u32 %v653_v16, %v8019_v33  ;;  %v8081_v60 = vld [vmem:[%s6491_s8 + $0x78] sm:$0xf]  ;;  %v1286_v31 = vld [vmem:[#allocation2 + $0x54] sm:$0xf]  ;;  %v662_v58 = vshll.u32 %v395_v2, 16 }
 0x158   : > { %v3461_v26 = vpop.permute.xlu1 %3460  ;;  %v8013_v50 = vsel %vm6727_vm14, %v4428_v40, %v4429_v44  ;;  %v8023_v38 = vrot.slane %v4429_v44, 4  ;;  %v4027_v40 = vshll.u32 %v8006_v55, 16  ;;  %v4025_v16 = vrot.slane %v4024_v17, 4 }
 0x159   : > { %3547 = vst.msk [vmem:[#allocation3 + $0x28] sm:$0xf] %vm9677_vm10, %v3461_v26  ;;  %v3463_v59 = vpop.permute.xlu0 %3462  ;;  %vm8029_vm9 = vcmp.ne.s32.totalorder %v968_v61, 15  ;;  %v656_v34 = vsel %vm9614_vm0, %v648_v54, %v655_v8  ;;  %v1480_v54 = vld [vmem:[#allocation2 + $0x5c] sm:$0xf]  ;;  %v1414_v53 = vsel %vm6473_vm3, %v1286_v31, 0 }
 0x15a   : > { %3474 = vrot.lane.b32.xlu1 %v3397_v21, %s6406_s13  ;;  %3548 = vst.msk [vmem:[#allocation3 + $0x2c] sm:$0xf] %vm9680_vm8, %v3463_v59  ;;  %v1707_v21 = vshrl.u32 %v7964_v28, 16  ;;  %v8036_v59 = vrot.slane %v1703_v36, 5  ;;  %v4433_v44 = vsel %vm6727_vm14, %v8023_v38, %v8025_v13  ;;  %v4299_v36 = vld [vmem:[#allocation2 + $0x5c] sm:$0xf]  ;;  %vm2064_vm10 = vmpackc.low %vm8029_vm9, %vm8029_vm9 }
 0x15b   : > { %3476 = vrot.lane.b32.xlu0 %v3400_v11, %s6406_s13  ;;  %v961_v11 = vand.u32 15, %v805_v47  ;;  %v8074_v39 = vrot.slane %v4027_v40, 5  ;;  %v4015_v47 = vrot.slane %v4014_v45, 4  ;;  %v8111_v40 = vsel %vm2224_vm13, %v4299_v36, 0 }
 0x15c   : > { %v3682_v5 = vpop.permute.xlu1 %3681  ;;  %v8046_v0 = vrot.slane %v1707_v21, 4  ;;  %v1285_v21 = vld [vmem:[#allocation2 + $0x50] sm:$0xf]  ;;  %v657_v41 = vrot.slane %v8019_v33, 4  ;;  %v668_v17 = vshrl.u32 %v8081_v60, 16  ;;  %v671_v36 = vshll.u32 %v8081_v60, 16 }
 0x15d   : > { %3770 = vst.msk [vmem:[#allocation3 + $0x20] sm:$0xf] %vm9681_vm11, %v3682_v5  ;;  %v3684_v52 = vpop.permute.xlu0 %3683  ;;  %vm8066_vm8 = vcmp.ne.s32.totalorder %v961_v11, 0  ;;  %vm9689_vm11 = vcmask 27648   ;;  %v4020_v8 = vsel %vm6580_vm12, %v4015_v47, %v8008_v29 }
 0x15e   : > { %3478 = vrot.lane.b32.xlu1 %v3403_v49, %s6406_s13  ;;  %3771 = vst.msk [vmem:[#allocation3 + $0x24] sm:$0xf] %vm9682_vm5, %v3684_v52  ;;  %v5247_v49 = vld [vmem:[%s9516_s4] sm:$0xf]  ;;  %vm9690_vm5 = vcmask 257248   ;;  %v1700_v52 = vor.u32 %v8041_v9, %v7806_v23  ;;  %v659_v23 = vshrl.u32 %v395_v2, 16  ;;  %v1710_v11 = vor.u32 %v8046_v0, %v8036_v59 }
 0x15f   : > { %3697 = vrot.lane.b32.xlu0 %v3617_v7, %s6407_s14  ;;  %748 = vst.msk [vmem:[#allocation2 + $0x78] sm:$0xf] %vm9689_vm11, %v656_v34  ;;  %vm9693_vm11 = vmmov %vm9690_vm5  ;;  %v4300_v0 = vld [vmem:[#allocation2 + $0x60] sm:$0xf]  ;;  %v1723_v34 = vshll.u32 %v1480_v54, 16 }
 0x160   : > { %v3686_v26 = vpop.permute.xlu1 %3685  ;;  %v1701_v2 = vrot.slane %v1700_v52, 4  ;;  %v1711_v32 = vrot.slane %v1710_v11, 4  ;;  %v4333_v60 = vsel %vm7843_vm2, %v4300_v0, 0  ;;  %v8178_v11 = vld [vmem:[#allocation2 + $0x60] sm:$0xf] }
 0x161   : > { %3772 = vst.msk [vmem:[#allocation3 + $0x28] sm:$0xf] %vm9683_vm6, %v3686_v26  ;;  %v3688_v7 = vpop.permute.xlu0 %3687  ;;  %vm8076_vm6 = vcmp.ne.s32.totalorder %v982_v43, 15  ;;  %v2096_v26 = vsel %vm2064_vm10, 65537, %v6401_v4  ;;  %vm9696_vm10 = vcmask 27648   ;;  %v8163_v31 = vrot.slane %v1723_v34, 5 }
 0x162   : > { %3699 = vrot.lane.b32.xlu1 %v3618_v62, %s6407_s14  ;;  %3773 = vst.msk [vmem:[#allocation3 + $0x2c] sm:$0xf] %vm9686_vm15, %v3688_v7  ;;  %v1717_v62 = vshrl.u32 %v8015_v57, 16  ;;  %vm5384_vm15 = vcmask 1043456   ;;  %vm2066_vm9 = vmpackc.low %vm8076_vm6, %vm8076_vm6  ;;  %v661_v7 = vrot.slane %v659_v23, 7  ;;  %vm9702_vm6 = vcmask 290048  }
 0x163   : > { %3701 = vrot.lane.b32.xlu0 %v3619_v24, %s6407_s14  ;;  %v807_v24 = vadd.s32 176, %v6467_v1  ;;  %6302 = vmatprep.subr.msk.bf16.mxu1 %vm5384_vm15, %v5247_v49  ;;  %v5386_v63 = vsel %vm5384_vm15, %v5247_v49, 0  ;;  %1446 = vst.msk [vmem:[#allocation3 + $0x54] sm:$0xf] %vm9696_vm10, %v1414_v53  ;;  %vm9698_vm13 = vmmov %vm9696_vm10  ;;  %v1727_v49 = vshrl.u32 %v1480_v54, 16  ;;  %v2098_v29 = vsel %vm2066_vm9, 65537, %v6401_v4 }
 0x164   : > { %v4168_v37 = vpop.permute.xlu1 %4167  ;;  %6268 = vmatpush3.bf16.msra.mxu1 %v5386_v63  ;;  %v664_v33 = vor.u32 %v662_v58, %v661_v7  ;;  %v1719_v47 = vrot.slane %v1717_v62, 4  ;;  %v4435_v57 = vrot.slane %v8111_v40, 5  ;;  %v2178_v63 = vrot.slane %v2098_v29, 7  ;;  %vm9703_vm9 = vmmov %vm9696_vm10  ;;  %v1287_v58 = vld [vmem:[#allocation2 + $0x58] sm:$0xf] }
 0x165   : > { %4256 = vst.msk [vmem:[#allocation3 + $0x20] sm:$0xf] %vm9690_vm5, %v4168_v37  ;;  %v4170_v61 = vpop.permute.xlu0 %4169  ;;  %vm8100_vm5 = vmpackc.low %vm8066_vm8, %vm8066_vm8  ;;  %v975_v28 = vand.u32 15, %v807_v24  ;;  %v2172_v37 = vrot.slane %v2096_v26, 7  ;;  %v1715_v24 = vrot.slane %v1713_v15, 5  ;;  %v1416_v23 = vsel %vm6473_vm3, %v1288_v20, 0 }
 0x166   : > { %3703 = vrot.lane.b32.xlu1 %v3620_v6, %s6407_s14  ;;  %4257 = vst.msk [vmem:[#allocation3 + $0x24] sm:$0xf] %vm9693_vm11, %v4170_v61  ;;  %v1413_v43 = vsel %vm8100_vm5, %v1285_v21, 0  ;;  %vm9697_vm8 = vmmov %vm9693_vm11  ;;  %v4030_v6 = vsel %vm6580_vm12, %v4025_v16, %v8074_v39  ;;  %v666_v16 = vrot.slane %v661_v7, 4  ;;  %v1729_v21 = vrot.slane %v1727_v49, 4 }
 0x167   : > { %4183 = vrot.lane.b32.xlu0 %v4000_v14, %s6408_s15  ;;  %1445 = vst.msk [vmem:[#allocation3 + $0x50] sm:$0xf] %vm9698_vm13, %v1413_v43  ;;  %vm9699_vm15 = vmmov %vm9697_vm8  ;;  %v8137_v14 = vrot.slane %v668_v17, 7  ;;  %vm8145_vm11 = vcmp.ne.s32.totalorder %v975_v28, 0  ;;  %v8159_v62 = vsel %vm6659_vm1, %v6650_v22, %v2172_v37  ;;  %v2174_v52 = vrot.slane %v2172_v37, 4 }
 0x168   : > { %v4172_v45 = vpop.permute.xlu1 %4171  ;;  %vm9704_vm2 = vmmov %vm9702_vm6  ;;  %v1706_v28 = vsel %vm6580_vm12, %v1701_v2, %v8036_v59  ;;  %v1720_v43 = vor.u32 %v1719_v47, %v1715_v24  ;;  %v8197_v7 = vrot.slane %v4333_v60, 5  ;;  %v8205_v17 = vsel %vm6659_vm1, %v6650_v22, %v2178_v63  ;;  %v1968_v34 = vld [vmem:[#allocation2 + $0x58] sm:$0xf] }
 0x169   : > { %4258 = vst.msk [vmem:[#allocation3 + $0x28] sm:$0xf] %vm9697_vm8, %v4172_v45  ;;  %v4174_v9 = vpop.permute.xlu0 %4173  ;;  %vm8168_vm10 = vmpackc.low %vm8145_vm11, %vm8145_vm11  ;;  %v673_v26 = vor.u32 %v671_v36, %v8137_v14  ;;  %v4434_v45 = vrot.slane %v8025_v13, 4  ;;  %v2176_v59 = vsel %vm6659_vm1, %v2174_v52, %v6503_v19  ;;  %v1716_v38 = vsel %vm6580_vm12, %v1711_v32, %v1715_v24  ;;  %v1969_v36 = vld [vmem:[#allocation2 + $0x5c] sm:$0xf] }
 0x16a   : > { %4185 = vrot.lane.b32.xlu1 %v4010_v27, %s6408_s15  ;;  %4259 = vst.msk [vmem:[#allocation3 + $0x2c] sm:$0xf] %vm9699_vm15, %v4174_v9  ;;  %v665_v27 = vsel %vm9614_vm0, %v657_v41, %v664_v33  ;;  %vm9707_vm8 = vmmov %vm9703_vm9  ;;  %v1415_v40 = vsel %vm8168_vm10, %v1287_v58, 0  ;;  %vm2226_vm15 = vcmp.ne.s16.totalorder %v8159_v62, 0  ;;  %v2180_v9 = vrot.slane %v2178_v63, 4 }
 0x16b   : > { %4187 = vrot.lane.b32.xlu0 %v4020_v8, %s6408_s15  ;;  %749 = vst.msk [vmem:[#allocation2 + $0x7c] sm:$0xf] %vm9703_vm9, %v665_v27  ;;  %vm9708_vm13 = vmmov %vm9704_vm2  ;;  %v1967_v8 = vld [vmem:[#allocation2 + $0x54] sm:$0xf]  ;;  %v4437_v13 = vrot.slane %v4435_v57, 4  ;;  %v4436_v37 = vsel %vm6727_vm14, %v4434_v45, %v4435_v57  ;;  %v1721_v29 = vrot.slane %v1720_v43, 4 }
 0x16c   : > { %v4493_v5 = vpop.permute.xlu1 %4492  ;;  %1448 = vst.msk [vmem:[#allocation3 + $0x5c] sm:$0xf] %vm9707_vm8, %v1416_v23  ;;  %vm9709_vm11 = vmmov %vm9707_vm8  ;;  %v2259_v49 = vsel %vm2226_vm15, %v1967_v8, 0  ;;  %v2182_v2 = vsel %vm6659_vm1, %v2180_v9, %v6503_v19  ;;  %v2368_v52 = vrot.slane %v7873_v18, 4  ;;  %v1970_v63 = vld [vmem:[#allocation2 + $0x60] sm:$0xf] }
 0x16d   : > { %4581 = vst.msk [vmem:[#allocation3 + $0x20] sm:$0xf] %vm9702_vm6, %v4493_v5  ;;  %v4495_v15 = vpop.permute.xlu0 %4494  ;;  %vm9710_vm6 = vmmov %vm9707_vm8  ;;  %vm2228_vm8 = vcmp.ne.s16.totalorder %v8205_v17, 0  ;;  %v4439_v47 = vsel %vm6727_vm14, %v4437_v13, %v8197_v7  ;;  %v2369_v60 = vrot.slane %v2259_v49, 5  ;;  %v1726_v57 = vsel %vm6580_vm12, %v1721_v29, %v8163_v31  ;;  %v2779_v18 = vld [vmem:[#allocation2 + $0x5c] sm:$0xf] }
 0x16e   : > { %4189 = vrot.lane.b32.xlu1 %v4030_v6, %s6408_s15  ;;  %4582 = vst.msk [vmem:[#allocation3 + $0x24] sm:$0xf] %vm9704_vm2, %v4495_v15  ;;  %vm9711_vm9 = vmmov %vm9704_vm2  ;;  %v1733_v6 = vshll.u32 %v8178_v11, 16  ;;  %vm8219_vm2 = vcmp.ne.s16.totalorder %v2176_v59, 0  ;;  %v2261_v15 = vsel %vm2228_vm8, %v1969_v36, 0  ;;  %v3001_v59 = vshll.u32 %v2779_v18, 16 }
 0x16f   : > { %4508 = vrot.lane.b32.xlu0 %v8013_v50, %s6409_s16  ;;  %v674_v50 = vsel %vm9614_vm0, %v666_v16, %v673_v26  ;;  %1447 = vst.msk [vmem:[#allocation3 + $0x58] sm:$0xf] %vm9709_vm11, %v1415_v40  ;;  %v2260_v16 = vsel %vm8219_vm2, %v1968_v34, 0  ;;  %v2371_v58 = vrot.slane %v2369_v60, 4  ;;  %vm9716_vm11 = vcmask 126048  }
 0x170   : > { %v4497_v53 = vpop.permute.xlu1 %4496  ;;  %750 = vst.msk [vmem:[#allocation2 + $0x80] sm:$0xf] %vm9710_vm6, %v674_v50  ;;  %v8232_v32 = vrot.slane %v1733_v6, 5  ;;  %v2370_v43 = vsel %vm6727_vm14, %v2368_v52, %v2369_v60  ;;  %v397_v9 = vld [vmem:[%s6491_s8 + $0x7c] sm:$0xf]  ;;  %vm9717_vm6 = vmmov %vm9716_vm11 }
 0x171   : > { %4583 = vst.msk [vmem:[#allocation3 + $0x28] sm:$0xf] %vm9708_vm13, %v4497_v53  ;;  %v4499_v41 = vpop.permute.xlu0 %4498  ;;  %vm8245_vm13 = vcmp.ne.s16.totalorder %v2182_v2, 0  ;;  %v2375_v53 = vrot.slane %v2261_v15, 5  ;;  %v677_v34 = vshrl.u32 %v397_v9, 16  ;;  %v680_v49 = vshll.u32 %v397_v9, 16 }
 0x172   : > { %4510 = vrot.lane.b32.xlu1 %v4433_v44, %s6409_s16  ;;  %4584 = vst.msk [vmem:[#allocation3 + $0x2c] sm:$0xf] %vm9711_vm9, %v4499_v41  ;;  %v1730_v44 = vor.u32 %v1729_v21, %v8163_v31  ;;  %v2372_v31 = vrot.slane %v2260_v16, 5  ;;  %v2262_v40 = vsel %vm8245_vm13, %v1970_v63, 0  ;;  %v2780_v41 = vld [vmem:[#allocation2 + $0x60] sm:$0xf]  ;;  %vm9718_vm9 = vmmov %vm9717_vm6 }
 0x173   : > { %1857 = vrot.lane.b32.xlu0 %v1706_v28, %s6402_s9  ;;  %v2995_v28 = vshrl.u32 %v7902_v10, 16  ;;  %v2377_v13 = vrot.slane %v2375_v53, 4  ;;  %v3005_v10 = vshrl.u32 %v2779_v18, 16  ;;  %v3011_v29 = vshll.u32 %v2780_v41, 16  ;;  %v2553_v2 = vld [vmem:[#allocation2 + $0x58] sm:$0xf] }
 0x174   : > { %v2429_v0 = vpop.permute.xlu1 %2428  ;;  %v1731_v61 = vrot.slane %v1730_v44, 4  ;;  %v2374_v8 = vrot.slane %v2372_v31, 4  ;;  %v8267_v44 = vrot.slane %v2262_v40, 5  ;;  %v3015_v36 = vshrl.u32 %v2780_v41, 16  ;;  %v2554_v63 = vld [vmem:[#allocation2 + $0x5c] sm:$0xf] }
 0x175   : > { %2513 = vst.msk [vmem:[#allocation3 + $0x30] sm:$0xf] %vm9541_vm7, %v2429_v0  ;;  %v2431_v5 = vpop.permute.xlu0 %2430  ;;  %v6347_v24 = vld [vmem:[#allocation3 + $0x20] sm:$0xff]   ;;  %v2781_v0 = vld [vmem:[#allocation2 + $0x64] sm:$0xf]  ;;  %v679_v60 = vrot.slane %v677_v34, 7 }
 0x176   : > { %1859 = vrot.lane.b32.xlu1 %v1716_v38, %s6402_s9  ;;  %2514 = vst.msk [vmem:[#allocation3 + $0x34] sm:$0xf] %vm9541_vm7, %v2431_v5  ;;  %6243 = vmatprep.mubr.msk.bf16.mxu0 %vm4744_vm4, %v6347_v24  ;;  %v1736_v23 = vsel %vm6580_vm12, %v1731_v61, %v8232_v32  ;;  %v2373_v38 = vsel %vm6727_vm14, %v2371_v58, %v2372_v31  ;;  %v2997_v5 = vrot.slane %v2995_v28, 4  ;;  %v675_v61 = vrot.slane %v8137_v14, 4  ;;  %v8295_v41 = vld [vmem:[#allocation2 + $0x68] sm:$0xf] }
 0x177   : > { %4512 = vrot.lane.b32.xlu0 %v4436_v37, %s6409_s16  ;;  %v2376_v37 = vsel %vm6727_vm14, %v2374_v8, %v2375_v53  ;;  %v3007_v16 = vrot.slane %v3005_v10, 4  ;;  %v3021_v15 = vshll.u32 %v2781_v0, 16  ;;  %v2585_v14 = vsel %vm8100_vm5, %v2553_v2, 0  ;;  %v2555_v53 = vld [vmem:[#allocation2 + $0x60] sm:$0xf] }
 0x178   : > { %v2433_v27 = vpop.permute.xlu1 %2432  ;;  %v3017_v58 = vrot.slane %v3015_v36, 4  ;;  %v3265_v8 = vld [vmem:[#allocation2 + $0x5c] sm:$0xf]  ;;  %v2587_v9 = vsel %vm8168_vm10, %v2555_v53, 0  ;;  %v752_v10 = vld [vmem:[#allocation2 + $0x88] sm:$0x1] }
 0x179   : > { %2515 = vst.msk [vmem:[#allocation3 + $0x38] sm:$0xf] %vm9541_vm7, %v2433_v27  ;;  %v2435_v21 = vpop.permute.xlu0 %2434  ;;  %v6348_v26 = vld [vmem:[#allocation3 + $0x28] sm:$0xff]   ;;  %v2379_v27 = vsel %vm6727_vm14, %v2377_v13, %v8267_v44  ;;  %v3023_v28 = vrot.slane %v3021_v15, 5  ;;  %v3404_v53 = vrot.slane %v7962_v51, 4 }
 0x17a   : > { %4514 = vrot.lane.b32.xlu1 %v4439_v47, %s6409_s16  ;;  %2516 = vst.msk [vmem:[#allocation3 + $0x3c] sm:$0xf] %vm9541_vm7, %v2435_v21  ;;  %6244 = vmatmul.mubr.msk.bf16.gmra.mxu0 %vm4744_vm4, %v6348_v26  ;;  %v8274_v47 = vrot.slane %v3001_v59, 5  ;;  %v682_v21 = vor.u32 %v680_v49, %v679_v60  ;;  %v3013_v26 = vrot.slane %v3011_v29, 5  ;;  %v684_v59 = vrot.slane %v679_v60, 4 }
 0x17b   : > { %1861 = vrot.lane.b32.xlu0 %v1726_v57, %s6402_s9  ;;  %v3025_v57 = vshrl.u32 %v2781_v0, 16  ;;  %v3031_v29 = vshll.u32 %v8295_v41, 16 }
 0x17c   : > { %v2654_v45 = vpop.permute.xlu1 %2653  ;;  %v683_v18 = vsel %vm9614_vm0, %v675_v61, %v682_v21  ;;  %v3008_v40 = vor.u32 %v3007_v16, %v8274_v47  ;;  %v3018_v13 = vor.u32 %v3017_v58, %v3013_v26  ;;  %v3267_v16 = vld [vmem:[#allocation2 + $0x64] sm:$0xf] }
 0x17d   : > { %2738 = vst.msk [vmem:[#allocation3 + $0x30] sm:$0xf] %vm9716_vm11, %v2654_v45  ;;  %v2656_v50 = vpop.permute.xlu0 %2655  ;;  %vm9719_vm11 = vmmov %vm9717_vm6  ;;  %v2586_v45 = vsel %vm6473_vm3, %v2554_v63, 0  ;;  %v8319_v63 = vrot.slane %v3031_v29, 5 }
 0x17e   : > { %1863 = vrot.lane.b32.xlu1 %v1736_v23, %s6402_s9  ;;  %2739 = vst.msk [vmem:[#allocation3 + $0x34] sm:$0xf] %vm9717_vm6, %v2656_v50  ;;  %vm9720_vm6 = vcmask 158848   ;;  %v2998_v23 = vor.u32 %v2997_v5, %v7923_v42  ;;  %v2556_v50 = vld [vmem:[#allocation2 + $0x64] sm:$0xf]  ;;  %v3009_v49 = vrot.slane %v3008_v40, 4 }
 0x17f   : > { %2444 = vrot.lane.b32.xlu0 %v2370_v43, %s6403_s10  ;;  %v3027_v43 = vrot.slane %v3025_v57, 4  ;;  %v2588_v34 = vsel %vm6473_vm3, %v2556_v50, 0  ;;  %v3298_v5 = vsel %vm2226_vm15, %v3265_v8, 0  ;;  %v3019_v60 = vrot.slane %v3018_v13, 4 }
 0x180   : > { %v2658_v6 = vpop.permute.xlu1 %2657  ;;  %v3014_v57 = vsel %vm6580_vm12, %v3009_v49, %v3013_v26  ;;  %v3405_v21 = vrot.slane %v3298_v5, 5 }
 0x181   : > { %2740 = vst.msk [vmem:[#allocation3 + $0x38] sm:$0xf] %vm9718_vm9, %v2658_v6  ;;  %v2660_v24 = vpop.permute.xlu0 %2659  ;;  %vm9721_vm9 = vmmov %vm9720_vm6  ;;  %v755_v6 = vld [vmem:[%s6480_s28 + $0x8] sm:$0xf]  ;;  %v3024_v26 = vsel %vm6580_vm12, %v3019_v60, %v3023_v28 }
 0x182   : > { %2446 = vrot.lane.b32.xlu1 %v2373_v38, %s6403_s10  ;;  %2741 = vst.msk [vmem:[#allocation3 + $0x3c] sm:$0xf] %vm9719_vm11, %v2660_v24  ;;  %vm9722_vm11 = vcmask 27648   ;;  %v2999_v38 = vrot.slane %v2998_v23, 4  ;;  %v758_v2 = vshrl.u32 %v755_v6, 16  ;;  %v3300_v23 = vsel %vm2228_vm8, %v3267_v16, 0 }
 0x183   : > { %2448 = vrot.lane.b32.xlu0 %v2376_v37, %s6403_s10  ;;  %751 = vst.msk [vmem:[#allocation2 + $0x84] sm:$0xf] %vm9722_vm11, %v683_v18  ;;  %v3028_v37 = vor.u32 %v3027_v43, %v3023_v28  ;;  %vm9724_vm11 = vnez %v9549_v12  ;;  %v3268_v18 = vld [vmem:[#allocation2 + $0x68] sm:$0xf]  ;;  %v3815_v43 = vld [vmem:[#allocation2 + $0x64] sm:$0xf]  ;;  %v3406_v13 = vsel %vm6727_vm14, %v3404_v53, %v3405_v21 }
 0x184   : > { %v3140_v52 = vpop.permute.xlu1 %3139  ;;  %v753_v24 = vsel %vm9724_vm11, %v684_v59, %v752_v10  ;;  %v3004_v61 = vsel %vm6580_vm12, %v2999_v38, %v8274_v47  ;;  %v8326_v58 = vrot.slane %v758_v2, 7  ;;  %v3407_v50 = vrot.slane %v3405_v21, 4 }
 0x185   : > { %3224 = vst.msk [vmem:[#allocation3 + $0x30] sm:$0xf] %vm9720_vm6, %v3140_v52  ;;  %v3142_v31 = vpop.permute.xlu0 %3141  ;;  %754 = vst [vmem:[#allocation2 + $0x88] sm:$0x1] %v753_v24  ;;  %v3029_v52 = vrot.slane %v3028_v37, 4  ;;  %v3411_v59 = vrot.slane %v3300_v23, 5 }
 0x186   : > { %2450 = vrot.lane.b32.xlu1 %v2379_v27, %s6403_s10  ;;  %3225 = vst.msk [vmem:[#allocation3 + $0x34] sm:$0xf] %vm9721_vm9, %v3142_v31  ;;  %vm9723_vm9 = vmmov %vm9720_vm6  ;;  %v3266_v27 = vld [vmem:[#allocation2 + $0x60] sm:$0xf]  ;;  %v761_v31 = vshll.u32 %v755_v6, 16  ;;  %v4037_v6 = vshll.u32 %v3815_v43, 16 }
 0x187   : > { %2669 = vrot.lane.b32.xlu0 %v2585_v14, %s6404_s11  ;;  %v3299_v47 = vsel %vm8219_vm2, %v3266_v27, 0  ;;  %v4041_v37 = vshrl.u32 %v3815_v43, 16  ;;  %v3413_v24 = vrot.slane %v3411_v59, 4  ;;  %v3817_v27 = vld [vmem:[#allocation2 + $0x6c] sm:$0xf]  ;;  %v810_v16 = vadd.s32 200, %v6467_v1 }
 0x188   : > { %v3144_v42 = vpop.permute.xlu1 %3143  ;;  %v763_v8 = vor.u32 %v761_v31, %v8326_v58  ;;  %v3408_v28 = vrot.slane %v3299_v47, 5  ;;  %v8359_v21 = vrot.slane %v4037_v6, 5  ;;  %v3589_v47 = vld [vmem:[#allocation2 + $0x60] sm:$0xf]  ;;  %v809_v43 = vadd.s32 192, %v6467_v1 }
 0x189   : > { %3226 = vst.msk [vmem:[#allocation3 + $0x38] sm:$0xf] %vm9720_vm6, %v3144_v42  ;;  %v3146_v0 = vpop.permute.xlu0 %3145  ;;  %vm9725_vm6 = vcmask 191648   ;;  %v3034_v42 = vsel %vm6580_vm12, %v3029_v52, %v8319_v63  ;;  %v4043_v23 = vrot.slane %v4041_v37, 4  ;;  %v781_v37 = vld [vmem:[#allocation2 + $0x90] sm:$0x1] }
 0x18a   : > { %2671 = vrot.lane.b32.xlu1 %v2586_v45, %s6404_s11  ;;  %3227 = vst.msk [vmem:[#allocation3 + $0x3c] sm:$0xf] %vm9723_vm9, %v3146_v0  ;;  %vm9726_vm9 = vmmov %vm9725_vm6  ;;  %v4031_v45 = vshrl.u32 %v8006_v55, 16  ;;  %v3301_v55 = vsel %vm8245_vm13, %v3268_v18, 0  ;;  %v3410_v10 = vrot.slane %v3408_v28, 4  ;;  %v3409_v5 = vsel %vm6727_vm14, %v3407_v50, %v3408_v28 }
 0x18b   : > { %2673 = vrot.lane.b32.xlu0 %v2587_v9, %s6404_s11  ;;  %v3816_v9 = vld [vmem:[#allocation2 + $0x68] sm:$0xf]  ;;  %v8352_v2 = vrot.slane %v3301_v55, 5  ;;  %v996_v28 = vand.u32 15, %v810_v16  ;;  %v812_v55 = vadd.s32 216, %v6467_v1  ;;  %v1743_v16 = vshll.u32 %v1482_v35, 16 }
 0x18c   : > { %v3465_v36 = vpop.permute.xlu1 %3464  ;;  %v777_v38 = vld [vmem:[#allocation2 + $0x88] sm:$0xf]  ;;  %v4033_v29 = vrot.slane %v4031_v45, 4  ;;  %v3412_v52 = vsel %vm6727_vm14, %v3410_v10, %v3411_v59  ;;  %v4057_v45 = vshll.u32 %v3817_v27, 16  ;;  %v3621_v59 = vsel %vm8100_vm5, %v3589_v47, 0 }
 0x18d   : > { %3549 = vst.msk [vmem:[#allocation3 + $0x30] sm:$0xf] %vm9725_vm6, %v3465_v36  ;;  %v3467_v15 = vpop.permute.xlu0 %3466  ;;  %v3415_v18 = vsel %vm6727_vm14, %v3413_v24, %v8352_v2  ;;  %v4044_v10 = vor.u32 %v4043_v23, %v8359_v21  ;;  %vm8391_vm5 = vcmp.ne.s32.totalorder %v996_v28, 15 }
 0x18e   : > { %2675 = vrot.lane.b32.xlu1 %v2588_v34, %s6404_s11  ;;  %3550 = vst.msk [vmem:[#allocation3 + $0x34] sm:$0xf] %vm9726_vm9, %v3467_v15  ;;  %vm9727_vm9 = vmmov %vm9725_vm6  ;;  %v756_v34 = vld [vmem:[%s6480_s28 + $0xc] sm:$0xf]  ;;  %v4034_v31 = vor.u32 %v4033_v29, %v8074_v39 }
 0x18f   : > { %3155 = vrot.lane.b32.xlu0 %v3004_v61, %s6405_s12  ;;  %v766_v36 = vshrl.u32 %v756_v34, 16  ;;  %v4047_v61 = vshll.u32 %v3816_v9, 16 }
 0x190   : > { %v3469_v14 = vpop.permute.xlu1 %3468 }
 0x191   : > { %3551 = vst.msk [vmem:[#allocation3 + $0x38] sm:$0xf] %vm9725_vm6, %v3469_v14  ;;  %v3471_v40 = vpop.permute.xlu0 %3470  ;;  %vm9728_vm6 = vcmask 224448   ;;  %v768_v15 = vrot.slane %v766_v36, 7  ;;  %v8370_v50 = vrot.slane %v4047_v61, 5  ;;  %v4035_v36 = vrot.slane %v4034_v31, 4 }
 0x192   : > { %3157 = vrot.lane.b32.xlu1 %v3014_v57, %s6405_s12  ;;  %3552 = vst.msk [vmem:[#allocation3 + $0x3c] sm:$0xf] %vm9727_vm9, %v3471_v40  ;;  %vm9729_vm9 = vnez %v9545_v25  ;;  %vm9730_vm7 = vmmov %vm9728_vm6  ;;  %v4051_v25 = vshrl.u32 %v3816_v9, 16  ;;  %v769_v57 = vshll.u32 %v756_v34, 16  ;;  %v4061_v40 = vshrl.u32 %v3817_v27, 16 }
 0x193   : > { %3159 = vrot.lane.b32.xlu0 %v3024_v26, %s6405_s12  ;;  %v778_v0 = vsel %vm9729_vm9, %v763_v8, %v777_v38  ;;  %v764_v26 = vrot.slane %v8326_v58, 4  ;;  %vm9732_vm9 = vcmask 257248   ;;  %v1737_v9 = vshrl.u32 %v8178_v11, 16  ;;  %v3592_v11 = vld [vmem:[#allocation2 + $0x6c] sm:$0xf] }
 0x194   : > { %v3690_v51 = vpop.permute.xlu1 %3689  ;;  %779 = vst [vmem:[#allocation2 + $0x88] sm:$0xf] %v778_v0  ;;  %v771_v53 = vor.u32 %v769_v57, %v768_v15  ;;  %v4053_v39 = vrot.slane %v4051_v25, 4  ;;  %v773_v6 = vrot.slane %v768_v15, 4  ;;  %v8385_v0 = vrot.slane %v4057_v45, 5 }
 0x195   : > { %3774 = vst.msk [vmem:[#allocation3 + $0x30] sm:$0xf] %vm9728_vm6, %v3690_v51  ;;  %v3692_v49 = vpop.permute.xlu0 %3691  ;;  %v4301_v51 = vld [vmem:[#allocation2 + $0x64] sm:$0xf]  ;;  %v4063_v34 = vrot.slane %v4061_v40, 4  ;;  %v1747_v15 = vshrl.u32 %v1482_v35, 16  ;;  %v4040_v62 = vsel %vm6580_vm12, %v4035_v36, %v8359_v21 }
 0x196   : > { %3161 = vrot.lane.b32.xlu1 %v3034_v42, %s6405_s12  ;;  %3775 = vst.msk [vmem:[#allocation3 + $0x34] sm:$0xf] %vm9730_vm7, %v3692_v49  ;;  %vm9731_vm7 = vmmov %vm9728_vm6  ;;  %v3590_v42 = vld [vmem:[#allocation2 + $0x64] sm:$0xf]  ;;  %v772_v58 = vsel %vm9614_vm0, %v764_v26, %v771_v53  ;;  %v989_v49 = vand.u32 15, %v809_v43  ;;  %v4054_v24 = vor.u32 %v4053_v39, %v8370_v50  ;;  %v1010_v57 = vand.u32 15, %v812_v55 }
 0x197   : > { %3480 = vrot.lane.b32.xlu0 %v3406_v13, %s6406_s13  ;;  %v3591_v13 = vld [vmem:[#allocation2 + $0x68] sm:$0xf]  ;;  %vm9734_vm0 = vmmov %vm9732_vm9  ;;  %v3622_v48 = vsel %vm6473_vm3, %v3590_v42, 0  ;;  %v4334_v47 = vsel %vm2226_vm15, %v4301_v51, 0  ;;  %v3624_v12 = vsel %vm6473_vm3, %v3592_v11, 0  ;;  %v4064_v54 = vor.u32 %v4063_v34, %v8385_v0 }
 0x198   : > { %v3694_v60 = vpop.permute.xlu1 %3693  ;;  %v3623_v25 = vsel %vm8168_vm10, %v3591_v13, 0  ;;  %v4302_v27 = vld [vmem:[#allocation2 + $0x68] sm:$0xf]  ;;  %vm2068_vm10 = vmpackc.low %vm8391_vm5, %vm8391_vm5  ;;  %v4055_v53 = vrot.slane %v4054_v24, 4  ;;  %v811_v45 = vadd.s32 208, %v6467_v1  ;;  %vm9741_vm15 = vcmask 290048  }
 0x199   : > { %3776 = vst.msk [vmem:[#allocation3 + $0x38] sm:$0xf] %vm9728_vm6, %v3694_v60  ;;  %v3696_v14 = vpop.permute.xlu0 %3695  ;;  %vm9733_vm6 = vcmask 27648   ;;  %v782_v60 = vsel %vm9724_vm11, %v773_v6, %v781_v37  ;;  %vm8411_vm11 = vcmp.ne.s32.totalorder %v989_v49, 0  ;;  %v1483_v40 = vld [vmem:[#allocation2 + $0x68] sm:$0xf] }
 0x19a   : > { %3482 = vrot.lane.b32.xlu1 %v3409_v5, %s6406_s13  ;;  %3777 = vst.msk [vmem:[#allocation3 + $0x3c] sm:$0xf] %vm9731_vm7, %v3696_v14  ;;  %v8388_v5 = vld [vmem:[#allocation2 + $0x70] sm:$0xf]  ;;  %vm9737_vm7 = vmmov %vm9734_vm0  ;;  %v4045_v14 = vrot.slane %v4044_v10, 4  ;;  %v8423_v43 = vrot.slane %v1743_v16, 5  ;;  %v4060_v37 = vsel %vm6580_vm12, %v4055_v53, %v8385_v0 }
 0x19b   : > { %3484 = vrot.lane.b32.xlu0 %v3412_v52, %s6406_s13  ;;  %780 = vst.msk [vmem:[#allocation2 + $0x8c] sm:$0xf] %vm9733_vm6, %v772_v58  ;;  %783 = vst [vmem:[#allocation2 + $0x90] sm:$0x1] %v782_v60  ;;  %v4067_v23 = vshll.u32 %v8388_v5, 16  ;;  %v1739_v42 = vrot.slane %v1737_v9, 4 }
 0x19c   : > { %v4176_v8 = vpop.permute.xlu1 %4175  ;;  %vm8425_vm6 = vcmp.ne.s32.totalorder %v1010_v57, 15  ;;  %v4050_v33 = vsel %vm6580_vm12, %v4045_v14, %v8370_v50  ;;  %v4441_v28 = vrot.slane %v4334_v47, 5  ;;  %v2100_v58 = vsel %vm2068_vm10, 65537, %v6401_v4  ;;  %v1290_v51 = vld [vmem:[#allocation2 + $0x64] sm:$0xf] }
 0x19d   : > { %4260 = vst.msk [vmem:[#allocation3 + $0x30] sm:$0xf] %vm9732_vm9, %v4176_v8  ;;  %v4178_v38 = vpop.permute.xlu0 %4177  ;;  %vm9738_vm9 = vmmov %vm9734_vm0  ;;  %v1749_v8 = vrot.slane %v1747_v15, 4  ;;  %v1289_v55 = vld [vmem:[#allocation2 + $0x60] sm:$0xf]  ;;  %v4065_v50 = vrot.slane %v4064_v54, 4 }
 0x19e   : > { %3486 = vrot.lane.b32.xlu1 %v3415_v18, %s6406_s13  ;;  %4261 = vst.msk [vmem:[#allocation3 + $0x34] sm:$0xf] %vm9734_vm0, %v4178_v38  ;;  %v4335_v18 = vsel %vm8219_vm2, %v4302_v27, 0  ;;  %vm8442_vm2 = vmpackc.low %vm8411_vm11, %vm8411_vm11  ;;  %v8447_v9 = vrot.slane %v4067_v23, 5  ;;  %v1418_v38 = vsel %vm6473_vm3, %v1290_v51, 0  ;;  %v4440_v35 = vrot.slane %v8197_v7, 4 }
 0x19f   : > { %3705 = vrot.lane.b32.xlu0 %v3621_v59, %s6407_s14  ;;  %vm9746_vm0 = vmmov %vm9741_vm15  ;;  %v1417_v13 = vsel %vm8442_vm2, %v1289_v55, 0  ;;  %v1753_v6 = vshll.u32 %v1483_v40, 16  ;;  %v1484_v34 = vld [vmem:[#allocation2 + $0x6c] sm:$0xf]  ;;  %v1003_v49 = vand.u32 15, %v811_v45  ;;  %vm9749_vm10 = vcmask 60448  }
 0x1a0   : > { %v4180_v29 = vpop.permute.xlu1 %4179  ;;  %vm2070_vm5 = vmpackc.low %vm8425_vm6, %vm8425_vm6  ;;  %v1750_v7 = vor.u32 %v1749_v8, %v8423_v43  ;;  %v4303_v11 = vld [vmem:[#allocation2 + $0x6c] sm:$0xf]  ;;  %v2184_v36 = vrot.slane %v2100_v58, 7  ;;  %v4443_v61 = vrot.slane %v4441_v28, 4  ;;  %v8467_v60 = vrot.slane %v4335_v18, 5 }
 0x1a1   : > { %4262 = vst.msk [vmem:[#allocation3 + $0x38] sm:$0xf] %vm9737_vm7, %v4180_v29  ;;  %v4182_v52 = vpop.permute.xlu0 %4181  ;;  %vm9747_vm7 = vcmask 27648   ;;  %v1740_v29 = vor.u32 %v1739_v42, %v8232_v32  ;;  %vm9750_vm11 = vmmov %vm9746_vm0  ;;  %v1763_v27 = vshll.u32 %v1484_v34, 16  ;;  %v1767_v0 = vshrl.u32 %v1484_v34, 16 }
 0x1a2   : > { %3707 = vrot.lane.b32.xlu1 %v3622_v48, %s6407_s14  ;;  %4263 = vst.msk [vmem:[#allocation3 + $0x3c] sm:$0xf] %vm9738_vm9, %v4182_v52  ;;  %v1757_v48 = vshrl.u32 %v1483_v40, 16  ;;  %vm9748_vm9 = vmmov %vm9747_vm7  ;;  %v2102_v32 = vsel %vm2070_vm5, 65537, %v6401_v4  ;;  %v4442_v15 = vsel %vm6727_vm14, %v4440_v35, %v4441_v28  ;;  %v1755_v57 = vrot.slane %v1753_v6, 5 }
 0x1a3   : > { %3709 = vrot.lane.b32.xlu0 %v3623_v25, %s6407_s14  ;;  %1450 = vst.msk [vmem:[#allocation3 + $0x64] sm:$0xf] %vm9747_vm7, %v1418_v38  ;;  %v4070_v25 = vsel %vm6580_vm12, %v4065_v50, %v8447_v9  ;;  %v4336_v52 = vsel %vm2228_vm8, %v4303_v11, 0  ;;  %v1751_v47 = vrot.slane %v1750_v7, 4  ;;  %v4304_v54 = vld [vmem:[#allocation2 + $0x70] sm:$0xf]  ;;  %v8496_v53 = vsel %vm6659_vm1, %v6650_v22, %v2184_v36  ;;  %vm9753_vm8 = vmmov %vm9749_vm10 }
 0x1a4   : > { %v4501_v26 = vpop.permute.xlu1 %4500  ;;  %1449 = vst.msk [vmem:[#allocation3 + $0x60] sm:$0xf] %vm9748_vm9, %v1417_v13  ;;  %v1759_v23 = vrot.slane %v1757_v48, 4  ;;  %v2186_v31 = vrot.slane %v2184_v36, 4  ;;  %v2190_v18 = vrot.slane %v2102_v32, 7  ;;  %v4447_v40 = vrot.slane %v4336_v52, 5  ;;  %vm9756_vm5 = vmmov %vm9747_vm7 }
 0x1a5   : > { %4585 = vst.msk [vmem:[#allocation3 + $0x30] sm:$0xf] %vm9741_vm15, %v4501_v26  ;;  %v4503_v21 = vpop.permute.xlu0 %4502  ;;  %vm8484_vm15 = vcmp.ne.s32.totalorder %v1003_v49, 0  ;;  %v1292_v45 = vld [vmem:[#allocation2 + $0x6c] sm:$0xf]  ;;  %v8499_v8 = vrot.slane %v1763_v27, 5  ;;  %vm9757_vm7 = vmmov %vm9753_vm8  ;;  %v1756_v35 = vsel %vm6580_vm12, %v1751_v47, %v1755_v57 }
 0x1a6   : > { %3711 = vrot.lane.b32.xlu1 %v3624_v12, %s6407_s14  ;;  %4586 = vst.msk [vmem:[#allocation3 + $0x34] sm:$0xf] %vm9746_vm0, %v4503_v21  ;;  %v1741_v12 = vrot.slane %v1740_v29, 4  ;;  %v1769_v42 = vrot.slane %v1767_v0, 4  ;;  %vm8504_vm6 = vmpackc.low %vm8484_vm15, %vm8484_vm15  ;;  %v1420_v21 = vsel %vm6473_vm3, %v1292_v45, 0  ;;  %v4337_v58 = vsel %vm8245_vm13, %v4304_v54, 0 }
 0x1a7   : > { %4191 = vrot.lane.b32.xlu0 %v4040_v62, %s6408_s15  ;;  %v4445_v62 = vsel %vm6727_vm14, %v4443_v61, %v8467_v60  ;;  %v8514_v51 = vld [vmem:[#allocation2 + $0x70] sm:$0xf]  ;;  %1452 = vst.msk [vmem:[#allocation3 + $0x6c] sm:$0xf] %vm9756_vm5, %v1420_v21  ;;  %v4446_v38 = vrot.slane %v8467_v60, 4  ;;  %v1760_v13 = vor.u32 %v1759_v23, %v1755_v57  ;;  %vm2230_vm9 = vcmp.ne.s16.totalorder %v8496_v53, 0  ;;  %vm9758_vm13 = vmmov %vm9756_vm5 }
 0x1a8   : > { %v1852_v10 = vpop.permute.xlu1 %1851  ;;  %v1746_v50 = vsel %vm6580_vm12, %v1741_v12, %v8423_v43  ;;  %v2188_v6 = vsel %vm6659_vm1, %v2186_v31, %v6503_v19  ;;  %v8535_v43 = vsel %vm6659_vm1, %v6650_v22, %v2190_v18  ;;  %v2192_v48 = vrot.slane %v2190_v18, 4  ;;  %v1972_v36 = vld [vmem:[#allocation2 + $0x68] sm:$0xf]  ;;  %v1973_v27 = vld [vmem:[#allocation2 + $0x6c] sm:$0xf] }
 0x1a9   : > { %1931 = vst.msk [vmem:[#allocation3 + $0x44] sm:$0xf] %vm9749_vm10, %v1852_v10  ;;  %v4505_v24 = vpop.permute.xlu0 %4504  ;;  %v1971_v10 = vld [vmem:[#allocation2 + $0x64] sm:$0xf]  ;;  %vm9759_vm10 = vcmask 93248   ;;  %v4449_v34 = vrot.slane %v4447_v40, 4  ;;  %v4448_v61 = vsel %vm6727_vm14, %v4446_v38, %v4447_v40 }
 0x1aa   : > { %4193 = vrot.lane.b32.xlu1 %v4050_v33, %s6408_s15  ;;  %4587 = vst.msk [vmem:[#allocation3 + $0x38] sm:$0xf] %vm9750_vm11, %v4505_v24  ;;  %v1291_v33 = vld [vmem:[#allocation2 + $0x68] sm:$0xf]  ;;  %v8538_v49 = vrot.slane %v4337_v58, 5  ;;  %v1773_v7 = vshll.u32 %v8514_v51, 16  ;;  %vm9760_vm11 = vmmov %vm9759_vm10  ;;  %v2194_v32 = vsel %vm6659_vm1, %v2192_v48, %v6503_v19 }
 0x1ab   : > { %4195 = vrot.lane.b32.xlu0 %v4060_v37, %s6408_s15  ;;  %v1419_v55 = vsel %vm8504_vm6, %v1291_v33, 0  ;;  %v1770_v37 = vor.u32 %v1769_v42, %v8499_v8  ;;  %v2263_v24 = vsel %vm2230_vm9, %v1971_v10, 0  ;;  %v1761_v60 = vrot.slane %v1760_v13, 4  ;;  %v1974_v31 = vld [vmem:[#allocation2 + $0x70] sm:$0xf] }
 0x1ac   : > { %v4507_v16 = vpop.permute.xlu1 %4506  ;;  %1451 = vst.msk [vmem:[#allocation3 + $0x68] sm:$0xf] %vm9758_vm13, %v1419_v55  ;;  %vm8548_vm15 = vcmp.ne.s16.totalorder %v2188_v6, 0  ;;  %v8562_v57 = vrot.slane %v1773_v7, 5  ;;  %v2381_v52 = vrot.slane %v2263_v24, 5  ;;  %v2380_v23 = vrot.slane %v8267_v44, 4 }
 0x1ad   : > { %4588 = vst.msk [vmem:[#allocation3 + $0x3c] sm:$0xf] %vm9746_vm0, %v4507_v16  ;;  %v1854_v26 = vpop.permute.xlu0 %1853  ;;  %v6349_v17 = vld [vmem:[#allocation3 + $0x30] sm:$0xff]   ;;  %vm2232_vm0 = vcmp.ne.s16.totalorder %v8535_v43, 0  ;;  %v4451_v16 = vsel %vm6727_vm14, %v4449_v34, %v8538_v49  ;;  %v2264_v47 = vsel %vm8548_vm15, %v1972_v36, 0  ;;  %v1766_v54 = vsel %vm6580_vm12, %v1761_v60, %v8499_v8 }
 0x1ae   : > { %4197 = vrot.lane.b32.xlu1 %v4070_v25, %s6408_s15  ;;  %1932 = vst.msk [vmem:[#allocation3 + $0x48] sm:$0xf] %vm9753_vm8, %v1854_v26  ;;  %6247 = vmatprep.mubr.msk.bf16.mxu0 %vm4744_vm4, %v6349_v17  ;;  %vm9763_vm8 = vmmov %vm9759_vm10  ;;  %v2265_v12 = vsel %vm2232_vm0, %v1973_v27, 0  ;;  %vm9767_vm13 = vcmask 126048   ;;  %v2383_v18 = vrot.slane %v2381_v52, 4  ;;  %v2384_v45 = vrot.slane %v2264_v47, 5 }
 0x1af   : > { %4516 = vrot.lane.b32.xlu0 %v4442_v15, %s6409_s16  ;;  %v1771_v15 = vrot.slane %v1770_v37, 4  ;;  %vm9764_vm5 = vmmov %vm9763_vm8  ;;  %v2387_v40 = vrot.slane %v2265_v12, 5  ;;  %v2783_v8 = vld [vmem:[#allocation2 + $0x6c] sm:$0xf]  ;;  %v3035_v21 = vshrl.u32 %v8295_v41, 16  ;;  %v2382_v33 = vsel %vm6727_vm14, %v2380_v23, %v2381_v52 }
 0x1b0   : > { %v1856_v28 = vpop.permute.xlu1 %1855  ;;  %v2784_v58 = vld [vmem:[#allocation2 + $0x70] sm:$0xf]  ;;  %v3045_v38 = vshrl.u32 %v2783_v8, 16  ;;  %v2385_v13 = vsel %vm6727_vm14, %v2383_v18, %v2384_v45  ;;  %v2785_v41 = vld [vmem:[#allocation2 + $0x74] sm:$0xf] }
 0x1b1   : > { %1933 = vst.msk [vmem:[#allocation3 + $0x4c] sm:$0xf] %vm9757_vm7, %v1856_v28  ;;  %v2437_v20 = vpop.permute.xlu0 %2436  ;;  %vm8574_vm7 = vcmp.ne.s16.totalorder %v2194_v32, 0  ;;  %v1776_v17 = vsel %vm6580_vm12, %v1771_v15, %v8562_v57  ;;  %v2386_v28 = vrot.slane %v2384_v45, 4  ;;  %v2389_v10 = vrot.slane %v2387_v40, 4 }
 0x1b2   : > { %4518 = vrot.lane.b32.xlu1 %v4445_v62, %s6409_s16  ;;  %2517 = vst.msk [vmem:[#allocation3 + $0x40] sm:$0xf] %vm9759_vm10, %v2437_v20  ;;  %v2266_v44 = vsel %vm8574_vm7, %v1974_v31, 0  ;;  %vm9768_vm10 = vmmov %vm9767_vm13  ;;  %v3051_v6 = vshll.u32 %v2784_v58, 16  ;;  %v3055_v48 = vshrl.u32 %v2784_v58, 16  ;;  %v3037_v37 = vrot.slane %v3035_v21, 4 }
 0x1b3   : > { %1865 = vrot.lane.b32.xlu0 %v1746_v50, %s6402_s9  ;;  %v3041_v50 = vshll.u32 %v2783_v8, 16  ;;  %v8594_v20 = vrot.slane %v2266_v44, 5  ;;  %v2388_v34 = vsel %vm6727_vm14, %v2386_v28, %v2387_v40  ;;  %v3047_v36 = vrot.slane %v3045_v38, 4  ;;  %v2559_v47 = vld [vmem:[#allocation2 + $0x70] sm:$0xf] }
 0x1b4   : > { %v2439_v29 = vpop.permute.xlu1 %2438  ;;  %v6350_v11 = vld [vmem:[#allocation3 + $0x38] sm:$0xff]   ;;  %v3061_v24 = vshll.u32 %v2785_v41, 16  ;;  %v8608_v32 = vrot.slane %v3051_v6, 5  ;;  %v3038_v52 = vor.u32 %v3037_v37, %v8319_v63  ;;  %v2560_v63 = vld [vmem:[#allocation2 + $0x74] sm:$0xf]  ;;  %v2591_v40 = vsel %vm8504_vm6, %v2559_v47, 0 }
 0x1b5   : > { %2518 = vst.msk [vmem:[#allocation3 + $0x44] sm:$0xf] %vm9760_vm11, %v2439_v29  ;;  %6248 = vmatmul.mubr.msk.bf16.gmra.mxu0 %vm4744_vm4, %v6350_v11  ;;  %v2441_v0 = vpop.permute.xlu0 %2440  ;;  %vm9769_vm11 = vmmov %vm9768_vm10  ;;  %v2557_v29 = vld [vmem:[#allocation2 + $0x68] sm:$0xf]  ;;  %v8601_v11 = vrot.slane %v3041_v50, 5  ;;  %v2391_v60 = vsel %vm6727_vm14, %v2389_v10, %v8594_v20 }
 0x1b6   : > { %1867 = vrot.lane.b32.xlu1 %v1756_v35, %s6402_s9  ;;  %2519 = vst.msk [vmem:[#allocation3 + $0x48] sm:$0xf] %vm9763_vm8, %v2441_v0  ;;  %vm9770_vm8 = vmmov %vm9768_vm10  ;;  %v2558_v0 = vld [vmem:[#allocation2 + $0x6c] sm:$0xf]  ;;  %v2589_v15 = vsel %vm8442_vm2, %v2557_v29, 0  ;;  %v3039_v8 = vrot.slane %v3038_v52, 4 }
 0x1b7   : > { %4520 = vrot.lane.b32.xlu0 %v4448_v61, %s6409_s16  ;;  %v3065_v61 = vshrl.u32 %v2785_v41, 16  ;;  %v3048_v12 = vor.u32 %v3047_v36, %v8601_v11  ;;  %v2590_v31 = vsel %vm6473_vm3, %v2558_v0, 0  ;;  %v3269_v45 = vld [vmem:[#allocation2 + $0x6c] sm:$0xf]  ;;  %v8632_v44 = vld [vmem:[%s9515_s3] ss:$0 sm:$0xff] }
 0x1b8   : > { %v2443_v14 = vpop.permute.xlu1 %2442  ;;  %v3270_v58 = vld [vmem:[#allocation2 + $0x70] sm:$0xf]  ;;  %v3302_v50 = vsel %vm2230_vm9, %v3269_v45, 0  ;;  %v3271_v41 = vld [vmem:[#allocation2 + $0x74] sm:$0xf]  ;;  %v3416_v52 = vrot.slane %v8352_v2, 4 }
 0x1b9   : > { %2520 = vst.msk [vmem:[#allocation3 + $0x4c] sm:$0xf] %vm9764_vm5, %v2443_v14  ;;  %v2662_v62 = vpop.permute.xlu0 %2661  ;;  %vm9771_vm5 = vcmask 158848   ;;  %v3067_v23 = vrot.slane %v3065_v61, 4  ;;  %v3049_v21 = vrot.slane %v3048_v12, 4  ;;  %v3417_v61 = vrot.slane %v3302_v50, 5 }
 0x1ba   : > { %4522 = vrot.lane.b32.xlu1 %v4451_v16, %s6409_s16  ;;  %2742 = vst.msk [vmem:[#allocation3 + $0x40] sm:$0xf] %vm9767_vm13, %v2662_v62  ;;  %v3057_v16 = vrot.slane %v3055_v48, 4  ;;  %vm9772_vm13 = vmmov %vm9771_vm5  ;;  %v8621_v62 = vld [vmem:[#allocation2 + $0x78] sm:$0xf]  ;;  %v3044_v48 = vsel %vm6580_vm12, %v3039_v8, %v8601_v11 }
 0x1bb   : > { %1869 = vrot.lane.b32.xlu0 %v1766_v54, %s6402_s9  ;;  %v8616_v54 = vrot.slane %v3061_v24, 5  ;;  %v3071_v28 = vshll.u32 %v8621_v62, 16  ;;  %v3054_v29 = vsel %vm6580_vm12, %v3049_v21, %v8608_v32  ;;  %v1294_v25 = vld [vmem:[#allocation2 + $0x74] sm:$0xf] }
 0x1bc   : > { %v2664_v42 = vpop.permute.xlu1 %2663  ;;  %v3058_v18 = vor.u32 %v3057_v16, %v8608_v32 }
 0x1bd   : > { %2743 = vst.msk [vmem:[#allocation3 + $0x44] sm:$0xf] %vm9768_vm10, %v2664_v42  ;;  %v2666_v55 = vpop.permute.xlu0 %2665  ;;  %vm9773_vm10 = vmmov %vm9771_vm5  ;;  %v8654_v24 = vrot.slane %v3071_v28, 5  ;;  %v3418_v28 = vsel %vm6727_vm14, %v3416_v52, %v3417_v61  ;;  %v3593_v52 = vld [vmem:[#allocation2 + $0x70] sm:$0xf] }
 0x1be   : > { %1871 = vrot.lane.b32.xlu1 %v1776_v17, %s6402_s9  ;;  %2744 = vst.msk [vmem:[#allocation3 + $0x48] sm:$0xf] %vm9769_vm11, %v2666_v55  ;;  %vm9774_vm11 = vmmov %vm9771_vm5  ;;  %v2592_v55 = vsel %vm6473_vm3, %v2560_v63, 0  ;;  %v3059_v10 = vrot.slane %v3058_v18, 4  ;;  %v3419_v18 = vrot.slane %v3417_v61, 4 }
 0x1bf   : > { %2452 = vrot.lane.b32.xlu0 %v2382_v33, %s6403_s10  ;;  %v3068_v33 = vor.u32 %v3067_v23, %v8616_v54  ;;  %v3272_v23 = vld [vmem:[#allocation2 + $0x78] sm:$0xf]  ;;  %v3821_v61 = vld [vmem:[#allocation2 + $0x7c] sm:$0xf] }
 0x1c0   : > { %v2668_v35 = vpop.permute.xlu1 %2667  ;;  %v3064_v32 = vsel %vm6580_vm12, %v3059_v10, %v8616_v54 }
 0x1c1   : > { %2745 = vst.msk [vmem:[#allocation3 + $0x4c] sm:$0xf] %vm9770_vm8, %v2668_v35  ;;  %v3148_v7 = vpop.permute.xlu0 %3147  ;;  %vm9775_vm8 = vcmask 191648   ;;  %v4071_v35 = vshrl.u32 %v8388_v5, 16  ;;  %v3069_v36 = vrot.slane %v3068_v33, 4  ;;  %v814_v5 = vadd.s32 232, %v6467_v1 }
 0x1c2   : > { %2454 = vrot.lane.b32.xlu1 %v2385_v13, %s6403_s10  ;;  %3228 = vst.msk [vmem:[#allocation3 + $0x40] sm:$0xf] %vm9771_vm5, %v3148_v7  ;;  %vm9776_vm5 = vmmov %vm9775_vm8 }
 0x1c3   : > { %2456 = vrot.lane.b32.xlu0 %v2388_v34, %s6403_s10  ;;  %v3303_v34 = vsel %vm8548_vm15, %v3270_v58, 0  ;;  %v3074_v54 = vsel %vm6580_vm12, %v3069_v36, %v8654_v24  ;;  %v3305_v58 = vsel %vm8574_vm7, %v3272_v23, 0  ;;  %v4073_v36 = vrot.slane %v4071_v35, 4 }
 0x1c4   : > { %v3150_v27 = vpop.permute.xlu1 %3149  ;;  %v4101_v23 = vshrl.u32 %v3821_v61, 16 }
 0x1c5   : > { %3229 = vst.msk [vmem:[#allocation3 + $0x44] sm:$0xf] %vm9772_vm13, %v3150_v27  ;;  %v3152_v14 = vpop.permute.xlu0 %3151  ;;  %v8660_v27 = vsel %vm2232_vm0, %v3271_v41, 0 }
 0x1c6   : > { %2458 = vrot.lane.b32.xlu1 %v2391_v60, %s6403_s10  ;;  %3230 = vst.msk [vmem:[#allocation3 + $0x48] sm:$0xf] %vm9773_vm10, %v3152_v14  ;;  %vm9777_vm10 = vmmov %vm9776_vm5  ;;  %v3423_v2 = vrot.slane %v8660_v27, 5  ;;  %v3594_v27 = vld [vmem:[#allocation2 + $0x74] sm:$0xf] }
 0x1c7   : > { %2677 = vrot.lane.b32.xlu0 %v2589_v15, %s6404_s11  ;;  %v3420_v15 = vrot.slane %v3303_v34, 5 }
 0x1c8   : > { %v3154_v17 = vpop.permute.xlu1 %3153 }
 0x1c9   : > { %3231 = vst.msk [vmem:[#allocation3 + $0x4c] sm:$0xf] %vm9774_vm11, %v3154_v17  ;;  %v3473_v42 = vpop.permute.xlu0 %3472  ;;  %vm5182_vm11 = vcmask 60416  }
 0x1ca   : > { %2679 = vrot.lane.b32.xlu1 %v2590_v31, %s6404_s11  ;;  %3553 = vst.msk [vmem:[#allocation3 + $0x40] sm:$0xf] %vm9775_vm8, %v3473_v42  ;;  %v6237_v13 = vpop.f32.mrf.mxu0  ;;  %vm9778_vm8 = vmmov %vm9776_vm5  ;;  %v3819_v42 = vld [vmem:[#allocation2 + $0x74] sm:$0xf] }
 0x1cb   : > { %2681 = vrot.lane.b32.xlu0 %v2591_v40, %s6404_s11  ;;  %v4840_v6 = vadd.f32 %v6237_v13, %v8632_v44  ;;  %v3820_v13 = vld [vmem:[#allocation2 + $0x78] sm:$0xf]  ;;  %v4081_v34 = vshrl.u32 %v3819_v42, 16 }
 0x1cc   : > { %v3475_v38 = vpop.permute.xlu1 %3474  ;;  %v4831_v7 = vpop.f32.mrf.mxu0 }
 0x1cd   : > { %3554 = vst.msk [vmem:[#allocation3 + $0x44] sm:$0xf] %vm9776_vm5, %v3475_v38  ;;  %v3477_v37 = vpop.permute.xlu0 %3476  ;;  %vm4960_vm13 = vcmp.gt.f32.partialorder %v4840_v6, 0.0  ;;  %v4992_v60 = vmul.f32 0.1, %v4840_v6  ;;  %v4832_v11 = vadd.f32 %v8632_v44, %v4831_v7  ;;  %v3422_v38 = vrot.slane %v3420_v15, 4 }
 0x1ce   : > { %2683 = vrot.lane.b32.xlu1 %v2592_v55, %s6404_s11  ;;  %3555 = vst.msk [vmem:[#allocation3 + $0x48] sm:$0xf] %vm9777_vm10, %v3477_v37  ;;  %v6238_v16 = vpop.f32.mrf.mxu0  ;;  %vm9779_vm10 = vcmask 224448   ;;  %v3421_v7 = vsel %vm6727_vm14, %v3419_v18, %v3420_v15  ;;  %v813_v18 = vadd.s32 224, %v6467_v1 }
 0x1cf   : > { %3163 = vrot.lane.b32.xlu0 %v3044_v48, %s6405_s12  ;;  %v5024_v14 = vsel %vm4960_vm13, %v4840_v6, %v4992_v60  ;;  %vm4958_vm5 = vcmp.gt.f32.partialorder %v4832_v11, 0.0  ;;  %v4990_v47 = vmul.f32 0.1, %v4832_v11  ;;  %v4843_v12 = vadd.f32 %v6238_v16, %v8632_v44 }
 0x1d0   : > { %v3479_v0 = vpop.permute.xlu1 %3478  ;;  %v6163_v31 = vpack.c.bf16 %v5024_v14, %v5024_v14  ;;  %v4834_v63 = vpop.f32.mrf.mxu0  ;;  %v3425_v6 = vrot.slane %v3423_v2, 4  ;;  %v4077_v48 = vshll.u32 %v3819_v42, 16  ;;  %v4091_v16 = vshrl.u32 %v3820_v13, 16  ;;  %v4305_v42 = vld [vmem:[#allocation2 + $0x74] sm:$0xf] }
 0x1d1   : > { %3556 = vst.msk [vmem:[#allocation3 + $0x4c] sm:$0xf] %vm9778_vm8, %v3479_v0  ;;  %v3698_v17 = vpop.permute.xlu0 %3697  ;;  %v5022_v45 = vsel %vm4958_vm5, %v4832_v11, %v4990_v47  ;;  %vm4961_vm13 = vcmp.gt.f32.partialorder %v4843_v12, 0.0  ;;  %v4993_v40 = vmul.f32 0.1, %v4843_v12  ;;  %v4835_v8 = vadd.f32 %v8632_v44, %v4834_v63  ;;  %vm9780_vm8 = vmmov %vm9779_vm10 }
 0x1d2   : > { %3165 = vrot.lane.b32.xlu1 %v3054_v29, %s6405_s12  ;;  %3778 = vst.msk [vmem:[#allocation3 + $0x40] sm:$0xf] %vm9779_vm10, %v3698_v17  ;;  %v6161_v21 = vpack.c.bf16 %v5022_v45, %v5022_v45  ;;  %vm9781_vm10 = vmmov %vm9780_vm8  ;;  %v8688_v29 = vrot.slane %v3305_v58, 5  ;;  %v4087_v0 = vshll.u32 %v3820_v13, 16  ;;  %v3424_v15 = vsel %vm6727_vm14, %v3422_v38, %v3423_v2  ;;  %v3595_v63 = vld [vmem:[#allocation2 + $0x78] sm:$0xf] }
 0x1d3   : > { %5185 = vst.msk [vmem:[#allocation3 + $0x8] sm:$0xf] %vm5182_vm11, %v6163_v31  ;;  %3167 = vrot.lane.b32.xlu0 %v3064_v32, %s6405_s12  ;;  %v5025_v55 = vsel %vm4961_vm13, %v4843_v12, %v4993_v40  ;;  %vm4959_vm5 = vcmp.gt.f32.partialorder %v4835_v8, 0.0  ;;  %v4991_v50 = vmul.f32 0.1, %v4835_v8  ;;  %v1777_v32 = vshrl.u32 %v8514_v51, 16  ;;  %vm9782_vm13 = vmmov %vm9780_vm8 }
 0x1d4   : > { %v3700_v33 = vpop.permute.xlu1 %3699  ;;  %5183 = vst.msk [vmem:[#allocation3] sm:$0xf] %vm5182_vm11, %v6161_v21  ;;  %v6164_v10 = vpack.c.bf16 %v5025_v55, %v5025_v55  ;;  %v8701_v14 = vrot.slane %v4077_v48, 5  ;;  %v4083_v47 = vrot.slane %v4081_v34, 4  ;;  %v4097_v12 = vshll.u32 %v3821_v61, 16 }
 0x1d5   : > { %3779 = vst.msk [vmem:[#allocation3 + $0x44] sm:$0xf] %vm9780_vm8, %v3700_v33  ;;  %v3702_v41 = vpop.permute.xlu0 %3701  ;;  %v5023_v37 = vsel %vm4959_vm5, %v4835_v8, %v4991_v50  ;;  %vm9783_vm8 = vcmask 257248   ;;  %v3427_v31 = vsel %vm6727_vm14, %v3425_v6, %v8688_v29  ;;  %v3626_v17 = vsel %vm6473_vm3, %v3594_v27, 0  ;;  %v1486_v21 = vld [vmem:[#allocation2 + $0x74] sm:$0xf] }
 0x1d6   : > { %3169 = vrot.lane.b32.xlu1 %v3074_v54, %s6405_s12  ;;  %3780 = vst.msk [vmem:[#allocation3 + $0x48] sm:$0xf] %vm9781_vm10, %v3702_v41  ;;  %v6162_v60 = vpack.c.bf16 %v5023_v37, %v5023_v37  ;;  %v4074_v54 = vor.u32 %v4073_v36, %v8447_v9  ;;  %v3625_v45 = vsel %vm8442_vm2, %v3593_v52, 0  ;;  %vm5335_vm5 = vcmask 64512   ;;  %vm9784_vm10 = vmmov %vm9783_vm8  ;;  %v4306_v13 = vld [vmem:[#allocation2 + $0x78] sm:$0xf] }
 0x1d7   : > { %5186 = vst.msk [vmem:[#allocation3 + $0xc] sm:$0xf] %vm5182_vm11, %v6164_v10  ;;  %3488 = vrot.lane.b32.xlu0 %v3418_v28, %s6406_s13  ;;  %v8714_v40 = vrot.slane %v4087_v0, 5  ;;  %v4093_v8 = vrot.slane %v4091_v16, 4  ;;  %v1024_v33 = vand.u32 15, %v814_v5  ;;  %v816_v28 = vadd.s32 248, %v6467_v1  ;;  %vm9785_vm2 = vmmov %vm9783_vm8 }
 0x1d8   : > { %v3704_v11 = vpop.permute.xlu1 %3703  ;;  %5184 = vst.msk [vmem:[#allocation3 + $0x4] sm:$0xf] %vm5182_vm11, %v6162_v60  ;;  %v3627_v58 = vsel %vm8504_vm6, %v3595_v63, 0  ;;  %v4084_v59 = vor.u32 %v4083_v47, %v8701_v14  ;;  %v8722_v55 = vrot.slane %v4097_v12, 5  ;;  %v4103_v50 = vrot.slane %v4101_v23, 4  ;;  %vm9786_vm6 = vmmov %vm9785_vm2 }
 0x1d9   : > { %3781 = vst.msk [vmem:[#allocation3 + $0x4c] sm:$0xf] %vm9782_vm13, %v3704_v11  ;;  %v4184_v35 = vpop.permute.xlu0 %4183  ;;  %v4075_v38 = vrot.slane %v4074_v54, 4  ;;  %v1017_v10 = vand.u32 15, %v813_v18  ;;  %v3596_v6 = vld [vmem:[#allocation2 + $0x7c] sm:$0xf] }
 0x1da   : > { %3490 = vrot.lane.b32.xlu1 %v3421_v7, %s6406_s13  ;;  %4264 = vst.msk [vmem:[#allocation3 + $0x40] sm:$0xf] %vm9783_vm8, %v4184_v35  ;;  %v8726_v48 = vld [vmem:[#allocation2 + $0x80] sm:$0xf]  ;;  %v8730_v39 = vsel %vm2230_vm9, %v4305_v42, 0  ;;  %v1783_v34 = vshll.u32 %v1486_v21, 16  ;;  %v4094_v7 = vor.u32 %v4093_v8, %v8714_v40  ;;  %v4104_v53 = vor.u32 %v4103_v50, %v8722_v55 }
 0x1db   : > { %3492 = vrot.lane.b32.xlu0 %v3424_v15, %s6406_s13  ;;  %v1787_v36 = vshrl.u32 %v1486_v21, 16  ;;  %vm8734_vm13 = vcmp.ne.s32.totalorder %v1024_v33, 15  ;;  %v1038_v60 = vand.u32 15, %v816_v28  ;;  %v4085_v0 = vrot.slane %v4084_v59, 4  ;;  %v1293_v42 = vld [vmem:[#allocation2 + $0x70] sm:$0xf] }
 0x1dc   : > { %v4186_v2 = vpop.permute.xlu1 %4185  ;;  %vm9789_vm9 = vcmask 290048   ;;  %v3628_v16 = vsel %vm6473_vm3, %v3596_v6, 0  ;;  %v4107_v15 = vshll.u32 %v8726_v48, 16  ;;  %vm8745_vm8 = vcmp.ne.s32.totalorder %v1017_v10, 0  ;;  %v1488_v33 = vld [vmem:[#allocation2 + $0x7c] sm:$0xf] }
 0x1dd   : > { %4265 = vst.msk [vmem:[#allocation3 + $0x44] sm:$0xf] %vm9784_vm10, %v4186_v2  ;;  %v4188_v9 = vpop.permute.xlu0 %4187  ;;  %v815_v5 = vadd.s32 240, %v6467_v1  ;;  %v4080_v47 = vsel %vm6580_vm12, %v4075_v38, %v8701_v14  ;;  %v4339_v12 = vsel %vm8548_vm15, %v4306_v13, 0  ;;  %v4453_v23 = vrot.slane %v8730_v39, 5  ;;  %vm2072_vm10 = vmpackc.low %vm8734_vm13, %vm8734_vm13 }
 0x1de   : > { %3494 = vrot.lane.b32.xlu1 %v3427_v31, %s6406_s13  ;;  %4266 = vst.msk [vmem:[#allocation3 + $0x48] sm:$0xf] %vm9785_vm2, %v4188_v9  ;;  %v6352_v27 = vld [vmem:[#allocation3 + $0x8] sm:$0xff]   ;;  %v1487_v31 = vld [vmem:[#allocation2 + $0x78] sm:$0xf]  ;;  %vm9792_vm2 = vmmov %vm9789_vm9  ;;  %v4095_v1 = vrot.slane %v4094_v7, 4  ;;  %v4090_v51 = vsel %vm6580_vm12, %v4085_v0, %v8714_v40 }
 0x1df   : > { %3713 = vrot.lane.b32.xlu0 %v3625_v45, %s6407_s14  ;;  %v6351_v37 = vld [vmem:[#allocation3] sm:$0xff]   ;;  %v8764_v63 = vrot.slane %v1783_v34, 5  ;;  %v1789_v54 = vrot.slane %v1787_v36, 4  ;;  %v4307_v2 = vld [vmem:[#allocation2 + $0x7c] sm:$0xf]  ;;  %vm8777_vm15 = vmpackc.low %vm8745_vm8, %vm8745_vm8  ;;  %v1422_v8 = vsel %vm6473_vm3, %v1294_v25, 0 }
 0x1e0   : > { %v4190_v41 = vpop.permute.xlu1 %4189  ;;  %6269 = vmatprep.mubr.msk.bf16.mxu1 %vm5335_vm5, %v6351_v37  ;;  %v8784_v21 = vrot.slane %v4107_v15, 5  ;;  %v2104_v40 = vsel %vm2072_vm10, 65537, %v6401_v4  ;;  %v1031_v28 = vand.u32 15, %v815_v5  ;;  %vm9798_vm8 = vcmask 27648   ;;  %v3600_v45 = vld [vmem:[#allocation2 + $0x8c] sm:$0xf] }
 0x1e1   : > { %4267 = vst.msk [vmem:[#allocation3 + $0x4c] sm:$0xf] %vm9786_vm6, %v4190_v41  ;;  %v4509_v11 = vpop.permute.xlu0 %4508  ;;  %6270 = vmatmul.mubr.msk.bf16.vlgmr.msra.gmra.mxu1 %vm5335_vm5, %v6352_v27  ;;  %vm8766_vm6 = vcmp.ne.s32.totalorder %v1038_v60, 15  ;;  %v1421_v9 = vsel %vm8777_vm15, %v1293_v42, 0  ;;  %v8796_v59 = vrot.slane %v4339_v12, 5  ;;  %v4452_v50 = vrot.slane %v8538_v49, 4  ;;  %vm9799_vm13 = vmmov %vm9798_vm8 }
 0x1e2   : > { %3715 = vrot.lane.b32.xlu1 %v3626_v17, %s6407_s14  ;;  %4589 = vst.msk [vmem:[#allocation3 + $0x40] sm:$0xf] %vm9789_vm9, %v4509_v11  ;;  %v1779_v17 = vrot.slane %v1777_v32, 4  ;;  %v4105_v32 = vrot.slane %v4104_v53, 4  ;;  %vm9797_vm9 = vcmask 60448   ;;  %v1793_v38 = vshll.u32 %v1487_v31, 16 }
 0x1e3   : > { %3717 = vrot.lane.b32.xlu0 %v3627_v58, %s6407_s14  ;;  %1454 = vst.msk [vmem:[#allocation3 + $0x74] sm:$0xf] %vm9798_vm8, %v1422_v8  ;;  %vm9800_vm10 = vmmov %vm9797_vm9  ;;  %v4100_v13 = vsel %vm6580_vm12, %v4095_v1, %v8722_v55  ;;  %v1790_v10 = vor.u32 %v1789_v54, %v8764_v63  ;;  %v1797_v41 = vshrl.u32 %v1487_v31, 16  ;;  %v4455_v39 = vrot.slane %v4453_v23, 4  ;;  %v1296_v31 = vld [vmem:[#allocation2 + $0x7c] sm:$0xf] }
 0x1e4   : > { %v4511_v35 = vpop.permute.xlu1 %4510  ;;  %1453 = vst.msk [vmem:[#allocation3 + $0x70] sm:$0xf] %vm9799_vm13, %v1421_v9  ;;  %v1780_v6 = vor.u32 %v1779_v17, %v8562_v57  ;;  %v4340_v34 = vsel %vm2232_vm0, %v4307_v2, 0  ;;  %v1803_v37 = vshll.u32 %v1488_v33, 16  ;;  %v2196_v7 = vrot.slane %v2104_v40, 7 }
 0x1e5   : > { %4590 = vst.msk [vmem:[#allocation3 + $0x44] sm:$0xf] %vm9792_vm2, %v4511_v35  ;;  %v1858_v18 = vpop.permute.xlu0 %1857  ;;  %vm2074_vm2 = vmpackc.low %vm8766_vm6, %vm8766_vm6  ;;  %v4110_v55 = vsel %vm6580_vm12, %v4105_v32, %v8784_v21  ;;  %v1807_v36 = vshrl.u32 %v1488_v33, 16  ;;  %vm8822_vm8 = vcmp.ne.s32.totalorder %v1031_v28, 0  ;;  %v4454_v11 = vsel %vm6727_vm14, %v4452_v50, %v4453_v23  ;;  %v1295_v17 = vld [vmem:[#allocation2 + $0x78] sm:$0xf] }
 0x1e6   : > { %3719 = vrot.lane.b32.xlu1 %v3628_v16, %s6407_s14  ;;  %1934 = vst.msk [vmem:[#allocation3 + $0x50] sm:$0xf] %vm9797_vm9, %v1858_v18  ;;  %vm9801_vm9 = vcmask 290048   ;;  %v2106_v57 = vsel %vm2074_vm2, 65537, %v6401_v4  ;;  %v1795_v27 = vrot.slane %v1793_v38, 5  ;;  %v1791_v0 = vrot.slane %v1790_v10, 4  ;;  %vm8843_vm6 = vmpackc.low %vm8822_vm8, %vm8822_vm8 }
 0x1e7   : > { %4199 = vrot.lane.b32.xlu0 %v4080_v47, %s6408_s15  ;;  %vm9804_vm0 = vmmov %vm9801_vm9  ;;  %v1781_v53 = vrot.slane %v1780_v6, 4  ;;  %v4308_v16 = vld [vmem:[#allocation2 + $0x80] sm:$0xf]  ;;  %v4459_v15 = vrot.slane %v4340_v34, 5  ;;  %v1799_v52 = vrot.slane %v1797_v41, 4  ;;  %v4457_v5 = vsel %vm6727_vm14, %v4455_v39, %v8796_v59 }
 0x1e8   : > { %v1860_v58 = vpop.permute.xlu1 %1859  ;;  %v8838_v35 = vsel %vm6659_vm1, %v6650_v22, %v2196_v7  ;;  %v2198_v47 = vrot.slane %v2196_v7, 4  ;;  %v2202_v12 = vrot.slane %v2106_v57, 7  ;;  %vm9807_vm2 = vmmov %vm9800_vm10  ;;  %v8848_v1 = vrot.slane %v1803_v37, 5  ;;  %v1489_v2 = vld [vmem:[#allocation2 + $0x80] sm:$0x1] }
 0x1e9   : > { %1935 = vst.msk [vmem:[#allocation3 + $0x54] sm:$0xf] %vm9800_vm10, %v1860_v58  ;;  %v4513_v49 = vpop.permute.xlu0 %4512  ;;  %v1809_v54 = vrot.slane %v1807_v36, 4  ;;  %v1424_v14 = vsel %vm6473_vm3, %v1296_v31, 0  ;;  %v1423_v25 = vsel %vm8843_vm6, %v1295_v17, 0  ;;  %v4458_v32 = vrot.slane %v8796_v59, 4  ;;  %vm9808_vm10 = vmmov %vm9799_vm13 }
 0x1ea   : > { %4201 = vrot.lane.b32.xlu1 %v4090_v51, %s6408_s15  ;;  %4591 = vst.msk [vmem:[#allocation3 + $0x48] sm:$0xf] %vm9801_vm9, %v4513_v49  ;;  %v4341_v51 = vsel %vm8574_vm7, %v4308_v16, 0  ;;  %vm9809_vm9 = vmmov %vm9807_vm2  ;;  %v1786_v8 = vsel %vm6580_vm12, %v1781_v53, %v8764_v63  ;;  %v1800_v42 = vor.u32 %v1799_v52, %v1795_v27  ;;  %v1975_v33 = vld [vmem:[#allocation2 + $0x74] sm:$0xf]  ;;  %vm2234_vm8 = vcmp.ne.s16.totalorder %v8838_v35, 0 }
 0x1eb   : > { %4203 = vrot.lane.b32.xlu0 %v4100_v13, %s6408_s15  ;;  %1456 = vst.msk [vmem:[#allocation3 + $0x7c] sm:$0xf] %vm9799_vm13, %v1424_v14  ;;  %v1796_v40 = vsel %vm6580_vm12, %v1791_v0, %v1795_v27  ;;  %v2200_v28 = vsel %vm6659_vm1, %v2198_v47, %v6503_v19  ;;  %v8874_v9 = vsel %vm6659_vm1, %v6650_v22, %v2202_v12  ;;  %vm9810_vm7 = vcmask 93248   ;;  %v1976_v10 = vld [vmem:[#allocation2 + $0x78] sm:$0xf] }
 0x1ec   : > { %v4515_v43 = vpop.permute.xlu1 %4514  ;;  %v6353_v60 = vld [vmem:[#allocation3 + $0x40] sm:$0xff]   ;;  %1455 = vst.msk [vmem:[#allocation3 + $0x78] sm:$0xf] %vm9808_vm10, %v1423_v25  ;;  %v4461_v63 = vrot.slane %v4459_v15, 4  ;;  %v8877_v58 = vrot.slane %v4341_v51, 5  ;;  %v1810_v59 = vor.u32 %v1809_v54, %v8848_v1  ;;  %v1813_v50 = vshll.u32 %v1489_v2, 16  ;;  %vm9811_vm1 = vmmov %vm9810_vm7 }
 0x1ed   : > { %4592 = vst.msk [vmem:[#allocation3 + $0x4c] sm:$0xf] %vm9804_vm0, %v4515_v43  ;;  %6251 = vmatprep.mubr.msk.bf16.mxu0 %vm4744_vm4, %v6353_v60  ;;  %v1862_v4 = vpop.permute.xlu0 %1861  ;;  %v4460_v19 = vsel %vm6727_vm14, %v4458_v32, %v4459_v15  ;;  %v2267_v22 = vsel %vm2234_vm8, %v1975_v33, 0  ;;  %v1801_v30 = vrot.slane %v1800_v42, 4  ;;  %vm8886_vm0 = vcmp.ne.s16.totalorder %v2200_v28, 0  ;;  %vm9814_vm13 = vmmov %vm9811_vm1 }
 0x1ee   : > { %4205 = vrot.lane.b32.xlu1 %v4110_v55, %s6408_s15  ;;  %1936 = vst.msk [vmem:[#allocation3 + $0x58] sm:$0xf] %vm9807_vm2, %v1862_v4  ;;  %v1977_v6 = vld [vmem:[#allocation2 + $0x7c] sm:$0xf]  ;;  %v8890_v49 = vrot.slane %v2202_v12, 4  ;;  %vm2236_vm2 = vcmp.ne.s16.totalorder %v8874_v9, 0  ;;  %v4463_v34 = vsel %vm6727_vm14, %v4461_v63, %v8877_v58  ;;  %vm9815_vm10 = vmmov %vm9811_vm1 }
 0x1ef   : > { %4524 = vrot.lane.b32.xlu0 %v4454_v11, %s6409_s16  ;;  %v1811_v37 = vrot.slane %v1810_v59, 4  ;;  %v1815_v7 = vrot.slane %v1813_v50, 5  ;;  %v2393_v55 = vrot.slane %v2267_v22, 5  ;;  %v2268_v57 = vsel %vm8886_vm0, %v1976_v10, 0  ;;  %v1978_v11 = vld [vmem:[#allocation2 + $0x80] sm:$0x1] }
 0x1f0   : > { %v1864_v18 = vpop.permute.xlu1 %1863  ;;  %v2269_v61 = vsel %vm2236_vm2, %v1977_v6, 0  ;;  %v1806_v43 = vsel %vm6580_vm12, %v1801_v30, %v8848_v1  ;;  %v2392_v60 = vrot.slane %v8594_v20, 4  ;;  %v2787_v27 = vld [vmem:[#allocation2 + $0x7c] sm:$0xf]  ;;  %v2396_v15 = vrot.slane %v2268_v57, 5 }
 0x1f1   : > { %1937 = vst.msk [vmem:[#allocation3 + $0x5c] sm:$0xf] %vm9809_vm9, %v1864_v18  ;;  %v2445_v26 = vpop.permute.xlu0 %2444  ;;  %vm2237_vm9 = vcmp.ne.s16.totalorder %v8890_v49, 0  ;;  %v1816_v53 = vsel %vm6580_vm12, %v1811_v37, %v1815_v7  ;;  %v2395_v16 = vrot.slane %v2393_v55, 4  ;;  %v2399_v52 = vrot.slane %v2269_v61, 5 }
 0x1f2   : > { %4526 = vrot.lane.b32.xlu1 %v4457_v5, %s6409_s16  ;;  %2521 = vst.msk [vmem:[#allocation3 + $0x50] sm:$0xf] %vm9810_vm7, %v2445_v26  ;;  %vm9816_vm7 = vcmask 126048   ;;  %v3075_v4 = vshrl.u32 %v8621_v62, 16  ;;  %v2270_v20 = vsel %vm2237_vm9, %v1978_v11, 0  ;;  %v3081_v12 = vshll.u32 %v2787_v27, 16 }
 0x1f3   : > { %1873 = vrot.lane.b32.xlu0 %v1786_v8, %s6402_s9  ;;  %v2788_v47 = vld [vmem:[#allocation2 + $0x80] sm:$0xf]  ;;  %v3085_v31 = vshrl.u32 %v2787_v27, 16  ;;  %v2394_v17 = vsel %vm6727_vm14, %v2392_v60, %v2393_v55  ;;  %v2398_v1 = vrot.slane %v2396_v15, 4  ;;  %v2397_v62 = vsel %vm6727_vm14, %v2395_v16, %v2396_v15  ;;  %v2789_v51 = vld [vmem:[#allocation2 + $0x84] sm:$0xf] }
 0x1f4   : > { %v2447_v38 = vpop.permute.xlu1 %2446  ;;  %v6354_v13 = vld [vmem:[#allocation3 + $0x48] sm:$0xff]   ;;  %v2401_v14 = vrot.slane %v2399_v52, 4  ;;  %v2402_v25 = vrot.slane %v2270_v20, 5  ;;  %v3091_v18 = vshll.u32 %v2788_v47, 16  ;;  %v8926_v2 = vrot.slane %v3081_v12, 5 }
 0x1f5   : > { %2522 = vst.msk [vmem:[#allocation3 + $0x54] sm:$0xf] %vm9811_vm1, %v2447_v38  ;;  %6252 = vmatmul.mubr.msk.bf16.gmra.mxu0 %vm4744_vm4, %v6354_v13  ;;  %v2449_v39 = vpop.permute.xlu0 %2448  ;;  %vm9817_vm1 = vmmov %vm9816_vm7  ;;  %v3087_v8 = vrot.slane %v3085_v31, 4  ;;  %v3095_v42 = vshrl.u32 %v2788_v47, 16  ;;  %v3077_v33 = vrot.slane %v3075_v4, 4  ;;  %v2400_v26 = vsel %vm6727_vm14, %v2398_v1, %v2399_v52 }
 0x1f6   : > { %1875 = vrot.lane.b32.xlu1 %v1796_v40, %s6402_s9  ;;  %2523 = vst.msk [vmem:[#allocation3 + $0x58] sm:$0xf] %vm9814_vm13, %v2449_v39  ;;  %vm9818_vm13 = vmmov %vm9817_vm1  ;;  %v2561_v28 = vld [vmem:[#allocation2 + $0x78] sm:$0xf]  ;;  %v3101_v63 = vshll.u32 %v2789_v51, 16  ;;  %v3105_v59 = vshrl.u32 %v2789_v51, 16  ;;  %v2403_v50 = vsel %vm6727_vm14, %v2401_v14, %v2402_v25 }
 0x1f7   : > { %4528 = vrot.lane.b32.xlu0 %v4460_v19, %s6409_s16  ;;  %v2562_v38 = vld [vmem:[#allocation2 + $0x7c] sm:$0xf]  ;;  %v2564_v10 = vld [vmem:[#allocation2 + $0x84] sm:$0xf]  ;;  %v3088_v22 = vor.u32 %v3087_v8, %v8926_v2  ;;  %v8937_v30 = vrot.slane %v3091_v18, 5  ;;  %v3078_v6 = vor.u32 %v3077_v33, %v8654_v24  ;;  %v3097_v39 = vrot.slane %v3095_v42, 4 }
 0x1f8   : > { %v2451_v36 = vpop.permute.xlu1 %2450  ;;  %v2593_v37 = vsel %vm8777_vm15, %v2561_v28, 0  ;;  %v2563_v7 = vld [vmem:[#allocation2 + $0x80] sm:$0xf]  ;;  %v2594_v57 = vsel %vm6473_vm3, %v2562_v38, 0  ;;  %v8947_v61 = vrot.slane %v3101_v63, 5  ;;  %v2596_v27 = vsel %vm6473_vm3, %v2564_v10, 0 }
 0x1f9   : > { %2524 = vst.msk [vmem:[#allocation3 + $0x5c] sm:$0xf] %vm9815_vm10, %v2451_v36  ;;  %v2670_v0 = vpop.permute.xlu0 %2669  ;;  %vm9819_vm10 = vmmov %vm9817_vm1  ;;  %v3273_v24 = vld [vmem:[#allocation2 + $0x7c] sm:$0xf]  ;;  %v2595_v15 = vsel %vm8843_vm6, %v2563_v7, 0  ;;  %v3089_v52 = vrot.slane %v3088_v22, 4 }
 0x1fa   : > { %4530 = vrot.lane.b32.xlu1 %v4463_v34, %s6409_s16  ;;  %2746 = vst.msk [vmem:[#allocation3 + $0x50] sm:$0xf] %vm9816_vm7, %v2670_v0  ;;  %vm9820_vm7 = vcmask 158848   ;;  %v2790_v0 = vld [vmem:[#allocation2 + $0x88] sm:$0x1]  ;;  %v3079_v4 = vrot.slane %v3078_v6, 4 }
 0x1fb   : > { %1877 = vrot.lane.b32.xlu0 %v1806_v43, %s6402_s9  ;;  %v3107_v43 = vrot.slane %v3105_v59, 4  ;;  %v3306_v14 = vsel %vm2234_vm8, %v3273_v24, 0  ;;  %v3275_v33 = vld [vmem:[#allocation2 + $0x84] sm:$0xf]  ;;  %v3274_v63 = vld [vmem:[#allocation2 + $0x80] sm:$0xf] }
 0x1fc   : > { %v2672_v5 = vpop.permute.xlu1 %2671  ;;  %v3084_v42 = vsel %vm6580_vm12, %v3079_v4, %v8926_v2  ;;  %v3429_v38 = vrot.slane %v3306_v14, 5  ;;  %v3308_v10 = vsel %vm2236_vm2, %v3275_v33, 0  ;;  %v3598_v33 = vld [vmem:[#allocation2 + $0x84] sm:$0xf] }
 0x1fd   : > { %2747 = vst.msk [vmem:[#allocation3 + $0x54] sm:$0xf] %vm9817_vm1, %v2672_v5  ;;  %v2674_v54 = vpop.permute.xlu0 %2673  ;;  %vm9821_vm1 = vmmov %vm9820_vm7  ;;  %v3098_v5 = vor.u32 %v3097_v39, %v8937_v30  ;;  %v3307_v39 = vsel %vm8886_vm0, %v3274_v63, 0 }
 0x1fe   : > { %1879 = vrot.lane.b32.xlu1 %v1816_v53, %s6402_s9  ;;  %2748 = vst.msk [vmem:[#allocation3 + $0x58] sm:$0xf] %vm9818_vm13, %v2674_v54  ;;  %v3108_v54 = vor.u32 %v3107_v43, %v8947_v61  ;;  %v3432_v43 = vrot.slane %v3307_v39, 5  ;;  %v4309_v39 = vld [vmem:[#allocation2 + $0x84] sm:$0xf]  ;;  %s6303_s9 = smul.u32 768, %s9909_s21 }
 0x1ff   : > { %2460 = vrot.lane.b32.xlu0 %v2394_v17, %s6403_s10  ;;  %v3099_v28 = vrot.slane %v3098_v5, 4  ;;  %v4342_v23 = vsel %vm2234_vm8, %v4309_v39, 0  ;;  %s6410_s21 = smov 120  }
 0x200   : > { %v2676_v32 = vpop.permute.xlu1 %2675  ;;  %v4465_v35 = vrot.slane %v4342_v23, 5 }
 0x201   : > { %2749 = vst.msk [vmem:[#allocation3 + $0x5c] sm:$0xf] %vm9819_vm10, %v2676_v32  ;;  %v3156_v40 = vpop.permute.xlu0 %3155  ;;  %vm9822_vm10 = vmmov %vm9821_vm1 }
 0x202   : > { %2462 = vrot.lane.b32.xlu1 %v2397_v62, %s6403_s10  ;;  %3232 = vst.msk [vmem:[#allocation3 + $0x50] sm:$0xf] %vm9820_vm7, %v3156_v40  ;;  %v6241_v19 = vpop.f32.mrf.mxu0  ;;  %vm9823_vm7 = vmmov %vm9821_vm1  ;;  %v3111_v62 = vshll.u32 %v2790_v0, 16 }
 0x203   : > { %2464 = vrot.lane.b32.xlu0 %v2400_v26, %s6403_s10  ;;  %v4856_v34 = vadd.f32 %v6241_v19, %v8632_v44 }
 0x204   : > { %v3158_v13 = vpop.permute.xlu1 %3157  ;;  %v4847_v36 = vpop.f32.mrf.mxu0  ;;  %v3113_v19 = vrot.slane %v3111_v62, 5 }
 0x205   : > { %3233 = vst.msk [vmem:[#allocation3 + $0x54] sm:$0xf] %vm9821_vm1, %v3158_v13  ;;  %v3160_v55 = vpop.permute.xlu0 %3159  ;;  %vm4964_vm13 = vcmp.gt.f32.partialorder %v4856_v34, 0.0  ;;  %v4996_v60 = vmul.f32 0.1, %v4856_v34  ;;  %v4848_v11 = vadd.f32 %v8632_v44, %v4847_v36  ;;  %v3109_v13 = vrot.slane %v3108_v54, 4 }
 0x206   : > { %2466 = vrot.lane.b32.xlu1 %v2403_v50, %s6403_s10  ;;  %3234 = vst.msk [vmem:[#allocation3 + $0x58] sm:$0xf] %vm9822_vm10, %v3160_v55  ;;  %v6242_v16 = vpop.f32.mrf.mxu0  ;;  %v3094_v50 = vsel %vm6580_vm12, %v3089_v52, %v8937_v30  ;;  %v3104_v30 = vsel %vm6580_vm12, %v3099_v28, %v8947_v61  ;;  %v3435_v55 = vrot.slane %v3308_v10, 5  ;;  %v4111_v61 = vshrl.u32 %v8726_v48, 16  ;;  %v3826_v10 = vld [vmem:[#allocation2 + $0x90] sm:$0x1] }
 0x207   : > { %2685 = vrot.lane.b32.xlu0 %v2593_v37, %s6404_s11  ;;  %v5028_v20 = vsel %vm4964_vm13, %v4856_v34, %v4996_v60  ;;  %vm4962_vm1 = vcmp.gt.f32.partialorder %v4848_v11, 0.0  ;;  %v4994_v47 = vmul.f32 0.1, %v4848_v11  ;;  %v4859_v12 = vadd.f32 %v6242_v16, %v8632_v44  ;;  %v3276_v34 = vld [vmem:[#allocation2 + $0x88] sm:$0x1] }
 0x208   : > { %v3162_v53 = vpop.permute.xlu1 %3161  ;;  %v6167_v31 = vpack.c.bf16 %v5028_v20, %v5028_v20  ;;  %v4850_v1 = vpop.f32.mrf.mxu0  ;;  %vm9824_vm13 = vcmask 191648   ;;  %v3428_v37 = vrot.slane %v8688_v29, 4  ;;  %v3114_v36 = vsel %vm6580_vm12, %v3109_v13, %v3113_v19  ;;  %v3823_v29 = vld [vmem:[#allocation2 + $0x84] sm:$0xf]  ;;  %v3825_v20 = vld [vmem:[#allocation2 + $0x8c] sm:$0xf] }
 0x209   : > { %3235 = vst.msk [vmem:[#allocation3 + $0x5c] sm:$0xf] %vm9823_vm7, %v3162_v53  ;;  %v3481_v17 = vpop.permute.xlu0 %3480  ;;  %v5026_v25 = vsel %vm4962_vm1, %v4848_v11, %v4994_v47  ;;  %vm4965_vm10 = vcmp.gt.f32.partialorder %v4859_v12, 0.0  ;;  %v4997_v18 = vmul.f32 0.1, %v4859_v12  ;;  %v4851_v51 = vadd.f32 %v8632_v44, %v4850_v1  ;;  %vm9825_vm7 = vmmov %vm9824_vm13 }
 0x20a   : > { %2687 = vrot.lane.b32.xlu1 %v2594_v57, %s6404_s11  ;;  %3557 = vst.msk [vmem:[#allocation3 + $0x50] sm:$0xf] %vm9824_vm13, %v3481_v17  ;;  %v6165_v32 = vpack.c.bf16 %v5026_v25, %v5026_v25  ;;  %vm9826_vm13 = vmmov %vm9825_vm7  ;;  %v3431_v57 = vrot.slane %v3429_v38, 4  ;;  %v3309_v24 = vsel %vm2237_vm9, %v3276_v34, 0  ;;  %v3430_v11 = vsel %vm6727_vm14, %v3428_v37, %v3429_v38  ;;  %v3597_v25 = vld [vmem:[#allocation2 + $0x80] sm:$0xf] }
 0x20b   : > { %5189 = vst.msk [vmem:[#allocation3 + $0x18] sm:$0xf] %vm5182_vm11, %v6167_v31  ;;  %2689 = vrot.lane.b32.xlu0 %v2595_v15, %s6404_s11  ;;  %v5029_v26 = vsel %vm4965_vm10, %v4859_v12, %v4997_v18  ;;  %vm4963_vm1 = vcmp.gt.f32.partialorder %v4851_v51, 0.0  ;;  %v4995_v40 = vmul.f32 0.1, %v4851_v51  ;;  %vm9827_vm10 = vmmov %vm9825_vm7  ;;  %v3437_v53 = vrot.slane %v3435_v55, 4 }
 0x20c   : > { %v3483_v8 = vpop.permute.xlu1 %3482  ;;  %5187 = vst.msk [vmem:[#allocation3 + $0x10] sm:$0xf] %vm5182_vm11, %v6165_v32  ;;  %v6168_v44 = vpack.c.bf16 %v5029_v26, %v5029_v26  ;;  %v3438_v16 = vrot.slane %v3309_v24, 5  ;;  %v3824_v15 = vld [vmem:[#allocation2 + $0x88] sm:$0xf]  ;;  %v3433_v52 = vsel %vm6727_vm14, %v3431_v57, %v3432_v43  ;;  %v4117_v4 = vshll.u32 %v3823_v29, 16 }
 0x20d   : > { %3558 = vst.msk [vmem:[#allocation3 + $0x54] sm:$0xf] %vm9825_vm7, %v3483_v8  ;;  %v3485_v59 = vpop.permute.xlu0 %3484  ;;  %v5027_v2 = vsel %vm4963_vm1, %v4851_v51, %v4995_v40  ;;  %vm9828_vm7 = vcmask 224448   ;;  %v4121_v5 = vshrl.u32 %v3823_v29, 16  ;;  %v4127_v31 = vshll.u32 %v3824_v15, 16 }
 0x20e   : > { %2691 = vrot.lane.b32.xlu1 %v2596_v27, %s6404_s11  ;;  %3559 = vst.msk [vmem:[#allocation3 + $0x58] sm:$0xf] %vm9826_vm13, %v3485_v59  ;;  %v6166_v22 = vpack.c.bf16 %v5027_v2, %v5027_v2  ;;  %vm9829_vm1 = vmmov %vm9828_vm7  ;;  %v3434_v27 = vrot.slane %v3432_v43, 4  ;;  %v4131_v17 = vshrl.u32 %v3824_v15, 16  ;;  %v4113_v1 = vrot.slane %v4111_v61, 4 }
 0x20f   : > { %5190 = vst.msk [vmem:[#allocation3 + $0x1c] sm:$0xf] %vm5182_vm11, %v6168_v44  ;;  %3171 = vrot.lane.b32.xlu0 %v3084_v42, %s6405_s12  ;;  %vm9830_vm13 = vmmov %vm9829_vm1  ;;  %v3439_v62 = vsel %vm6727_vm14, %v3437_v53, %v3438_v16  ;;  %v4119_v18 = vrot.slane %v4117_v4, 5  ;;  %v4123_v51 = vrot.slane %v4121_v5, 4  ;;  %v4137_v32 = vshll.u32 %v3825_v20, 16 }
 0x210   : > { %v3487_v6 = vpop.permute.xlu1 %3486  ;;  %5188 = vst.msk [vmem:[#allocation3 + $0x14] sm:$0xf] %vm5182_vm11, %v6166_v22  ;;  %v3436_v47 = vsel %vm6727_vm14, %v3434_v27, %v3435_v55  ;;  %v4141_v8 = vshrl.u32 %v3825_v20, 16  ;;  %v3629_v26 = vsel %vm8777_vm15, %v3597_v25, 0  ;;  %v4129_v40 = vrot.slane %v4127_v31, 5 }
 0x211   : > { %3560 = vst.msk [vmem:[#allocation3 + $0x5c] sm:$0xf] %vm9827_vm10, %v3487_v6  ;;  %v3706_v7 = vpop.permute.xlu0 %3705  ;;  %vm9831_vm10 = vmmov %vm9829_vm1  ;;  %v4114_v28 = vor.u32 %v4113_v1, %v8784_v21  ;;  %v4133_v63 = vrot.slane %v4131_v17, 4  ;;  %v3599_v59 = vld [vmem:[#allocation2 + $0x88] sm:$0xf]  ;;  %v4124_v38 = vor.u32 %v4123_v51, %v4119_v18  ;;  %v4139_v2 = vrot.slane %v4137_v32, 5 }
 0x212   : > { %3173 = vrot.lane.b32.xlu1 %v3094_v50, %s6405_s12  ;;  %3782 = vst.msk [vmem:[#allocation3 + $0x50] sm:$0xf] %vm9828_vm7, %v3706_v7  ;;  %vm9832_vm7 = vcmask 257248   ;;  %v3630_v50 = vsel %vm6473_vm3, %v3598_v33, 0  ;;  %v4143_v13 = vrot.slane %v4141_v8, 4  ;;  %v3631_v21 = vsel %vm8843_vm6, %v3599_v59, 0 }
 0x213   : > { %3175 = vrot.lane.b32.xlu0 %v3104_v30, %s6405_s12  ;;  %v4115_v22 = vrot.slane %v4114_v28, 4  ;;  %v4134_v6 = vor.u32 %v4133_v63, %v4129_v40  ;;  %v3632_v30 = vsel %vm6473_vm3, %v3600_v45, 0  ;;  %v4125_v37 = vrot.slane %v4124_v38, 4  ;;  %v4310_v24 = vld [vmem:[#allocation2 + $0x88] sm:$0xf] }
 0x214   : > { %v3708_v60 = vpop.permute.xlu1 %3707  ;;  %v4144_v7 = vor.u32 %v4143_v13, %v4139_v2  ;;  %v4147_v55 = vshll.u32 %v3826_v10, 16  ;;  %vm9838_vm3 = vcmask 60448   ;;  %v4464_v15 = vrot.slane %v8877_v58, 4 }
 0x215   : > { %3783 = vst.msk [vmem:[#allocation3 + $0x54] sm:$0xf] %vm9829_vm1, %v3708_v60  ;;  %v3710_v0 = vpop.permute.xlu0 %3709  ;;  %vm9833_vm1 = vmmov %vm9832_vm7  ;;  %v4120_v57 = vsel %vm6580_vm12, %v4115_v22, %v4119_v18  ;;  %v4135_v43 = vrot.slane %v4134_v6, 4  ;;  %v4311_v60 = vld [vmem:[#allocation2 + $0x8c] sm:$0xf]  ;;  %v4130_v29 = vsel %vm6580_vm12, %v4125_v37, %v4129_v40  ;;  %v4467_v5 = vrot.slane %v4465_v35, 4 }
 0x216   : > { %3177 = vrot.lane.b32.xlu1 %v3114_v36, %s6405_s12  ;;  %3784 = vst.msk [vmem:[#allocation3 + $0x58] sm:$0xf] %vm9830_vm13, %v3710_v0  ;;  %v6356_v14 = vld [vmem:[#allocation3 + $0x18] sm:$0xff]   ;;  %vm9834_vm13 = vmmov %vm9833_vm1  ;;  %v4145_v61 = vrot.slane %v4144_v7, 4  ;;  %v4343_v0 = vsel %vm8886_vm0, %v4310_v24, 0  ;;  %v4344_v53 = vsel %vm2236_vm2, %v4311_v60, 0  ;;  %v4466_v58 = vsel %vm6727_vm14, %v4464_v15, %v4465_v35 }
 0x217   : > { %3496 = vrot.lane.b32.xlu0 %v3430_v11, %s6406_s13  ;;  %v6355_v12 = vld [vmem:[#allocation3 + $0x10] sm:$0xff]   ;;  %vm9835_vm15 = vmmov %vm9833_vm1  ;;  %v4149_v11 = vrot.slane %v4147_v55, 5  ;;  %v4140_v16 = vsel %vm6580_vm12, %v4135_v43, %v4139_v2  ;;  %v4471_v9 = vrot.slane %v4344_v53, 5 }
 0x218   : > { %v3712_v48 = vpop.permute.xlu1 %3711  ;;  %6273 = vmatprep.mubr.msk.bf16.mxu1 %vm5335_vm5, %v6355_v12  ;;  %vm9839_vm8 = vmmov %vm9838_vm3 }
 0x219   : > { %3785 = vst.msk [vmem:[#allocation3 + $0x5c] sm:$0xf] %vm9831_vm10, %v3712_v48  ;;  %v4192_v54 = vpop.permute.xlu0 %4191  ;;  %6274 = vmatmul.mubr.msk.bf16.gmra.mxu1 %vm5335_vm5, %v6356_v14  ;;  %vm9836_vm10 = vcmask 290048   ;;  %v4150_v41 = vsel %vm6580_vm12, %v4145_v61, %v4149_v11  ;;  %v4468_v48 = vrot.slane %v4343_v0, 5  ;;  %vm9842_vm12 = vmmov %vm9838_vm3  ;;  %v4473_v1 = vrot.slane %v4471_v9, 4 }
 0x21a   : > { %3498 = vrot.lane.b32.xlu1 %v3433_v52, %s6406_s13  ;;  %4268 = vst.msk [vmem:[#allocation3 + $0x50] sm:$0xf] %vm9832_vm7, %v4192_v54  ;;  %vm9837_vm6 = vmmov %vm9836_vm10  ;;  %v4312_v52 = vld [vmem:[#allocation2 + $0x90] sm:$0x1] }
 0x21b   : > { %3500 = vrot.lane.b32.xlu0 %v3436_v47, %s6406_s13  ;;  %vm9840_vm7 = vmmov %vm9837_vm6  ;;  %v4345_v12 = vsel %vm2237_vm9, %v4312_v52, 0  ;;  %v4470_v31 = vrot.slane %v4468_v48, 4  ;;  %v4469_v17 = vsel %vm6727_vm14, %v4467_v5, %v4468_v48  ;;  %vm9844_vm9 = vcmask 93248  }
 0x21c   : > { %v4194_v42 = vpop.permute.xlu1 %4193  ;;  %vm9841_vm0 = vmmov %vm9837_vm6  ;;  %v4474_v54 = vrot.slane %v4345_v12, 5 }
 0x21d   : > { %4269 = vst.msk [vmem:[#allocation3 + $0x54] sm:$0xf] %vm9833_vm1, %v4194_v42  ;;  %v4196_v44 = vpop.permute.xlu0 %4195  ;;  %vm9843_vm2 = vmmov %vm9838_vm3 }
 0x21e   : > { %3502 = vrot.lane.b32.xlu1 %v3439_v62, %s6406_s13  ;;  %4270 = vst.msk [vmem:[#allocation3 + $0x58] sm:$0xf] %vm9834_vm13, %v4196_v44  ;;  %v4472_v62 = vsel %vm6727_vm14, %v4470_v31, %v4471_v9  ;;  %v4475_v25 = vsel %vm6727_vm14, %v4473_v1, %v4474_v54  ;;  %vm9845_vm1 = vmmov %vm9844_vm9 }
 0x21f   : > { %3721 = vrot.lane.b32.xlu0 %v3629_v26, %s6407_s14  ;;  %vm9846_vm13 = vmmov %vm9845_vm1  ;;  %v9084_v26 = vld [vmem:[%s9515_s3] ss:$0 sm:$0xff] }
 0x220   : > { %v4198_v19 = vpop.permute.xlu1 %4197 }
 0x221   : > { %4271 = vst.msk [vmem:[#allocation3 + $0x5c] sm:$0xf] %vm9835_vm15, %v4198_v19  ;;  %v4517_v34 = vpop.permute.xlu0 %4516  ;;  %vm9847_vm15 = vmmov %vm9845_vm1 }
 0x222   : > { %3723 = vrot.lane.b32.xlu1 %v3630_v50, %s6407_s14  ;;  %4593 = vst.msk [vmem:[#allocation3 + $0x50] sm:$0xf] %vm9836_vm10, %v4517_v34  ;;  %vm9848_vm10 = vcmask 126048  }
 0x223   : > { %3725 = vrot.lane.b32.xlu0 %v3631_v21, %s6407_s14  ;;  %vm9849_vm14 = vmmov %vm9848_vm10 }
 0x224   : > { %v4519_v36 = vpop.permute.xlu1 %4518 }
 0x225   : > { %4594 = vst.msk [vmem:[#allocation3 + $0x54] sm:$0xf] %vm9837_vm6, %v4519_v36  ;;  %v1866_v3 = vpop.permute.xlu0 %1865 }
 0x226   : > { %3727 = vrot.lane.b32.xlu1 %v3632_v30, %s6407_s14  ;;  %1938 = vst.msk [vmem:[#allocation3 + $0x60] sm:$0xf] %vm9838_vm3, %v1866_v3  ;;  %vm9850_vm3 = vmmov %vm9848_vm10  ;;  %s9168_s14 = scalar_lea.vmem %s9518_s6, %s6303_s9 }
 0x227   : > { %4207 = vrot.lane.b32.xlu0 %v4120_v57, %s6408_s15 }
 0x228   : > { %v1868_v27 = vpop.permute.xlu1 %1867 }
 0x229   : > { %1939 = vst.msk [vmem:[#allocation3 + $0x64] sm:$0xf] %vm9839_vm8, %v1868_v27  ;;  %v4521_v4 = vpop.permute.xlu0 %4520  ;;  %vm9851_vm8 = vmmov %vm9850_vm3 }
 0x22a   : > { %4209 = vrot.lane.b32.xlu1 %v4130_v29, %s6408_s15  ;;  %4595 = vst.msk [vmem:[#allocation3 + $0x58] sm:$0xf] %vm9840_vm7, %v4521_v4 }
 0x22b   : > { %4211 = vrot.lane.b32.xlu0 %v4140_v16, %s6408_s15 }
 0x22c   : > { %v4523_v20 = vpop.permute.xlu1 %4522  ;;  %v6357_v47 = vld [vmem:[#allocation3 + $0x50] sm:$0xff]  }
 0x22d   : > { %4596 = vst.msk [vmem:[#allocation3 + $0x5c] sm:$0xf] %vm9841_vm0, %v4523_v20  ;;  %6255 = vmatprep.mubr.msk.bf16.mxu0 %vm4744_vm4, %v6357_v47  ;;  %v1870_v56 = vpop.permute.xlu0 %1869 }
 0x22e   : > { %4213 = vrot.lane.b32.xlu1 %v4150_v41, %s6408_s15  ;;  %1940 = vst.msk [vmem:[#allocation3 + $0x68] sm:$0xf] %vm9842_vm12, %v1870_v56  ;;  %vm9852_vm12 = vcmask 158848   ;;  %s6411_s15 = smov 112  }
 0x22f   : > { %4532 = vrot.lane.b32.xlu0 %v4466_v58, %s6409_s16 }
 0x230   : > { %v1872_v49 = vpop.permute.xlu1 %1871 }
 0x231   : > { %1941 = vst.msk [vmem:[#allocation3 + $0x6c] sm:$0xf] %vm9843_vm2, %v1872_v49  ;;  %v2453_v14 = vpop.permute.xlu0 %2452  ;;  %vm9853_vm2 = vmmov %vm9852_vm12 }
 0x232   : > { %4534 = vrot.lane.b32.xlu1 %v4469_v17, %s6409_s16  ;;  %2525 = vst.msk [vmem:[#allocation3 + $0x60] sm:$0xf] %vm9844_vm9, %v2453_v14 }
 0x233   : > { %4536 = vrot.lane.b32.xlu0 %v4472_v62, %s6409_s16 }
 0x234   : > { %v2455_v18 = vpop.permute.xlu1 %2454  ;;  %v6358_v51 = vld [vmem:[#allocation3 + $0x58] sm:$0xff]  }
 0x235   : > { %2526 = vst.msk [vmem:[#allocation3 + $0x64] sm:$0xf] %vm9845_vm1, %v2455_v18  ;;  %6256 = vmatmul.mubr.msk.bf16.gmra.mxu0 %vm4744_vm4, %v6358_v51  ;;  %v2457_v32 = vpop.permute.xlu0 %2456  ;;  %vm9854_vm1 = vmmov %vm9853_vm2 }
 0x236   : > { %4538 = vrot.lane.b32.xlu1 %v4475_v25, %s6409_s16  ;;  %2527 = vst.msk [vmem:[#allocation3 + $0x68] sm:$0xf] %vm9846_vm13, %v2457_v32  ;;  %vm9855_vm13 = vmmov %vm9854_vm1 }
 0x238   : > { %v2459_v8 = vpop.permute.xlu1 %2458 }
 0x239   : > { %2528 = vst.msk [vmem:[#allocation3 + $0x6c] sm:$0xf] %vm9847_vm15, %v2459_v8  ;;  %v2678_v42 = vpop.permute.xlu0 %2677  ;;  %vm9856_vm15 = vcmask 191648  }
 0x23a   : > { %2750 = vst.msk [vmem:[#allocation3 + $0x60] sm:$0xf] %vm9848_vm10, %v2678_v42  ;;  %v6245_v33 = vpop.f32.mrf.mxu0  ;;  %vm9857_vm10 = vmmov %vm9856_vm15 }
 0x23b   : > { %v4872_v40 = vadd.f32 %v9084_v26, %v6245_v33 }
 0x23c   : > { %v2680_v46 = vpop.permute.xlu1 %2679  ;;  %v4863_v63 = vpop.f32.mrf.mxu0 }
 0x23d   : > { %2751 = vst.msk [vmem:[#allocation3 + $0x64] sm:$0xf] %vm9849_vm14, %v2680_v46  ;;  %v2682_v28 = vpop.permute.xlu0 %2681  ;;  %vm4968_vm6 = vcmp.gt.f32.partialorder %v4872_v40, 0.0  ;;  %v5000_v44 = vmul.f32 0.1, %v4872_v40  ;;  %v4864_v59 = vadd.f32 %v9084_v26, %v4863_v63  ;;  %vm9858_vm14 = vmmov %vm9857_vm10 }
 0x23e   : > { %2752 = vst.msk [vmem:[#allocation3 + $0x68] sm:$0xf] %vm9850_vm3, %v2682_v28  ;;  %v6246_v38 = vpop.f32.mrf.mxu0  ;;  %vm9860_vm3 = vcmask 224448  }
 0x23f   : > { %v5032_v2 = vsel %vm4968_vm6, %v4872_v40, %v5000_v44  ;;  %vm4966_vm7 = vcmp.gt.f32.partialorder %v4864_v59, 0.0  ;;  %v4998_v13 = vmul.f32 0.1, %v4864_v59  ;;  %v4875_v19 = vadd.f32 %v9084_v26, %v6246_v38  ;;  %vm9859_vm6 = vmmov %vm9857_vm10 }
 0x240   : > { %v2684_v50 = vpop.permute.xlu1 %2683  ;;  %v6171_v45 = vpack.c.bf16 %v5032_v2, %v5032_v2  ;;  %v4866_v21 = vpop.f32.mrf.mxu0 }
 0x241   : > { %2753 = vst.msk [vmem:[#allocation3 + $0x6c] sm:$0xf] %vm9851_vm8, %v2684_v50  ;;  %v3164_v10 = vpop.permute.xlu0 %3163  ;;  %v5030_v22 = vsel %vm4966_vm7, %v4864_v59, %v4998_v13  ;;  %vm4969_vm0 = vcmp.gt.f32.partialorder %v4875_v19, 0.0  ;;  %v5001_v6 = vmul.f32 0.1, %v4875_v19  ;;  %v4867_v39 = vadd.f32 %v9084_v26, %v4866_v21  ;;  %vm9861_vm8 = vmmov %vm9860_vm3 }
 0x242   : > { %3236 = vst.msk [vmem:[#allocation3 + $0x60] sm:$0xf] %vm9852_vm12, %v3164_v10  ;;  %v6169_v34 = vpack.c.bf16 %v5030_v22, %v5030_v22  ;;  %vm9862_vm7 = vmmov %vm9860_vm3  ;;  %vm9864_vm12 = vcmask 257248  }
 0x243   : > { %5193 = vst.msk [vmem:[#allocation3 + $0x28] sm:$0xf] %vm5182_vm11, %v6171_v45  ;;  %v5033_v37 = vsel %vm4969_vm0, %v4875_v19, %v5001_v6  ;;  %vm4967_vm9 = vcmp.gt.f32.partialorder %v4867_v39, 0.0  ;;  %v4999_v7 = vmul.f32 0.1, %v4867_v39  ;;  %vm9863_vm0 = vmmov %vm9860_vm3 }
 0x244   : > { %v3166_v30 = vpop.permute.xlu1 %3165  ;;  %5191 = vst.msk [vmem:[#allocation3 + $0x20] sm:$0xf] %vm5182_vm11, %v6169_v34  ;;  %v6172_v55 = vpack.c.bf16 %v5033_v37, %v5033_v37 }
 0x245   : > { %3237 = vst.msk [vmem:[#allocation3 + $0x64] sm:$0xf] %vm9853_vm2, %v3166_v30  ;;  %v3168_v36 = vpop.permute.xlu0 %3167  ;;  %v5031_v23 = vsel %vm4967_vm9, %v4867_v39, %v4999_v7  ;;  %vm9865_vm2 = vmmov %vm9864_vm12 }
 0x246   : > { %3238 = vst.msk [vmem:[#allocation3 + $0x68] sm:$0xf] %vm9854_vm1, %v3168_v36  ;;  %v6170_v57 = vpack.c.bf16 %v5031_v23, %v5031_v23  ;;  %vm9866_vm9 = vmmov %vm9865_vm2 }
 0x247   : > { %5194 = vst.msk [vmem:[#allocation3 + $0x2c] sm:$0xf] %vm5182_vm11, %v6172_v55  ;;  %vm9867_vm1 = vmmov %vm9865_vm2 }
 0x248   : > { %v3170_v43 = vpop.permute.xlu1 %3169  ;;  %5192 = vst.msk [vmem:[#allocation3 + $0x24] sm:$0xf] %vm5182_vm11, %v6170_v57 }
 0x249   : > { %3239 = vst.msk [vmem:[#allocation3 + $0x6c] sm:$0xf] %vm9855_vm13, %v3170_v43  ;;  %v3489_v24 = vpop.permute.xlu0 %3488  ;;  %vm9868_vm13 = vcmask 290048  }
 0x24a   : > { %3561 = vst.msk [vmem:[#allocation3 + $0x60] sm:$0xf] %vm9856_vm15, %v3489_v24  ;;  %vm9869_vm15 = vmmov %vm9868_vm13 }
 0x24c   : > { %v3491_v60 = vpop.permute.xlu1 %3490 }
 0x24d   : > { %3562 = vst.msk [vmem:[#allocation3 + $0x64] sm:$0xf] %vm9857_vm10, %v3491_v60  ;;  %v3493_v3 = vpop.permute.xlu0 %3492  ;;  %vm9870_vm10 = vcmask 60448  }
 0x24e   : > { %3563 = vst.msk [vmem:[#allocation3 + $0x68] sm:$0xf] %vm9858_vm14, %v3493_v3  ;;  %v6360_v35 = vld [vmem:[#allocation3 + $0x28] sm:$0xff]   ;;  %vm9871_vm14 = vmmov %vm9870_vm10 }
 0x24f   : > { %v6359_v61 = vld [vmem:[#allocation3 + $0x20] sm:$0xff]  }
 0x250   : > { %v3495_v29 = vpop.permute.xlu1 %3494  ;;  %6277 = vmatprep.mubr.msk.bf16.mxu1 %vm5335_vm5, %v6359_v61 }
 0x251   : > { %3564 = vst.msk [vmem:[#allocation3 + $0x6c] sm:$0xf] %vm9859_vm6, %v3495_v29  ;;  %v3714_v11 = vpop.permute.xlu0 %3713  ;;  %6278 = vmatmul.mubr.msk.bf16.gmra.mxu1 %vm5335_vm5, %v6360_v35  ;;  %vm9872_vm6 = vmmov %vm9868_vm13 }
 0x252   : > { %3786 = vst.msk [vmem:[#allocation3 + $0x60] sm:$0xf] %vm9860_vm3, %v3714_v11  ;;  %vm9873_vm3 = vmmov %vm9872_vm6 }
 0x254   : > { %v3716_v27 = vpop.permute.xlu1 %3715 }
 0x255   : > { %3787 = vst.msk [vmem:[#allocation3 + $0x64] sm:$0xf] %vm9861_vm8, %v3716_v27  ;;  %v3718_v0 = vpop.permute.xlu0 %3717  ;;  %vm9874_vm8 = vmmov %vm9870_vm10 }
 0x256   : > { %3788 = vst.msk [vmem:[#allocation3 + $0x68] sm:$0xf] %vm9862_vm7, %v3718_v0  ;;  %vm9875_vm7 = vmmov %vm9874_vm8  ;;  %v9162_v0 = vld [vmem:[%s9517_s5] ss:$0 sm:$0xff] }
 0x258   : > { %v3720_v53 = vpop.permute.xlu1 %3719 }
 0x259   : > { %3789 = vst.msk [vmem:[#allocation3 + $0x6c] sm:$0xf] %vm9863_vm0, %v3720_v53  ;;  %v4200_v16 = vpop.permute.xlu0 %4199  ;;  %vm9876_vm0 = vcmask 93248  }
 0x25a   : > { %4272 = vst.msk [vmem:[#allocation3 + $0x60] sm:$0xf] %vm9864_vm12, %v4200_v16  ;;  %vm9877_vm12 = vmmov %vm9876_vm0 }
 0x25c   : > { %v4202_v15 = vpop.permute.xlu1 %4201 }
 0x25d   : > { %4273 = vst.msk [vmem:[#allocation3 + $0x64] sm:$0xf] %vm9865_vm2, %v4202_v15  ;;  %v4204_v52 = vpop.permute.xlu0 %4203  ;;  %vm9878_vm2 = vmmov %vm9876_vm0 }
 0x25e   : > { %4274 = vst.msk [vmem:[#allocation3 + $0x68] sm:$0xf] %vm9866_vm9, %v4204_v52 }
 0x260   : > { %v4206_v4 = vpop.permute.xlu1 %4205 }
 0x261   : > { %4275 = vst.msk [vmem:[#allocation3 + $0x6c] sm:$0xf] %vm9867_vm1, %v4206_v4  ;;  %v4525_v41 = vpop.permute.xlu0 %4524  ;;  %vm9879_vm1 = vmmov %vm9876_vm0 }
 0x262   : > { %4597 = vst.msk [vmem:[#allocation3 + $0x60] sm:$0xf] %vm9868_vm13, %v4525_v41 }
 0x264   : > { %v4527_v5 = vpop.permute.xlu1 %4526 }
 0x265   : > { %4598 = vst.msk [vmem:[#allocation3 + $0x64] sm:$0xf] %vm9869_vm15, %v4527_v5  ;;  %v1874_v48 = vpop.permute.xlu0 %1873  ;;  %vm9880_vm15 = vcmask 126048  }
 0x266   : > { %1942 = vst.msk [vmem:[#allocation3 + $0x70] sm:$0xf] %vm9870_vm10, %v1874_v48 }
 0x268   : > { %v1876_v9 = vpop.permute.xlu1 %1875 }
 0x269   : > { %1943 = vst.msk [vmem:[#allocation3 + $0x74] sm:$0xf] %vm9871_vm14, %v1876_v9  ;;  %v4529_v20 = vpop.permute.xlu0 %4528  ;;  %vm9881_vm14 = vmmov %vm9880_vm15 }
 0x26a   : > { %4599 = vst.msk [vmem:[#allocation3 + $0x68] sm:$0xf] %vm9872_vm6, %v4529_v20 }
 0x26c   : > { %v4531_v47 = vpop.permute.xlu1 %4530  ;;  %v6361_v12 = vld [vmem:[#allocation3 + $0x60] sm:$0xff]  }
 0x26d   : > { %4600 = vst.msk [vmem:[#allocation3 + $0x6c] sm:$0xf] %vm9873_vm3, %v4531_v47  ;;  %6259 = vmatprep.mubr.msk.bf16.mxu0 %vm4744_vm4, %v6361_v12  ;;  %v1878_v58 = vpop.permute.xlu0 %1877  ;;  %vm9882_vm3 = vmmov %vm9881_vm14 }
 0x26e   : > { %1944 = vst.msk [vmem:[#allocation3 + $0x78] sm:$0xf] %vm9874_vm8, %v1878_v58  ;;  %vm9883_vm8 = vmmov %vm9882_vm3 }
 0x270   : > { %v1880_v31 = vpop.permute.xlu1 %1879 }
 0x271   : > { %1945 = vst.msk [vmem:[#allocation3 + $0x7c] sm:$0xf] %vm9875_vm7, %v1880_v31  ;;  %v2461_v56 = vpop.permute.xlu0 %2460  ;;  %vm9884_vm7 = vcmask 158848  }
 0x272   : > { %2529 = vst.msk [vmem:[#allocation3 + $0x70] sm:$0xf] %vm9876_vm0, %v2461_v56  ;;  %vm9885_vm0 = vmmov %vm9884_vm7 }
 0x274   : > { %v2463_v17 = vpop.permute.xlu1 %2462  ;;  %v6362_v1 = vld [vmem:[#allocation3 + $0x68] sm:$0xff]  }
 0x275   : > { %2530 = vst.msk [vmem:[#allocation3 + $0x74] sm:$0xf] %vm9877_vm12, %v2463_v17  ;;  %v6249_v54 = vpop.f32.mrf.mxu0  ;;  %6260 = vmatmul.mubr.msk.bf16.gmra.mxu0 %vm4744_vm4, %v6362_v1  ;;  %v2465_v49 = vpop.permute.xlu0 %2464  ;;  %vm9886_vm12 = vmmov %vm9885_vm0 }
 0x276   : > { %v4888_v62 = vadd.f32 %v9084_v26, %v6249_v54  ;;  %2531 = vst.msk [vmem:[#allocation3 + $0x78] sm:$0xf] %vm9878_vm2, %v2465_v49  ;;  %vm9887_vm2 = vmmov %vm9885_vm0 }
 0x277   : > { %v4879_v25 = vpop.f32.mrf.mxu0 }
 0x278   : > { %v2467_v14 = vpop.permute.xlu1 %2466  ;;  %vm4972_vm9 = vcmp.gt.f32.partialorder %v4888_v62, 0.0  ;;  %v5004_v18 = vmul.f32 0.1, %v4888_v62  ;;  %v4880_v51 = vadd.f32 %v9084_v26, %v4879_v25 }
 0x279   : > { %2532 = vst.msk [vmem:[#allocation3 + $0x7c] sm:$0xf] %vm9879_vm1, %v2467_v14  ;;  %v6250_v32 = vpop.f32.mrf.mxu0  ;;  %v2686_v8 = vpop.permute.xlu0 %2685 }
 0x27a   : > { %v5036_v42 = vsel %vm4972_vm9, %v4888_v62, %v5004_v18  ;;  %vm4970_vm13 = vcmp.gt.f32.partialorder %v4880_v51, 0.0  ;;  %v5002_v46 = vmul.f32 0.1, %v4880_v51  ;;  %v4891_v33 = vadd.f32 %v9084_v26, %v6250_v32  ;;  %2754 = vst.msk [vmem:[#allocation3 + $0x70] sm:$0xf] %vm9880_vm15, %v2686_v8 }
 0x27b   : > { %v6175_v40 = vpack.c.bf16 %v5036_v42, %v5036_v42  ;;  %v4882_v63 = vpop.f32.mrf.mxu0  ;;  %vm9888_vm9 = vcmask 191648  }
 0x27c   : > { %v2688_v28 = vpop.permute.xlu1 %2687  ;;  %v5034_v44 = vsel %vm4970_vm13, %v4880_v51, %v5002_v46  ;;  %vm4973_vm10 = vcmp.gt.f32.partialorder %v4891_v33, 0.0  ;;  %v5005_v59 = vmul.f32 0.1, %v4891_v33  ;;  %v4883_v50 = vadd.f32 %v9084_v26, %v4882_v63  ;;  %vm9889_vm1 = vmmov %vm9888_vm9 }
 0x27d   : > { %2755 = vst.msk [vmem:[#allocation3 + $0x74] sm:$0xf] %vm9881_vm14, %v2688_v28  ;;  %v6173_v38 = vpack.c.bf16 %v5034_v44, %v5034_v44  ;;  %v2690_v2 = vpop.permute.xlu0 %2689  ;;  %vm9890_vm13 = vmmov %vm9889_vm1 }
 0x27e   : > { %5197 = vst.msk [vmem:[#allocation3 + $0x38] sm:$0xf] %vm5182_vm11, %v6175_v40  ;;  %v5037_v13 = vsel %vm4973_vm10, %v4891_v33, %v5005_v59  ;;  %vm4971_vm6 = vcmp.gt.f32.partialorder %v4883_v50, 0.0  ;;  %v5003_v19 = vmul.f32 0.1, %v4883_v50  ;;  %vm9891_vm15 = vmmov %vm9889_vm1  ;;  %vm9892_vm10 = vcmask 224448  }
 0x27f   : > { %2756 = vst.msk [vmem:[#allocation3 + $0x78] sm:$0xf] %vm9882_vm3, %v2690_v2  ;;  %v6176_v45 = vpack.c.bf16 %v5037_v13, %v5037_v13  ;;  %vm9893_vm14 = vmmov %vm9892_vm10 }
 0x280   : > { %5195 = vst.msk [vmem:[#allocation3 + $0x30] sm:$0xf] %vm5182_vm11, %v6173_v38  ;;  %v2692_v10 = vpop.permute.xlu1 %2691  ;;  %v5035_v21 = vsel %vm4971_vm6, %v4883_v50, %v5003_v19  ;;  %vm9894_vm6 = vmmov %vm9892_vm10 }
 0x281   : > { %2757 = vst.msk [vmem:[#allocation3 + $0x7c] sm:$0xf] %vm9883_vm8, %v2692_v10  ;;  %v6174_v22 = vpack.c.bf16 %v5035_v21, %v5035_v21  ;;  %v3172_v6 = vpop.permute.xlu0 %3171  ;;  %vm9895_vm3 = vmmov %vm9894_vm6  ;;  %vm9896_vm8 = vcmask 257248  }
 0x282   : > { %5198 = vst.msk [vmem:[#allocation3 + $0x3c] sm:$0xf] %vm5182_vm11, %v6176_v45 }
 0x283   : > { %3240 = vst.msk [vmem:[#allocation3 + $0x70] sm:$0xf] %vm9884_vm7, %v3172_v6  ;;  %vm9897_vm7 = vmmov %vm9896_vm8 }
 0x284   : > { %5196 = vst.msk [vmem:[#allocation3 + $0x34] sm:$0xf] %vm5182_vm11, %v6174_v22  ;;  %v3174_v39 = vpop.permute.xlu1 %3173 }
 0x285   : > { %3241 = vst.msk [vmem:[#allocation3 + $0x74] sm:$0xf] %vm9885_vm0, %v3174_v39  ;;  %v3176_v34 = vpop.permute.xlu0 %3175  ;;  %vm9898_vm0 = vmmov %vm9897_vm7 }
 0x286   : > { %3242 = vst.msk [vmem:[#allocation3 + $0x78] sm:$0xf] %vm9886_vm12, %v3176_v34  ;;  %vm9899_vm12 = vmmov %vm9898_vm0 }
 0x288   : > { %v3178_v30 = vpop.permute.xlu1 %3177 }
 0x289   : > { %3243 = vst.msk [vmem:[#allocation3 + $0x7c] sm:$0xf] %vm9887_vm2, %v3178_v30  ;;  %v3497_v37 = vpop.permute.xlu0 %3496  ;;  %v6364_v36 = vld [vmem:[#allocation3 + $0x38] sm:$0xff]   ;;  %vm9900_vm2 = vcmask 290048  }
 0x28a   : > { %3565 = vst.msk [vmem:[#allocation3 + $0x70] sm:$0xf] %vm9888_vm9, %v3497_v37  ;;  %vm9901_vm9 = vmmov %vm9900_vm2 }
 0x28b   : > { %v6363_v7 = vld [vmem:[#allocation3 + $0x30] sm:$0xff]  }
 0x28c   : > { %v3499_v55 = vpop.permute.xlu1 %3498  ;;  %6281 = vmatprep.mubr.msk.bf16.mxu1 %vm5335_vm5, %v6363_v7 }
 0x28d   : > { %3566 = vst.msk [vmem:[#allocation3 + $0x74] sm:$0xf] %vm9889_vm1, %v3499_v55  ;;  %v3501_v23 = vpop.permute.xlu0 %3500  ;;  %6282 = vmatmul.mubr.msk.bf16.gmra.mxu1 %vm5335_vm5, %v6364_v36  ;;  %vm9902_vm1 = vmmov %vm9900_vm2 }
 0x28e   : > { %3567 = vst.msk [vmem:[#allocation3 + $0x78] sm:$0xf] %vm9890_vm13, %v3501_v23  ;;  %vm9903_vm13 = vmmov %vm9902_vm1 }
 0x290   : > { %v3503_v57 = vpop.permute.xlu1 %3502 }
 0x291   : > { %3568 = vst.msk [vmem:[#allocation3 + $0x7c] sm:$0xf] %vm9891_vm15, %v3503_v57  ;;  %v3722_v43 = vpop.permute.xlu0 %3721 }
 0x292   : > { %3790 = vst.msk [vmem:[#allocation3 + $0x70] sm:$0xf] %vm9892_vm10, %v3722_v43 }
 0x294   : > { %v3724_v24 = vpop.permute.xlu1 %3723 }
 0x295   : > { %3791 = vst.msk [vmem:[#allocation3 + $0x74] sm:$0xf] %vm9893_vm14, %v3724_v24  ;;  %v3726_v60 = vpop.permute.xlu0 %3725 }
 0x296   : > { %3792 = vst.msk [vmem:[#allocation3 + $0x78] sm:$0xf] %vm9894_vm6, %v3726_v60 }
 0x298   : > { %v3728_v3 = vpop.permute.xlu1 %3727 }
 0x299   : > { %3793 = vst.msk [vmem:[#allocation3 + $0x7c] sm:$0xf] %vm9895_vm3, %v3728_v3  ;;  %v4208_v29 = vpop.permute.xlu0 %4207 }
 0x29a   : > { %4276 = vst.msk [vmem:[#allocation3 + $0x70] sm:$0xf] %vm9896_vm8, %v4208_v29 }
 0x29c   : > { %v4210_v61 = vpop.permute.xlu1 %4209 }
 0x29d   : > { %4277 = vst.msk [vmem:[#allocation3 + $0x74] sm:$0xf] %vm9897_vm7, %v4210_v61  ;;  %v4212_v11 = vpop.permute.xlu0 %4211 }
 0x29e   : > { %4278 = vst.msk [vmem:[#allocation3 + $0x78] sm:$0xf] %vm9898_vm0, %v4212_v11 }
 0x2a0   : > { %v4214_v35 = vpop.permute.xlu1 %4213 }
 0x2a1   : > { %4279 = vst.msk [vmem:[#allocation3 + $0x7c] sm:$0xf] %vm9899_vm12, %v4214_v35  ;;  %v4533_v27 = vpop.permute.xlu0 %4532  ;;  %v6271_v16 = vpop.f32.mrf.mxu1 }
 0x2a2   : > { %4601 = vst.msk [vmem:[#allocation3 + $0x70] sm:$0xf] %vm9900_vm2, %v4533_v27  ;;  %v5431_v15 = vadd.f32 %v6271_v16, %v9162_v0 }
 0x2a3   : > { %v5422_v4 = vpop.f32.mrf.mxu1 }
 0x2a4   : > { %v4535_v53 = vpop.permute.xlu1 %4534  ;;  %5551 = vst.msk [vmem:[%s9168_s14 + $0x10] sm:$0xff] %vm5335_vm5, %v5431_v15  ;;  %v5423_v41 = vadd.f32 %v9162_v0, %v5422_v4  ;;  %5617 = vrot.lane.b32.xlu0 %v5431_v15, %s6410_s21 }
 0x2a5   : > { %4602 = vst.msk [vmem:[#allocation3 + $0x74] sm:$0xf] %vm9901_vm9, %v4535_v53  ;;  %v4537_v52 = vpop.permute.xlu0 %4536  ;;  %v6272_v48 = vpop.f32.mrf.mxu1 }
 0x2a6   : > { %4603 = vst.msk [vmem:[#allocation3 + $0x78] sm:$0xf] %vm9902_vm1, %v4537_v52  ;;  %v5434_v9 = vadd.f32 %v6272_v48, %v9162_v0 }
 0x2a7   : > { %5549 = vst.msk [vmem:[%s9168_s14] sm:$0xff] %vm5335_vm5, %v5423_v41  ;;  %v5425_v20 = vpop.f32.mrf.mxu1 }
 0x2a8   : > { %v4539_v5 = vpop.permute.xlu1 %4538  ;;  %5552 = vst.msk [vmem:[%s9168_s14 + $0x18] sm:$0xff] %vm5335_vm5, %v5434_v9  ;;  %v5426_v47 = vadd.f32 %v9162_v0, %v5425_v20  ;;  %5746 = vrot.lane.b32.xlu0 %v5431_v15, %s6411_s15  ;;  %5619 = vrot.lane.b32.xlu1 %v5434_v9, %s6410_s21 }
 0x2a9   : > { %4604 = vst.msk [vmem:[#allocation3 + $0x7c] sm:$0xf] %vm9903_vm13, %v4539_v5 }
 0x2aa   : > { %5550 = vst.msk [vmem:[%s9168_s14 + $0x8] sm:$0xff] %vm5335_vm5, %v5426_v47 }
 0x2ac   : > { %v6365_v12 = vld [vmem:[#allocation3 + $0x70] sm:$0xff]   ;;  %5748 = vrot.lane.b32.xlu1 %v5434_v9, %s6411_s15  ;;  %5613 = vrot.lane.b32.xlu0 %v5423_v41, %s6410_s21 }
 0x2ad   : > { %6263 = vmatprep.mubr.msk.bf16.mxu0 %vm4744_vm4, %v6365_v12 }
 0x2b0   : > { %v6366_v58 = vld [vmem:[#allocation3 + $0x78] sm:$0xff]   ;;  %5615 = vrot.lane.b32.xlu1 %v5426_v47, %s6410_s21  ;;  %5742 = vrot.lane.b32.xlu0 %v5423_v41, %s6411_s15 }
 0x2b1   : > { %6264 = vmatmul.mubr.msk.bf16.gmra.mxu0 %vm4744_vm4, %v6366_v58 }
 0x2b4   : > { %5744 = vrot.lane.b32.xlu1 %v5426_v47, %s6411_s15 }
 0x2b5   : > { %v6253_v31 = vpop.f32.mrf.mxu0 }
 0x2b6   : > { %v4904_v56 = vadd.f32 %v9084_v26, %v6253_v31 }
 0x2b7   : > { %v4895_v17 = vpop.f32.mrf.mxu0 }
 0x2b8   : > { %vm4976_vm15 = vcmp.gt.f32.partialorder %v4904_v56, 0.0  ;;  %v5008_v1 = vmul.f32 0.1, %v4904_v56  ;;  %v4896_v54 = vadd.f32 %v9084_v26, %v4895_v17 }
 0x2b9   : > { %v6254_v49 = vpop.f32.mrf.mxu0 }
 0x2ba   : > { %v5040_v62 = vsel %vm4976_vm15, %v4904_v56, %v5008_v1  ;;  %vm4974_vm10 = vcmp.gt.f32.partialorder %v4896_v54, 0.0  ;;  %v5006_v14 = vmul.f32 0.1, %v4896_v54  ;;  %v4907_v25 = vadd.f32 %v9084_v26, %v6254_v49 }
 0x2bb   : > { %v6179_v18 = vpack.c.bf16 %v5040_v62, %v5040_v62  ;;  %v4898_v51 = vpop.f32.mrf.mxu0 }
 0x2bc   : > { %v5038_v32 = vsel %vm4974_vm10, %v4896_v54, %v5006_v14  ;;  %vm4977_vm4 = vcmp.gt.f32.partialorder %v4907_v25, 0.0  ;;  %v5009_v8 = vmul.f32 0.1, %v4907_v25  ;;  %v4899_v42 = vadd.f32 %v9084_v26, %v4898_v51 }
 0x2bd   : > { %5201 = vst.msk [vmem:[#allocation3 + $0x48] sm:$0xf] %vm5182_vm11, %v6179_v18  ;;  %v6177_v46 = vpack.c.bf16 %v5038_v32, %v5038_v32 }
 0x2be   : > { %v5041_v33 = vsel %vm4977_vm4, %v4907_v25, %v5009_v8  ;;  %vm4975_vm14 = vcmp.gt.f32.partialorder %v4899_v42, 0.0  ;;  %v5007_v40 = vmul.f32 0.1, %v4899_v42 }
 0x2bf   : > { %5199 = vst.msk [vmem:[#allocation3 + $0x40] sm:$0xf] %vm5182_vm11, %v6177_v46  ;;  %v6180_v28 = vpack.c.bf16 %v5041_v33, %v5041_v33 }
 0x2c0   : > { %v5039_v63 = vsel %vm4975_vm14, %v4899_v42, %v5007_v40 }
 0x2c1   : > { %5202 = vst.msk [vmem:[#allocation3 + $0x4c] sm:$0xf] %vm5182_vm11, %v6180_v28  ;;  %v6178_v44 = vpack.c.bf16 %v5039_v63, %v5039_v63 }
 0x2c3   : > { %5200 = vst.msk [vmem:[#allocation3 + $0x44] sm:$0xf] %vm5182_vm11, %v6178_v44 }
 0x2c8   : > { %v6368_v50 = vld [vmem:[#allocation3 + $0x48] sm:$0xff]  }
 0x2ca   : > { %v6367_v59 = vld [vmem:[#allocation3 + $0x40] sm:$0xff]  }
 0x2cb   : > { %6285 = vmatprep.mubr.msk.bf16.mxu1 %vm5335_vm5, %v6367_v59 }
 0x2cc   : > { %6286 = vmatmul.mubr.msk.bf16.gmra.mxu1 %vm5335_vm5, %v6368_v50 }
 0x2d9   : > { %v6275_v38 = vpop.f32.mrf.mxu1 }
 0x2da   : > { %v5447_v2 = vadd.f32 %v6275_v38, %v9162_v0 }
 0x2db   : > { %v5438_v13 = vpop.f32.mrf.mxu1 }
 0x2dc   : > { %5555 = vst.msk [vmem:[%s9168_s14 + $0x30] sm:$0xff] %vm5335_vm5, %v5447_v2  ;;  %v5439_v19 = vadd.f32 %v9162_v0, %v5438_v13  ;;  %5625 = vrot.lane.b32.xlu0 %v5447_v2, %s6410_s21 }
 0x2dd   : > { %v6276_v45 = vpop.f32.mrf.mxu1 }
 0x2de   : > { %5553 = vst.msk [vmem:[%s9168_s14 + $0x20] sm:$0xff] %vm5335_vm5, %v5439_v19  ;;  %v5450_v10 = vadd.f32 %v6276_v45, %v9162_v0 }
 0x2df   : > { %v5441_v21 = vpop.f32.mrf.mxu1 }
 0x2e0   : > { %5556 = vst.msk [vmem:[%s9168_s14 + $0x38] sm:$0xff] %vm5335_vm5, %v5450_v10  ;;  %v5442_v22 = vadd.f32 %v9162_v0, %v5441_v21  ;;  %5627 = vrot.lane.b32.xlu1 %v5450_v10, %s6410_s21  ;;  %5754 = vrot.lane.b32.xlu0 %v5447_v2, %s6411_s15 }
 0x2e2   : > { %5554 = vst.msk [vmem:[%s9168_s14 + $0x28] sm:$0xff] %vm5335_vm5, %v5442_v22 }
 0x2e4   : > { %5756 = vrot.lane.b32.xlu1 %v5450_v10, %s6411_s15  ;;  %5621 = vrot.lane.b32.xlu0 %v5439_v19, %s6410_s21 }
 0x2e8   : > { %5623 = vrot.lane.b32.xlu1 %v5442_v22, %s6410_s21  ;;  %5750 = vrot.lane.b32.xlu0 %v5439_v19, %s6411_s15 }
 0x2ec   : > { %5752 = vrot.lane.b32.xlu1 %v5442_v22, %s6411_s15 }
 0x2f5   : > { %v6257_v6 = vpop.f32.mrf.mxu0 }
 0x2f6   : > { %v4920_v39 = vadd.f32 %v9084_v26, %v6257_v6 }
 0x2f7   : > { %v4911_v34 = vpop.f32.mrf.mxu0 }
 0x2f8   : > { %vm4980_vm6 = vcmp.gt.f32.partialorder %v4920_v39, 0.0  ;;  %v5012_v30 = vmul.f32 0.1, %v4920_v39  ;;  %v4912_v37 = vadd.f32 %v9084_v26, %v4911_v34 }
 0x2f9   : > { %v6258_v7 = vpop.f32.mrf.mxu0 }
 0x2fa   : > { %v5044_v55 = vsel %vm4980_vm6, %v4920_v39, %v5012_v30  ;;  %vm4978_vm3 = vcmp.gt.f32.partialorder %v4912_v37, 0.0  ;;  %v5010_v36 = vmul.f32 0.1, %v4912_v37  ;;  %v4923_v23 = vadd.f32 %v9084_v26, %v6258_v7 }
 0x2fb   : > { %v6183_v57 = vpack.c.bf16 %v5044_v55, %v5044_v55  ;;  %v4914_v43 = vpop.f32.mrf.mxu0 }
 0x2fc   : > { %v5042_v24 = vsel %vm4978_vm3, %v4912_v37, %v5010_v36  ;;  %vm4981_vm8 = vcmp.gt.f32.partialorder %v4923_v23, 0.0  ;;  %v5013_v60 = vmul.f32 0.1, %v4923_v23  ;;  %v4915_v3 = vadd.f32 %v9084_v26, %v4914_v43 }
 0x2fd   : > { %5205 = vst.msk [vmem:[#allocation3 + $0x58] sm:$0xf] %vm5182_vm11, %v6183_v57  ;;  %v6181_v29 = vpack.c.bf16 %v5042_v24, %v5042_v24 }
 0x2fe   : > { %v5045_v61 = vsel %vm4981_vm8, %v4923_v23, %v5013_v60  ;;  %vm4979_vm7 = vcmp.gt.f32.partialorder %v4915_v3, 0.0  ;;  %v5011_v11 = vmul.f32 0.1, %v4915_v3 }
 0x2ff   : > { %5203 = vst.msk [vmem:[#allocation3 + $0x50] sm:$0xf] %vm5182_vm11, %v6181_v29  ;;  %v6184_v35 = vpack.c.bf16 %v5045_v61, %v5045_v61 }
 0x300   : > { %v5043_v27 = vsel %vm4979_vm7, %v4915_v3, %v5011_v11 }
 0x301   : > { %5206 = vst.msk [vmem:[#allocation3 + $0x5c] sm:$0xf] %vm5182_vm11, %v6184_v35  ;;  %v6182_v53 = vpack.c.bf16 %v5043_v27, %v5043_v27 }
 0x303   : > { %5204 = vst.msk [vmem:[#allocation3 + $0x54] sm:$0xf] %vm5182_vm11, %v6182_v53 }
 0x308   : > { %v6370_v15 = vld [vmem:[#allocation3 + $0x58] sm:$0xff]  }
 0x30a   : > { %v6369_v16 = vld [vmem:[#allocation3 + $0x50] sm:$0xff]  }
 0x30b   : > { %6289 = vmatprep.mubr.msk.bf16.mxu1 %vm5335_vm5, %v6369_v16 }
 0x30c   : > { %6290 = vmatmul.mubr.msk.bf16.gmra.mxu1 %vm5335_vm5, %v6370_v15 }
 0x311   : > { %v6279_v52 = vpop.f32.mrf.mxu1 }
 0x312   : > { %v5463_v4 = vadd.f32 %v6279_v52, %v9162_v0 }
 0x313   : > { %v5454_v41 = vpop.f32.mrf.mxu1 }
 0x314   : > { %5559 = vst.msk [vmem:[%s9168_s14 + $0x50] sm:$0xff] %vm5335_vm5, %v5463_v4  ;;  %v5455_v5 = vadd.f32 %v9162_v0, %v5454_v41  ;;  %5633 = vrot.lane.b32.xlu0 %v5463_v4, %s6410_s21 }
 0x315   : > { %v6280_v48 = vpop.f32.mrf.mxu1 }
 0x316   : > { %5557 = vst.msk [vmem:[%s9168_s14 + $0x40] sm:$0xff] %vm5335_vm5, %v5455_v5  ;;  %v5466_v9 = vadd.f32 %v6280_v48, %v9162_v0  ;;  %v5618_v20 = vpop.permute.xlu0 %5617 }
 0x317   : > { %6095 = vst.msk [vmem:[%s9168_s14 + $0x110] sm:$0xff] %vm5335_vm5, %v5618_v20  ;;  %v5457_v47 = vpop.f32.mrf.mxu1 }
 0x318   : > { %5560 = vst.msk [vmem:[%s9168_s14 + $0x58] sm:$0xff] %vm5335_vm5, %v5466_v9  ;;  %v5458_v12 = vadd.f32 %v9162_v0, %v5457_v47  ;;  %5635 = vrot.lane.b32.xlu1 %v5466_v9, %s6410_s21  ;;  %5762 = vrot.lane.b32.xlu0 %v5463_v4, %s6411_s15 }
 0x31a   : > { %5558 = vst.msk [vmem:[%s9168_s14 + $0x48] sm:$0xff] %vm5335_vm5, %v5458_v12  ;;  %v5747_v58 = vpop.permute.xlu0 %5746  ;;  %v5620_v31 = vpop.permute.xlu1 %5619 }
 0x31b   : > { %6127 = vst.msk [vmem:[%s9168_s14 + $0x210] sm:$0xff] %vm5335_vm5, %v5747_v58  ;;  %6096 = vst.msk [vmem:[%s9168_s14 + $0x118] sm:$0xff] %vm5335_vm5, %v5620_v31 }
 0x31c   : > { %5764 = vrot.lane.b32.xlu1 %v5466_v9, %s6411_s15  ;;  %5629 = vrot.lane.b32.xlu0 %v5455_v5, %s6410_s21 }
 0x31e   : > { %v5749_v56 = vpop.permute.xlu1 %5748  ;;  %v5614_v17 = vpop.permute.xlu0 %5613 }
 0x31f   : > { %6128 = vst.msk [vmem:[%s9168_s14 + $0x218] sm:$0xff] %vm5335_vm5, %v5749_v56  ;;  %6093 = vst.msk [vmem:[%s9168_s14 + $0x100] sm:$0xff] %vm5335_vm5, %v5614_v17 }
 0x320   : > { %5631 = vrot.lane.b32.xlu1 %v5458_v12, %s6410_s21  ;;  %5758 = vrot.lane.b32.xlu0 %v5455_v5, %s6411_s15 }
 0x322   : > { %v5616_v1 = vpop.permute.xlu1 %5615  ;;  %v5743_v54 = vpop.permute.xlu0 %5742 }
 0x323   : > { %6094 = vst.msk [vmem:[%s9168_s14 + $0x108] sm:$0xff] %vm5335_vm5, %v5616_v1  ;;  %6125 = vst.msk [vmem:[%s9168_s14 + $0x200] sm:$0xff] %vm5335_vm5, %v5743_v54 }
 0x324   : > { %5760 = vrot.lane.b32.xlu1 %v5458_v12, %s6411_s15 }
 0x326   : > { %v5745_v49 = vpop.permute.xlu1 %5744 }
 0x327   : > { %6126 = vst.msk [vmem:[%s9168_s14 + $0x208] sm:$0xff] %vm5335_vm5, %v5745_v49 }
 0x335   : > { %v6261_v62 = vpop.f32.mrf.mxu0 }
 0x336   : > { %v4936_v14 = vadd.f32 %v9084_v26, %v6261_v62 }
 0x337   : > { %v4927_v25 = vpop.f32.mrf.mxu0 }
 0x338   : > { %vm4984_vm0 = vcmp.gt.f32.partialorder %v4936_v14, 0.0  ;;  %v5016_v18 = vmul.f32 0.1, %v4936_v14  ;;  %v4928_v51 = vadd.f32 %v9084_v26, %v4927_v25 }
 0x339   : > { %v6262_v32 = vpop.f32.mrf.mxu0 }
 0x33a   : > { %v5048_v8 = vsel %vm4984_vm0, %v4936_v14, %v5016_v18  ;;  %vm4982_vm12 = vcmp.gt.f32.partialorder %v4928_v51, 0.0  ;;  %v5014_v42 = vmul.f32 0.1, %v4928_v51  ;;  %v4939_v46 = vadd.f32 %v9084_v26, %v6262_v32 }
 0x33b   : > { %v6187_v33 = vpack.c.bf16 %v5048_v8, %v5048_v8  ;;  %v4930_v40 = vpop.f32.mrf.mxu0 }
 0x33c   : > { %v5046_v28 = vsel %vm4982_vm12, %v4928_v51, %v5014_v42  ;;  %vm4985_vm2 = vcmp.gt.f32.partialorder %v4939_v46, 0.0  ;;  %v5017_v63 = vmul.f32 0.1, %v4939_v46  ;;  %v4931_v44 = vadd.f32 %v9084_v26, %v4930_v40 }
 0x33d   : > { %5209 = vst.msk [vmem:[#allocation3 + $0x68] sm:$0xf] %vm5182_vm11, %v6187_v33  ;;  %v6185_v59 = vpack.c.bf16 %v5046_v28, %v5046_v28 }
 0x33e   : > { %v5049_v50 = vsel %vm4985_vm2, %v4939_v46, %v5017_v63  ;;  %vm4983_vm9 = vcmp.gt.f32.partialorder %v4931_v44, 0.0  ;;  %v5015_v38 = vmul.f32 0.1, %v4931_v44 }
 0x33f   : > { %5207 = vst.msk [vmem:[#allocation3 + $0x60] sm:$0xf] %vm5182_vm11, %v6185_v59  ;;  %v6188_v2 = vpack.c.bf16 %v5049_v50, %v5049_v50 }
 0x340   : > { %v5047_v13 = vsel %vm4983_vm9, %v4931_v44, %v5015_v38 }
 0x341   : > { %5210 = vst.msk [vmem:[#allocation3 + $0x6c] sm:$0xf] %vm5182_vm11, %v6188_v2  ;;  %v6186_v19 = vpack.c.bf16 %v5047_v13, %v5047_v13 }
 0x343   : > { %5208 = vst.msk [vmem:[#allocation3 + $0x64] sm:$0xf] %vm5182_vm11, %v6186_v19 }
 0x348   : > { %v6372_v10 = vld [vmem:[#allocation3 + $0x68] sm:$0xff]  }
 0x34a   : > { %v6371_v45 = vld [vmem:[#allocation3 + $0x60] sm:$0xff]  }
 0x34b   : > { %6293 = vmatprep.mubr.msk.bf16.mxu1 %vm5335_vm5, %v6371_v45 }
 0x34c   : > { %6294 = vmatmul.mubr.msk.bf16.gmra.mxu1 %vm5335_vm5, %v6372_v10 }
 0x34d   : > { %v6283_v21 = vpop.f32.mrf.mxu1 }
 0x34e   : > { %v5479_v22 = vadd.f32 %v6283_v21, %v9162_v0  ;;  %v5626_v34 = vpop.permute.xlu0 %5625 }
 0x34f   : > { %v5470_v6 = vpop.f32.mrf.mxu1  ;;  %6099 = vst.msk [vmem:[%s9168_s14 + $0x130] sm:$0xff] %vm5335_vm5, %v5626_v34 }
 0x350   : > { %5563 = vst.msk [vmem:[%s9168_s14 + $0x70] sm:$0xff] %vm5335_vm5, %v5479_v22  ;;  %v5471_v39 = vadd.f32 %v9162_v0, %v5470_v6  ;;  %5641 = vrot.lane.b32.xlu0 %v5479_v22, %s6410_s21 }
 0x351   : > { %v6284_v30 = vpop.f32.mrf.mxu1 }
 0x352   : > { %5561 = vst.msk [vmem:[%s9168_s14 + $0x60] sm:$0xff] %vm5335_vm5, %v5471_v39  ;;  %v5482_v37 = vadd.f32 %v6284_v30, %v9162_v0  ;;  %v5628_v36 = vpop.permute.xlu1 %5627  ;;  %v5755_v23 = vpop.permute.xlu0 %5754 }
 0x353   : > { %v5473_v7 = vpop.f32.mrf.mxu1  ;;  %6100 = vst.msk [vmem:[%s9168_s14 + $0x138] sm:$0xff] %vm5335_vm5, %v5628_v36  ;;  %6131 = vst.msk [vmem:[%s9168_s14 + $0x230] sm:$0xff] %vm5335_vm5, %v5755_v23 }
 0x354   : > { %5564 = vst.msk [vmem:[%s9168_s14 + $0x78] sm:$0xff] %vm5335_vm5, %v5482_v37  ;;  %v5474_v55 = vadd.f32 %v9162_v0, %v5473_v7  ;;  %5643 = vrot.lane.b32.xlu1 %v5482_v37, %s6410_s21  ;;  %5770 = vrot.lane.b32.xlu0 %v5479_v22, %s6411_s15 }
 0x356   : > { %5562 = vst.msk [vmem:[%s9168_s14 + $0x68] sm:$0xff] %vm5335_vm5, %v5474_v55  ;;  %v5757_v57 = vpop.permute.xlu1 %5756  ;;  %v5622_v43 = vpop.permute.xlu0 %5621 }
 0x357   : > { %6132 = vst.msk [vmem:[%s9168_s14 + $0x238] sm:$0xff] %vm5335_vm5, %v5757_v57  ;;  %6097 = vst.msk [vmem:[%s9168_s14 + $0x120] sm:$0xff] %vm5335_vm5, %v5622_v43 }
 0x358   : > { %5772 = vrot.lane.b32.xlu1 %v5482_v37, %s6411_s15  ;;  %5637 = vrot.lane.b32.xlu0 %v5471_v39, %s6410_s21 }
 0x35a   : > { %v5624_v24 = vpop.permute.xlu1 %5623  ;;  %v5751_v60 = vpop.permute.xlu0 %5750 }
 0x35b   : > { %6098 = vst.msk [vmem:[%s9168_s14 + $0x128] sm:$0xff] %vm5335_vm5, %v5624_v24  ;;  %6129 = vst.msk [vmem:[%s9168_s14 + $0x220] sm:$0xff] %vm5335_vm5, %v5751_v60 }
 0x35c   : > { %5639 = vrot.lane.b32.xlu1 %v5474_v55, %s6410_s21  ;;  %5766 = vrot.lane.b32.xlu0 %v5471_v39, %s6411_s15 }
 0x35e   : > { %v5753_v3 = vpop.permute.xlu1 %5752 }
 0x35f   : > { %6130 = vst.msk [vmem:[%s9168_s14 + $0x228] sm:$0xff] %vm5335_vm5, %v5753_v3 }
 0x360   : > { %5768 = vrot.lane.b32.xlu1 %v5474_v55, %s6411_s15 }
 0x371   : > { %v6265_v29 = vpop.f32.mrf.mxu0 }
 0x372   : > { %v4952_v61 = vadd.f32 %v9084_v26, %v6265_v29 }
 0x373   : > { %v4943_v11 = vpop.f32.mrf.mxu0 }
 0x374   : > { %vm4988_vm1 = vcmp.gt.f32.partialorder %v4952_v61, 0.0  ;;  %v5020_v35 = vmul.f32 0.1, %v4952_v61  ;;  %v4944_v27 = vadd.f32 %v9084_v26, %v4943_v11 }
 0x375   : > { %v6266_v53 = vpop.f32.mrf.mxu0 }
 0x376   : > { %v5052_v16 = vsel %vm4988_vm1, %v4952_v61, %v5020_v35  ;;  %vm4986_vm13 = vcmp.gt.f32.partialorder %v4944_v27, 0.0  ;;  %v5018_v15 = vmul.f32 0.1, %v4944_v27  ;;  %v4955_v52 = vadd.f32 %v9084_v26, %v6266_v53 }
 0x377   : > { %v6191_v4 = vpack.c.bf16 %v5052_v16, %v5052_v16  ;;  %v4946_v41 = vpop.f32.mrf.mxu0 }
 0x378   : > { %v5050_v5 = vsel %vm4986_vm13, %v4944_v27, %v5018_v15  ;;  %vm4989_vm15 = vcmp.gt.f32.partialorder %v4955_v52, 0.0  ;;  %v5021_v48 = vmul.f32 0.1, %v4955_v52  ;;  %v4947_v9 = vadd.f32 %v9084_v26, %v4946_v41 }
 0x379   : > { %5213 = vst.msk [vmem:[#allocation3 + $0x78] sm:$0xf] %vm5182_vm11, %v6191_v4  ;;  %v6189_v20 = vpack.c.bf16 %v5050_v5, %v5050_v5 }
 0x37a   : > { %v5053_v47 = vsel %vm4989_vm15, %v4955_v52, %v5021_v48  ;;  %vm4987_vm10 = vcmp.gt.f32.partialorder %v4947_v9, 0.0  ;;  %v5019_v12 = vmul.f32 0.1, %v4947_v9 }
 0x37b   : > { %5211 = vst.msk [vmem:[#allocation3 + $0x70] sm:$0xf] %vm5182_vm11, %v6189_v20  ;;  %v6192_v58 = vpack.c.bf16 %v5053_v47, %v5053_v47 }
 0x37c   : > { %v5051_v31 = vsel %vm4987_vm10, %v4947_v9, %v5019_v12 }
 0x37d   : > { %5214 = vst.msk [vmem:[#allocation3 + $0x7c] sm:$0xf] %vm5182_vm11, %v6192_v58  ;;  %v6190_v56 = vpack.c.bf16 %v5051_v31, %v5051_v31 }
 0x37f   : > { %5212 = vst.msk [vmem:[#allocation3 + $0x74] sm:$0xf] %vm5182_vm11, %v6190_v56 }
 0x384   : > { %v6374_v17 = vld [vmem:[#allocation3 + $0x78] sm:$0xff]  }
 0x386   : > { %v6373_v26 = vld [vmem:[#allocation3 + $0x70] sm:$0xff]   ;;  %v5634_v1 = vpop.permute.xlu0 %5633 }
 0x387   : > { %6297 = vmatprep.mubr.msk.bf16.mxu1 %vm5335_vm5, %v6373_v26  ;;  %6103 = vst.msk [vmem:[%s9168_s14 + $0x150] sm:$0xff] %vm5335_vm5, %v5634_v1 }
 0x388   : > { %6298 = vmatmul.mubr.msk.bf16.gmra.mxu1 %vm5335_vm5, %v6374_v17 }
 0x38a   : > { %v5636_v54 = vpop.permute.xlu1 %5635  ;;  %v5763_v49 = vpop.permute.xlu0 %5762 }
 0x38b   : > { %6104 = vst.msk [vmem:[%s9168_s14 + $0x158] sm:$0xff] %vm5335_vm5, %v5636_v54  ;;  %6135 = vst.msk [vmem:[%s9168_s14 + $0x250] sm:$0xff] %vm5335_vm5, %v5763_v49 }
 0x38c   : > { %v6287_v62 = vpop.f32.mrf.mxu1 }
 0x38d   : > { %v5495_v14 = vadd.f32 %v6287_v62, %v9162_v0 }
 0x38e   : > { %v5486_v25 = vpop.f32.mrf.mxu1  ;;  %v5765_v51 = vpop.permute.xlu1 %5764 }
 0x38f   : > { %5567 = vst.msk [vmem:[%s9168_s14 + $0x90] sm:$0xff] %vm5335_vm5, %v5495_v14  ;;  %v5487_v18 = vadd.f32 %v9162_v0, %v5486_v25  ;;  %5649 = vrot.lane.b32.xlu0 %v5495_v14, %s6410_s21  ;;  %v5630_v32 = vpop.permute.xlu0 %5629  ;;  %6136 = vst.msk [vmem:[%s9168_s14 + $0x258] sm:$0xff] %vm5335_vm5, %v5765_v51 }
 0x390   : > { %v6288_v8 = vpop.f32.mrf.mxu1  ;;  %6101 = vst.msk [vmem:[%s9168_s14 + $0x140] sm:$0xff] %vm5335_vm5, %v5630_v32 }
 0x391   : > { %5565 = vst.msk [vmem:[%s9168_s14 + $0x80] sm:$0xff] %vm5335_vm5, %v5487_v18  ;;  %v5498_v42 = vadd.f32 %v6288_v8, %v9162_v0 }
 0x392   : > { %v5489_v46 = vpop.f32.mrf.mxu1  ;;  %v5632_v40 = vpop.permute.xlu1 %5631 }
 0x393   : > { %5568 = vst.msk [vmem:[%s9168_s14 + $0x98] sm:$0xff] %vm5335_vm5, %v5498_v42  ;;  %v5490_v33 = vadd.f32 %v9162_v0, %v5489_v46  ;;  %5651 = vrot.lane.b32.xlu1 %v5498_v42, %s6410_s21  ;;  %5778 = vrot.lane.b32.xlu0 %v5495_v14, %s6411_s15  ;;  %v5759_v28 = vpop.permute.xlu0 %5758  ;;  %6102 = vst.msk [vmem:[%s9168_s14 + $0x148] sm:$0xff] %vm5335_vm5, %v5632_v40 }
 0x394   : > { %6133 = vst.msk [vmem:[%s9168_s14 + $0x240] sm:$0xff] %vm5335_vm5, %v5759_v28 }
 0x395   : > { %5566 = vst.msk [vmem:[%s9168_s14 + $0x88] sm:$0xff] %vm5335_vm5, %v5490_v33 }
 0x396   : > { %v5761_v63 = vpop.permute.xlu1 %5760 }
 0x397   : > { %5780 = vrot.lane.b32.xlu1 %v5498_v42, %s6411_s15  ;;  %5645 = vrot.lane.b32.xlu0 %v5487_v18, %s6410_s21  ;;  %6134 = vst.msk [vmem:[%s9168_s14 + $0x248] sm:$0xff] %vm5335_vm5, %v5761_v63 }
 0x39b   : > { %5647 = vrot.lane.b32.xlu1 %v5490_v33, %s6410_s21  ;;  %5774 = vrot.lane.b32.xlu0 %v5487_v18, %s6411_s15 }
 0x39f   : > { %5776 = vrot.lane.b32.xlu1 %v5490_v33, %s6411_s15 }
 0x3c2   : > { %v5642_v44 = vpop.permute.xlu0 %5641 }
 0x3c3   : > { %6107 = vst.msk [vmem:[%s9168_s14 + $0x170] sm:$0xff] %vm5335_vm5, %v5642_v44 }
 0x3c6   : > { %v5644_v59 = vpop.permute.xlu1 %5643  ;;  %v5771_v50 = vpop.permute.xlu0 %5770 }
 0x3c7   : > { %6108 = vst.msk [vmem:[%s9168_s14 + $0x178] sm:$0xff] %vm5335_vm5, %v5644_v59  ;;  %6139 = vst.msk [vmem:[%s9168_s14 + $0x270] sm:$0xff] %vm5335_vm5, %v5771_v50 }
 0x3ca   : > { %v5773_v38 = vpop.permute.xlu1 %5772  ;;  %v5638_v2 = vpop.permute.xlu0 %5637 }
 0x3cb   : > { %6140 = vst.msk [vmem:[%s9168_s14 + $0x278] sm:$0xff] %vm5335_vm5, %v5773_v38  ;;  %6105 = vst.msk [vmem:[%s9168_s14 + $0x160] sm:$0xff] %vm5335_vm5, %v5638_v2 }
 0x3cc   : > { %v6291_v13 = vpop.f32.mrf.mxu1 }
 0x3cd   : > { %v5511_v19 = vadd.f32 %v6291_v13, %v9162_v0 }
 0x3ce   : > { %v5640_v45 = vpop.permute.xlu1 %5639  ;;  %v5767_v10 = vpop.permute.xlu0 %5766 }
 0x3cf   : > { %6106 = vst.msk [vmem:[%s9168_s14 + $0x168] sm:$0xff] %vm5335_vm5, %v5640_v45  ;;  %6137 = vst.msk [vmem:[%s9168_s14 + $0x260] sm:$0xff] %vm5335_vm5, %v5767_v10  ;;  %v5502_v21 = vpop.f32.mrf.mxu1  ;;  %5657 = vrot.lane.b32.xlu0 %v5511_v19, %s6410_s21 }
 0x3d0   : > { %5571 = vst.msk [vmem:[%s9168_s14 + $0xb0] sm:$0xff] %vm5335_vm5, %v5511_v19  ;;  %v5503_v22 = vadd.f32 %v9162_v0, %v5502_v21 }
 0x3d1   : > { %v6292_v6 = vpop.f32.mrf.mxu1 }
 0x3d2   : > { %5569 = vst.msk [vmem:[%s9168_s14 + $0xa0] sm:$0xff] %vm5335_vm5, %v5503_v22  ;;  %v5514_v39 = vadd.f32 %v6292_v6, %v9162_v0  ;;  %v5769_v34 = vpop.permute.xlu1 %5768 }
 0x3d3   : > { %6138 = vst.msk [vmem:[%s9168_s14 + $0x268] sm:$0xff] %vm5335_vm5, %v5769_v34  ;;  %v5505_v30 = vpop.f32.mrf.mxu1  ;;  %5786 = vrot.lane.b32.xlu0 %v5511_v19, %s6411_s15 }
 0x3d4   : > { %5572 = vst.msk [vmem:[%s9168_s14 + $0xb8] sm:$0xff] %vm5335_vm5, %v5514_v39  ;;  %v5506_v37 = vadd.f32 %v9162_v0, %v5505_v30  ;;  %5659 = vrot.lane.b32.xlu1 %v5514_v39, %s6410_s21 }
 0x3d6   : > { %5570 = vst.msk [vmem:[%s9168_s14 + $0xa8] sm:$0xff] %vm5335_vm5, %v5506_v37 }
 0x3d7   : > { %5653 = vrot.lane.b32.xlu0 %v5503_v22, %s6410_s21 }
 0x3d8   : > { %5788 = vrot.lane.b32.xlu1 %v5514_v39, %s6411_s15 }
 0x3db   : > { %5782 = vrot.lane.b32.xlu0 %v5503_v22, %s6411_s15 }
 0x3dc   : > { %5655 = vrot.lane.b32.xlu1 %v5506_v37, %s6410_s21 }
 0x3e0   : > { %5784 = vrot.lane.b32.xlu1 %v5506_v37, %s6411_s15 }
 0x401   : > { %v5650_v7 = vpop.permute.xlu0 %5649 }
 0x402   : > { %6111 = vst.msk [vmem:[%s9168_s14 + $0x190] sm:$0xff] %vm5335_vm5, %v5650_v7 }
 0x405   : > { %v5652_v55 = vpop.permute.xlu1 %5651  ;;  %v5779_v36 = vpop.permute.xlu0 %5778 }
 0x406   : > { %6112 = vst.msk [vmem:[%s9168_s14 + $0x198] sm:$0xff] %vm5335_vm5, %v5652_v55  ;;  %6143 = vst.msk [vmem:[%s9168_s14 + $0x290] sm:$0xff] %vm5335_vm5, %v5779_v36 }
 0x409   : > { %v5781_v23 = vpop.permute.xlu1 %5780  ;;  %v5646_v57 = vpop.permute.xlu0 %5645 }
 0x40a   : > { %6144 = vst.msk [vmem:[%s9168_s14 + $0x298] sm:$0xff] %vm5335_vm5, %v5781_v23  ;;  %6109 = vst.msk [vmem:[%s9168_s14 + $0x180] sm:$0xff] %vm5335_vm5, %v5646_v57 }
 0x40c   : > { %v6295_v43 = vpop.f32.mrf.mxu1 }
 0x40d   : > { %v5527_v24 = vadd.f32 %v6295_v43, %v9162_v0  ;;  %v5648_v60 = vpop.permute.xlu1 %5647  ;;  %v5775_v3 = vpop.permute.xlu0 %5774 }
 0x40e   : > { %6110 = vst.msk [vmem:[%s9168_s14 + $0x188] sm:$0xff] %vm5335_vm5, %v5648_v60  ;;  %6141 = vst.msk [vmem:[%s9168_s14 + $0x280] sm:$0xff] %vm5335_vm5, %v5775_v3  ;;  %v5518_v29 = vpop.f32.mrf.mxu1 }
 0x40f   : > { %5575 = vst.msk [vmem:[%s9168_s14 + $0xd0] sm:$0xff] %vm5335_vm5, %v5527_v24  ;;  %v5519_v61 = vadd.f32 %v9162_v0, %v5518_v29  ;;  %5665 = vrot.lane.b32.xlu0 %v5527_v24, %s6410_s21 }
 0x410   : > { %v6296_v11 = vpop.f32.mrf.mxu1 }
 0x411   : > { %5573 = vst.msk [vmem:[%s9168_s14 + $0xc0] sm:$0xff] %vm5335_vm5, %v5519_v61  ;;  %v5530_v35 = vadd.f32 %v6296_v11, %v9162_v0  ;;  %v5777_v27 = vpop.permute.xlu1 %5776 }
 0x412   : > { %6142 = vst.msk [vmem:[%s9168_s14 + $0x288] sm:$0xff] %vm5335_vm5, %v5777_v27  ;;  %v5521_v53 = vpop.f32.mrf.mxu1 }
 0x413   : > { %5576 = vst.msk [vmem:[%s9168_s14 + $0xd8] sm:$0xff] %vm5335_vm5, %v5530_v35  ;;  %v5522_v16 = vadd.f32 %v9162_v0, %v5521_v53  ;;  %5667 = vrot.lane.b32.xlu1 %v5530_v35, %s6410_s21  ;;  %5794 = vrot.lane.b32.xlu0 %v5527_v24, %s6411_s15 }
 0x415   : > { %5574 = vst.msk [vmem:[%s9168_s14 + $0xc8] sm:$0xff] %vm5335_vm5, %v5522_v16 }
 0x417   : > { %5796 = vrot.lane.b32.xlu1 %v5530_v35, %s6411_s15  ;;  %5661 = vrot.lane.b32.xlu0 %v5519_v61, %s6410_s21 }
 0x41b   : > { %5663 = vrot.lane.b32.xlu1 %v5522_v16, %s6410_s21  ;;  %5790 = vrot.lane.b32.xlu0 %v5519_v61, %s6411_s15 }
 0x41f   : > { %5792 = vrot.lane.b32.xlu1 %v5522_v16, %s6411_s15 }
 0x441   : > { %v5658_v15 = vpop.permute.xlu0 %5657 }
 0x442   : > { %6115 = vst.msk [vmem:[%s9168_s14 + $0x1b0] sm:$0xff] %vm5335_vm5, %v5658_v15 }
 0x445   : > { %v5787_v4 = vpop.permute.xlu0 %5786 }
 0x446   : > { %v5660_v52 = vpop.permute.xlu1 %5659  ;;  %6147 = vst.msk [vmem:[%s9168_s14 + $0x2b0] sm:$0xff] %vm5335_vm5, %v5787_v4 }
 0x447   : > { %6116 = vst.msk [vmem:[%s9168_s14 + $0x1b8] sm:$0xff] %vm5335_vm5, %v5660_v52 }
 0x448   : > { %v6299_v41 = vpop.f32.mrf.mxu1 }
 0x449   : > { %v5543_v5 = vadd.f32 %v6299_v41, %v9162_v0  ;;  %v5654_v9 = vpop.permute.xlu0 %5653 }
 0x44a   : > { %v5789_v48 = vpop.permute.xlu1 %5788  ;;  %6113 = vst.msk [vmem:[%s9168_s14 + $0x1a0] sm:$0xff] %vm5335_vm5, %v5654_v9  ;;  %v5534_v20 = vpop.f32.mrf.mxu1 }
 0x44b   : > { %6148 = vst.msk [vmem:[%s9168_s14 + $0x2b8] sm:$0xff] %vm5335_vm5, %v5789_v48  ;;  %5579 = vst.msk [vmem:[%s9168_s14 + $0xf0] sm:$0xff] %vm5335_vm5, %v5543_v5  ;;  %v5535_v47 = vadd.f32 %v9162_v0, %v5534_v20  ;;  %5673 = vrot.lane.b32.xlu0 %v5543_v5, %s6410_s21 }
 0x44c   : > { %v6300_v12 = vpop.f32.mrf.mxu1 }
 0x44d   : > { %5577 = vst.msk [vmem:[%s9168_s14 + $0xe0] sm:$0xff] %vm5335_vm5, %v5535_v47  ;;  %v5546_v58 = vadd.f32 %v6300_v12, %v9162_v0  ;;  %v5783_v56 = vpop.permute.xlu0 %5782 }
 0x44e   : > { %v5656_v31 = vpop.permute.xlu1 %5655  ;;  %6145 = vst.msk [vmem:[%s9168_s14 + $0x2a0] sm:$0xff] %vm5335_vm5, %v5783_v56  ;;  %v5537_v26 = vpop.f32.mrf.mxu1 }
 0x44f   : > { %6114 = vst.msk [vmem:[%s9168_s14 + $0x1a8] sm:$0xff] %vm5335_vm5, %v5656_v31  ;;  %5580 = vst.msk [vmem:[%s9168_s14 + $0xf8] sm:$0xff] %vm5335_vm5, %v5546_v58  ;;  %v5538_v17 = vadd.f32 %v9162_v0, %v5537_v26  ;;  %5675 = vrot.lane.b32.xlu1 %v5546_v58, %s6410_s21  ;;  %5669 = vrot.lane.b32.xlu0 %v5535_v47, %s6410_s21 }
 0x451   : > { %5578 = vst.msk [vmem:[%s9168_s14 + $0xe8] sm:$0xff] %vm5335_vm5, %v5538_v17 }
 0x452   : > { %v5785_v1 = vpop.permute.xlu1 %5784 }
 0x453   : > { %6146 = vst.msk [vmem:[%s9168_s14 + $0x2a8] sm:$0xff] %vm5335_vm5, %v5785_v1  ;;  %5671 = vrot.lane.b32.xlu1 %v5538_v17, %s6410_s21  ;;  %5798 = vrot.lane.b32.xlu0 %v5535_v47, %s6411_s15 }
 0x457   : > { %5800 = vrot.lane.b32.xlu1 %v5538_v17, %s6411_s15  ;;  %5802 = vrot.lane.b32.xlu0 %v5543_v5, %s6411_s15 }
 0x45b   : > { %5804 = vrot.lane.b32.xlu1 %v5546_v58, %s6411_s15 }
 0x481   : > { %v5666_v0 = vpop.permute.xlu0 %5665 }
 0x482   : > { %6119 = vst.msk [vmem:[%s9168_s14 + $0x1d0] sm:$0xff] %vm5335_vm5, %v5666_v0 }
 0x485   : > { %v5668_v54 = vpop.permute.xlu1 %5667  ;;  %v5795_v49 = vpop.permute.xlu0 %5794 }
 0x486   : > { %6120 = vst.msk [vmem:[%s9168_s14 + $0x1d8] sm:$0xff] %vm5335_vm5, %v5668_v54  ;;  %6151 = vst.msk [vmem:[%s9168_s14 + $0x2d0] sm:$0xff] %vm5335_vm5, %v5795_v49 }
 0x489   : > { %v5797_v62 = vpop.permute.xlu1 %5796  ;;  %v5662_v14 = vpop.permute.xlu0 %5661 }
 0x48a   : > { %6152 = vst.msk [vmem:[%s9168_s14 + $0x2d8] sm:$0xff] %vm5335_vm5, %v5797_v62  ;;  %6117 = vst.msk [vmem:[%s9168_s14 + $0x1c0] sm:$0xff] %vm5335_vm5, %v5662_v14 }
 0x48d   : > { %v5664_v25 = vpop.permute.xlu1 %5663  ;;  %v5791_v18 = vpop.permute.xlu0 %5790 }
 0x48e   : > { %6118 = vst.msk [vmem:[%s9168_s14 + $0x1c8] sm:$0xff] %vm5335_vm5, %v5664_v25  ;;  %6149 = vst.msk [vmem:[%s9168_s14 + $0x2c0] sm:$0xff] %vm5335_vm5, %v5791_v18 }
 0x491   : > { %v5793_v51 = vpop.permute.xlu1 %5792 }
 0x492   : > { %6150 = vst.msk [vmem:[%s9168_s14 + $0x2c8] sm:$0xff] %vm5335_vm5, %v5793_v51 }
 0x4bd   : > { %v5674_v32 = vpop.permute.xlu0 %5673 }
 0x4be   : > { %6123 = vst.msk [vmem:[%s9168_s14 + $0x1f0] sm:$0xff] %vm5335_vm5, %v5674_v32 }
 0x4c1   : > { %v5676_v8 = vpop.permute.xlu1 %5675  ;;  %v5670_v42 = vpop.permute.xlu0 %5669 }
 0x4c2   : > { %6124 = vst.msk [vmem:[%s9168_s14 + $0x1f8] sm:$0xff] %vm5335_vm5, %v5676_v8  ;;  %6121 = vst.msk [vmem:[%s9168_s14 + $0x1e0] sm:$0xff] %vm5335_vm5, %v5670_v42 }
 0x4c5   : > { %v5672_v46 = vpop.permute.xlu1 %5671  ;;  %v5799_v33 = vpop.permute.xlu0 %5798 }
 0x4c6   : > { %6122 = vst.msk [vmem:[%s9168_s14 + $0x1e8] sm:$0xff] %vm5335_vm5, %v5672_v46  ;;  %6153 = vst.msk [vmem:[%s9168_s14 + $0x2e0] sm:$0xff] %vm5335_vm5, %v5799_v33 }
 0x4c9   : > { %v5801_v40 = vpop.permute.xlu1 %5800  ;;  %v5803_v28 = vpop.permute.xlu0 %5802 }
 0x4ca   : > { %6154 = vst.msk [vmem:[%s9168_s14 + $0x2e8] sm:$0xff] %vm5335_vm5, %v5801_v40  ;;  %6155 = vst.msk [vmem:[%s9168_s14 + $0x2f0] sm:$0xff] %vm5335_vm5, %v5803_v28 }
 0x4cd   : > { %v5805_v63 = vpop.permute.xlu1 %5804 }
 0x4ce   : > { %6156 = vst.msk [vmem:[%s9168_s14 + $0x2f8] sm:$0xff] %vm5335_vm5, %v5805_v63 }
 0x4cf PF: > { %s16_s23 = sadd.s32 1, %s6398_s23   ;;  %s9904_s21 = smov %s6394_s22 }
 0x4d0   : > { %p13_p5 = scmp.ge.s32.totalorder %s16_s23, 4   ;;  %s9905_s22 = smov %s9907_s24 }
 0x4d2   :  { %15 = sbr.rel (!%p13_p5) target bundleno = 2 (0x2), region = 79 }

</bundles_post_ra>
